<compile_context>
chip_gen: v6e
topology: v6e:2x2x1
jax: 0.10.0
libtpu: 0.0.40
codegen_flags: <defaults>
</compile_context>

<pallas_src>
import jax
import jax.numpy as jnp
from jax import lax
from jax.experimental import pallas as pl
from jax.experimental.pallas import tpu as pltpu


def _round_up(n, m):
    return ((n + m - 1) // m) * m


def learning_h_forward(x, params, *, filters, edges):
    B, C, Hh, Ww = x.shape
    V = Hh * Ww
    K, PAD = 7, 3
    Hp, Wp = Hh + 2 * PAD, Ww + 2 * PAD
    P = _round_up(Hp * Wp, 128)          # lane-aligned length of the flattened padded image
    F_, E = filters, edges

    w_phi = params["w_phi"].astype(jnp.float32)            # (F, C)   from (F, C, 1, 1)
    b_phi = params["b_phi"].reshape(F_, 1).astype(jnp.float32)
    w_a = params["w_a"].astype(jnp.float32)                 # (F, C)
    b_a = params["b_a"].reshape(F_, 1).astype(jnp.float32)
    w_m = params["w_m"].astype(jnp.float32)                 # (E, C, 7, 7)
    b_m = params["b_m"].reshape(E, 1).astype(jnp.float32)

    # ---- glue: zero-pad spatially (for the 7x7/pad-3 conv), flatten, lane-pad ----
    xf = x.astype(jnp.float32)
    x_pad = jnp.pad(xf, ((0, 0), (0, 0), (PAD, PAD), (PAD, PAD)))
    x_flat = x_pad.reshape(B, C, Hp * Wp)
    x_flat = jnp.pad(x_flat, ((0, 0), (0, 0), (0, P - Hp * Wp)))        # (B, C, P)

    # 7x7 weights regrouped as one (E, C) matrix per tap, tap order (kh, kw)
    wm_taps = jnp.transpose(w_m, (2, 3, 0, 1)).reshape(K * K, E, C)     # (49, E, C)

    # ---------------- kernel 1: the three convolutions --------------------------
    def conv_kernel(x_ref, wphi_ref, bphi_ref, wa_ref, ba_ref, wm_ref, bm_ref,
                    phi_out, m_out, a_out):
        xv = x_ref[0]                                                   # (C, P)

        # phi_conv: 1x1 conv == (F,C)@(C,P); valid columns are extracted in glue.
        phi_out[0] = (jnp.dot(wphi_ref[...], xv,
                              preferred_element_type=jnp.float32) + bphi_ref[...])

        # A path: adaptive_avg_pool2d(x,(1,1)) == global spatial mean, then 1x1 conv.
        xbar = jnp.sum(xv, axis=1, keepdims=True) * (1.0 / V)           # (C, 1)
        a_out[0] = (jnp.dot(wa_ref[...], xbar,
                            preferred_element_type=jnp.float32) + ba_ref[...])

        # M_conv: 7x7 conv as 49 shifted (E,C)@(C,P) matmuls (no im2col; x read once).
        # For tap (kh,kw): contribution[:, p] = w_kk @ xv[:, p + kh*Wp + kw]; the roll's
        # wrap-around only touches columns beyond the valid output range (discarded in glue).
        acc = jnp.dot(wm_ref[0], xv, preferred_element_type=jnp.float32)        # tap (0,0)
        for kk in range(1, K * K):
            off = (kk // K) * Wp + (kk % K)
            xs = pltpu.roll(xv, P - off, 1)                             # xs[:, p] = xv[:, p+off]
            acc = acc + jnp.dot(wm_ref[kk], xs, preferred_element_type=jnp.float32)
        m_out[0] = acc + bm_ref[...]

    phi_pad, m_pad, a_vec = pl.pallas_call(
        conv_kernel,
        grid=(B,),
        in_specs=[
            pl.BlockSpec((1, C, P), lambda b: (b, 0, 0)),
            pl.BlockSpec((F_, C), lambda b: (0, 0)),
            pl.BlockSpec((F_, 1), lambda b: (0, 0)),
            pl.BlockSpec((F_, C), lambda b: (0, 0)),
            pl.BlockSpec((F_, 1), lambda b: (0, 0)),
            pl.BlockSpec((K * K, E, C), lambda b: (0, 0, 0)),
            pl.BlockSpec((E, 1), lambda b: (0, 0)),
        ],
        out_specs=(
            pl.BlockSpec((1, F_, P), lambda b: (b, 0, 0)),
            pl.BlockSpec((1, E, P), lambda b: (b, 0, 0)),
            pl.BlockSpec((1, F_, 1), lambda b: (b, 0, 0)),
        ),
        out_shape=(
            jax.ShapeDtypeStruct((B, F_, P), jnp.float32),
            jax.ShapeDtypeStruct((B, E, P), jnp.float32),
            jax.ShapeDtypeStruct((B, F_, 1), jnp.float32),
        ),
        compiler_params=pltpu.CompilerParams(dimension_semantics=("parallel",)),
    )(x_flat, w_phi, b_phi, w_a, b_a, wm_taps, b_m)

    # ---- glue: compact padded-grid conv outputs back to the V = H*W columns ----
    def compact(y, off):
        ch = y.shape[1]
        y = y[:, :, off:off + Hh * Wp]
        return y.reshape(B, ch, Hh, Wp)[:, :, :, :Ww].reshape(B, ch, V)

    phi_nchw = compact(phi_pad, PAD * Wp + PAD)      # (B, F, V)  NCHW-flattened
    m_nchw = compact(m_pad, 0)                       # (B, E, V)  NCHW-flattened

    # PyTorch `.view(-1, V, F/E)` is a raw row-major reinterpretation of the NCHW output
    # (NOT a transpose); reproduce it with reshape, then present lane-dense (., V) operands.
    phi_t = jnp.swapaxes(phi_nchw.reshape(B, V, F_), 1, 2)     # (B, F, V) == phi_view^T
    m_t = jnp.swapaxes(m_nchw.reshape(B, V, E), 1, 2)          # (B, E, V) == M_view^T
    a_row = a_vec.reshape(B, 1, F_)                            # (B, 1, F)

    # ---- kernel 2: H = softmax(phi @ diag(a) @ phi^T @ M) reassociated + lane-dense ----
    def h_kernel(phi_t_ref, m_t_ref, a_ref, h_ref):
        phi_tv = phi_t_ref[0]            # (F, V)
        m_tv = m_t_ref[0]                # (E, V)
        a_r = a_ref[0]                   # (1, F)

        # G^T = M_view^T @ phi_view  (contract over V: NT matmul, tiny (E,F) result)
        g_t = lax.dot_general(m_tv, phi_tv, (((1,), (1,)), ((), ())),
                              preferred_element_type=jnp.float32)          # (E, F)
        g_t = g_t * a_r                                                    # == (diag(a) @ G)^T
        # H_raw^T = (diag(a) @ G)^T @ phi_view^T  -> (E, V), lane dense
        hraw_t = jnp.dot(g_t, phi_tv, preferred_element_type=jnp.float32)  # (E, V)

        # softmax over the edges axis (sublane axis here)
        hmax = jnp.max(hraw_t, axis=0, keepdims=True)
        ex = jnp.exp(hraw_t - hmax)
        s = jnp.sum(ex, axis=0, keepdims=True)
        h_ref[0] = ex * pl.reciprocal(s, approx=True)

    h_t = pl.pallas_call(
        h_kernel,
        grid=(B,),
        in_specs=[
            pl.BlockSpec((1, F_, V), lambda b: (b, 0, 0)),
            pl.BlockSpec((1, E, V), lambda b: (b, 0, 0)),
            pl.BlockSpec((1, 1, F_), lambda b: (b, 0, 0)),
        ],
        out_specs=pl.BlockSpec((1, E, V), lambda b: (b, 0, 0)),
        out_shape=jax.ShapeDtypeStruct((B, E, V), jnp.float32),
        compiler_params=pltpu.CompilerParams(dimension_semantics=("parallel",)),
    )(phi_t, m_t, a_row)

    # NOTE: the reference's epsilon branch calls torch.where(...) without assigning the
    # result, so it is a semantic no-op -- reproduced here as a no-op.
    return jnp.swapaxes(h_t, 1, 2)       # (B, V, E)


if __name__ == "__main__":
    B, C, Hh, Ww = 2, 4, 16, 16
    filters, edges, K = 4, 8, 7

    key = jax.random.PRNGKey(0)
    k_x, k1, k2, k3, k4, k5, k6 = jax.random.split(key, 7)

    x = jax.random.normal(k_x, (B, C, Hh, Ww), dtype=jnp.float32)

    def xavier(k, shape, fan_in, fan_out):
        std = (2.0 / (fan_in + fan_out)) ** 0.5
        return jax.random.normal(k, shape, dtype=jnp.float32) * std

    params = {
        "w_phi": xavier(k1, (filters, C), C, filters),
        "b_phi": jax.random.normal(k2, (filters,), dtype=jnp.float32) * 0.01,
        "w_a": xavier(k3, (filters, C), C, filters),
        "b_a": jax.random.normal(k4, (filters,), dtype=jnp.float32) * 0.01,
        "w_m": xavier(k5, (edges, C, K, K), C * K * K, edges * K * K),
        "b_m": jax.random.normal(k6, (edges,), dtype=jnp.float32) * 0.01,
    }

    H_out = learning_h_forward(x, params, filters=filters, edges=edges)
    H_out = jax.block_until_ready(H_out)

    # Pure-JAX reference of the PyTorch forward (full association order, highest precision).
    def reference(x, params):
        V = Hh * Ww
        hp = lax.Precision.HIGHEST
        phi = jnp.einsum("fc,bchw->bfhw", params["w_phi"], x,
                         precision=hp) + params["b_phi"][None, :, None, None]
        a = jnp.mean(x, axis=(2, 3))
        a = jnp.einsum("fc,bc->bf", params["w_a"], a, precision=hp) + params["b_a"]
        m = lax.conv_general_dilated(
            x, params["w_m"], (1, 1), ((3, 3), (3, 3)),
            dimension_numbers=("NCHW", "OIHW", "NCHW"),
            precision=hp) + params["b_m"][None, :, None, None]
        phi_v = phi.reshape(B, V, filters)      # torch .view (raw reinterpretation)
        m_v = m.reshape(B, V, edges)
        t = phi_v * a[:, None, :]               # phi @ diag_embed(a)
        t2 = jnp.einsum("bvf,bwf->bvw", t, phi_v, precision=hp)
        hraw = jnp.einsum("bvw,bwe->bve", t2, m_v, precision=hp)
        return jax.nn.softmax(hraw, axis=-1)

    H_ref = reference(x, params)

    assert H_out.shape == (B, Hh * Ww, edges)
    assert bool(jnp.all(jnp.isfinite(H_out)))
    # softmax rows sum to ~1 (loose bound: approx reciprocal in the kernel)
    assert bool(jnp.all(jnp.abs(jnp.sum(H_out, axis=-1) - 1.0) < 1e-2))
    # matches the PyTorch-semantics reference (tolerance covers MXU precision + approx recip)
    assert bool(jnp.max(jnp.abs(H_out - H_ref)) < 3e-2)
    print("KERNEL_OK")
</pallas_src>

<mosaic_0001>
module attributes {stable_mosaic.version = 11 : i64} {
  func.func @conv_kernel(%arg0: i32, %arg1: memref<1x4x512xf32, #tpu.memory_space<vmem>>, %arg2: memref<4x4xf32, #tpu.memory_space<vmem>>, %arg3: memref<4x1xf32, #tpu.memory_space<vmem>>, %arg4: memref<4x4xf32, #tpu.memory_space<vmem>>, %arg5: memref<4x1xf32, #tpu.memory_space<vmem>>, %arg6: memref<49x8x4xf32, #tpu.memory_space<vmem>>, %arg7: memref<8x1xf32, #tpu.memory_space<vmem>>, %arg8: memref<1x4x512xf32, #tpu.memory_space<vmem>>, %arg9: memref<1x8x512xf32, #tpu.memory_space<vmem>>, %arg10: memref<1x4x1xf32, #tpu.memory_space<vmem>>) attributes {dimension_semantics = [#tpu.dimension_semantics<parallel>], iteration_bounds = array<i64: 2>, scalar_prefetch = 0 : i64, scratch_operands = 0 : i64, tpu.core_type = #tpu.core_type<tc>, window_params = [{transform_indices = @transform_0, window_bounds = array<i64: 1, 4, 512>}, {pipeline_mode = #tpu.pipeline_mode<synchronous>, transform_indices = @transform_1, window_bounds = array<i64: 4, 4>}, {pipeline_mode = #tpu.pipeline_mode<synchronous>, transform_indices = @transform_2, window_bounds = array<i64: 4, 1>}, {pipeline_mode = #tpu.pipeline_mode<synchronous>, transform_indices = @transform_3, window_bounds = array<i64: 4, 4>}, {pipeline_mode = #tpu.pipeline_mode<synchronous>, transform_indices = @transform_4, window_bounds = array<i64: 4, 1>}, {pipeline_mode = #tpu.pipeline_mode<synchronous>, transform_indices = @transform_5, window_bounds = array<i64: 49, 8, 4>}, {pipeline_mode = #tpu.pipeline_mode<synchronous>, transform_indices = @transform_6, window_bounds = array<i64: 8, 1>}, {transform_indices = @transform_7, window_bounds = array<i64: 1, 4, 512>}, {transform_indices = @transform_8, window_bounds = array<i64: 1, 8, 512>}, {transform_indices = @transform_9, window_bounds = array<i64: 1, 4, 1>}]} {
    %c0 = arith.constant 0 : index
    %c0_0 = arith.constant 0 : index
    %c0_1 = arith.constant 0 : index
    %0 = vector.load %arg1[%c0, %c0_0, %c0_1] : memref<1x4x512xf32, #tpu.memory_space<vmem>>, vector<1x4x512xf32>
    %1 = vector.shape_cast %0 : vector<1x4x512xf32> to vector<4x512xf32>
    %c0_2 = arith.constant 0 : index
    %c0_3 = arith.constant 0 : index
    %2 = vector.load %arg2[%c0_2, %c0_3] : memref<4x4xf32, #tpu.memory_space<vmem>>, vector<4x4xf32>
    %cst = arith.constant dense<0.000000e+00> : vector<4x512xf32>
    %3 = tpu.matmul %2, %1, %cst {dimension_numbers = #tpu.dot_dimension_numbers<[1], [0], [0], [1], [0, 0, 1, 1], [], []>} : vector<4x4xf32>, vector<4x512xf32>, vector<4x512xf32> -> vector<4x512xf32>
    %c0_4 = arith.constant 0 : index
    %c0_5 = arith.constant 0 : index
    %4 = vector.load %arg3[%c0_4, %c0_5] : memref<4x1xf32, #tpu.memory_space<vmem>>, vector<4x1xf32>
    %5 = vector.broadcast %4 : vector<4x1xf32> to vector<4x512xf32>
    %6 = arith.addf %3, %5 : vector<4x512xf32>
    %c0_6 = arith.constant 0 : index
    %c0_7 = arith.constant 0 : index
    %c0_8 = arith.constant 0 : index
    %7 = vector.load %arg8[%c0_6, %c0_7, %c0_8] : memref<1x4x512xf32, #tpu.memory_space<vmem>>, vector<1x4x512xf32>
    %8 = vector.shape_cast %7 : vector<1x4x512xf32> to vector<4x512xf32>
    %9 = vector.shape_cast %6 : vector<4x512xf32> to vector<1x4x512xf32>
    tpu.vector_store %arg8[%c0_6, %c0_7, %c0_8], %9 {strides = array<i32>} : memref<1x4x512xf32, #tpu.memory_space<vmem>>, vector<1x4x512xf32>,
    %cst_9 = arith.constant dense<0.000000e+00> : vector<4xf32>
    %10 = vector.multi_reduction <add>, %1, %cst_9 [1] : vector<4x512xf32> to vector<4xf32>
    %11 = vector.shape_cast %10 : vector<4xf32> to vector<4x1xf32>
    %cst_10 = arith.constant 3.906250e-03 : f32
    %12 = vector.broadcast %cst_10 : f32 to vector<4x1xf32>
    %13 = arith.mulf %11, %12 : vector<4x1xf32>
    %c0_11 = arith.constant 0 : index
    %c0_12 = arith.constant 0 : index
    %14 = vector.load %arg4[%c0_11, %c0_12] : memref<4x4xf32, #tpu.memory_space<vmem>>, vector<4x4xf32>
    %cst_13 = arith.constant dense<0.000000e+00> : vector<4x1xf32>
    %15 = tpu.matmul %14, %13, %cst_13 {dimension_numbers = #tpu.dot_dimension_numbers<[1], [0], [0], [1], [0, 0, 1, 1], [], []>} : vector<4x4xf32>, vector<4x1xf32>, vector<4x1xf32> -> vector<4x1xf32>
    %c0_14 = arith.constant 0 : index
    %c0_15 = arith.constant 0 : index
    %16 = vector.load %arg5[%c0_14, %c0_15] : memref<4x1xf32, #tpu.memory_space<vmem>>, vector<4x1xf32>
    %17 = arith.addf %15, %16 : vector<4x1xf32>
    %c0_16 = arith.constant 0 : index
    %c0_17 = arith.constant 0 : index
    %c0_18 = arith.constant 0 : index
    %18 = vector.load %arg10[%c0_16, %c0_17, %c0_18] : memref<1x4x1xf32, #tpu.memory_space<vmem>>, vector<1x4x1xf32>
    %19 = vector.shape_cast %18 : vector<1x4x1xf32> to vector<4x1xf32>
    %20 = vector.shape_cast %17 : vector<4x1xf32> to vector<1x4x1xf32>
    tpu.vector_store %arg10[%c0_16, %c0_17, %c0_18], %20 {strides = array<i32>} : memref<1x4x1xf32, #tpu.memory_space<vmem>>, vector<1x4x1xf32>,
    %c0_19 = arith.constant 0 : index
    %c0_20 = arith.constant 0 : index
    %c0_21 = arith.constant 0 : index
    %21 = vector.load %arg6[%c0_19, %c0_20, %c0_21] : memref<49x8x4xf32, #tpu.memory_space<vmem>>, vector<1x8x4xf32>
    %22 = vector.shape_cast %21 : vector<1x8x4xf32> to vector<8x4xf32>
    %cst_22 = arith.constant dense<0.000000e+00> : vector<8x512xf32>
    %23 = tpu.matmul %22, %1, %cst_22 {dimension_numbers = #tpu.dot_dimension_numbers<[1], [0], [0], [1], [0, 0, 1, 1], [], []>} : vector<8x4xf32>, vector<4x512xf32>, vector<8x512xf32> -> vector<8x512xf32>
    %c511_i32 = arith.constant 511 : i32
    %24 = tpu.dynamic_rotate %1 by %c511_i32 dim 1 : vector<4x512xf32>, i32 -> vector<4x512xf32>
    %c1 = arith.constant 1 : index
    %c0_23 = arith.constant 0 : index
    %c0_24 = arith.constant 0 : index
    %25 = vector.load %arg6[%c1, %c0_23, %c0_24] : memref<49x8x4xf32, #tpu.memory_space<vmem>>, vector<1x8x4xf32>
    %26 = vector.shape_cast %25 : vector<1x8x4xf32> to vector<8x4xf32>
    %cst_25 = arith.constant dense<0.000000e+00> : vector<8x512xf32>
    %27 = tpu.matmul %26, %24, %cst_25 {dimension_numbers = #tpu.dot_dimension_numbers<[1], [0], [0], [1], [0, 0, 1, 1], [], []>} : vector<8x4xf32>, vector<4x512xf32>, vector<8x512xf32> -> vector<8x512xf32>
    %28 = arith.addf %23, %27 : vector<8x512xf32>
    %c510_i32 = arith.constant 510 : i32
    %29 = tpu.dynamic_rotate %1 by %c510_i32 dim 1 : vector<4x512xf32>, i32 -> vector<4x512xf32>
    %c2 = arith.constant 2 : index
    %c0_26 = arith.constant 0 : index
    %c0_27 = arith.constant 0 : index
    %30 = vector.load %arg6[%c2, %c0_26, %c0_27] : memref<49x8x4xf32, #tpu.memory_space<vmem>>, vector<1x8x4xf32>
    %31 = vector.shape_cast %30 : vector<1x8x4xf32> to vector<8x4xf32>
    %cst_28 = arith.constant dense<0.000000e+00> : vector<8x512xf32>
    %32 = tpu.matmul %31, %29, %cst_28 {dimension_numbers = #tpu.dot_dimension_numbers<[1], [0], [0], [1], [0, 0, 1, 1], [], []>} : vector<8x4xf32>, vector<4x512xf32>, vector<8x512xf32> -> vector<8x512xf32>
    %33 = arith.addf %28, %32 : vector<8x512xf32>
    %c509_i32 = arith.constant 509 : i32
    %34 = tpu.dynamic_rotate %1 by %c509_i32 dim 1 : vector<4x512xf32>, i32 -> vector<4x512xf32>
    %c3 = arith.constant 3 : index
    %c0_29 = arith.constant 0 : index
    %c0_30 = arith.constant 0 : index
    %35 = vector.load %arg6[%c3, %c0_29, %c0_30] : memref<49x8x4xf32, #tpu.memory_space<vmem>>, vector<1x8x4xf32>
    %36 = vector.shape_cast %35 : vector<1x8x4xf32> to vector<8x4xf32>
    %cst_31 = arith.constant dense<0.000000e+00> : vector<8x512xf32>
    %37 = tpu.matmul %36, %34, %cst_31 {dimension_numbers = #tpu.dot_dimension_numbers<[1], [0], [0], [1], [0, 0, 1, 1], [], []>} : vector<8x4xf32>, vector<4x512xf32>, vector<8x512xf32> -> vector<8x512xf32>
    %38 = arith.addf %33, %37 : vector<8x512xf32>
    %c508_i32 = arith.constant 508 : i32
    %39 = tpu.dynamic_rotate %1 by %c508_i32 dim 1 : vector<4x512xf32>, i32 -> vector<4x512xf32>
    %c4 = arith.constant 4 : index
    %c0_32 = arith.constant 0 : index
    %c0_33 = arith.constant 0 : index
    %40 = vector.load %arg6[%c4, %c0_32, %c0_33] : memref<49x8x4xf32, #tpu.memory_space<vmem>>, vector<1x8x4xf32>
    %41 = vector.shape_cast %40 : vector<1x8x4xf32> to vector<8x4xf32>
    %cst_34 = arith.constant dense<0.000000e+00> : vector<8x512xf32>
    %42 = tpu.matmul %41, %39, %cst_34 {dimension_numbers = #tpu.dot_dimension_numbers<[1], [0], [0], [1], [0, 0, 1, 1], [], []>} : vector<8x4xf32>, vector<4x512xf32>, vector<8x512xf32> -> vector<8x512xf32>
    %43 = arith.addf %38, %42 : vector<8x512xf32>
    %c507_i32 = arith.constant 507 : i32
    %44 = tpu.dynamic_rotate %1 by %c507_i32 dim 1 : vector<4x512xf32>, i32 -> vector<4x512xf32>
    %c5 = arith.constant 5 : index
    %c0_35 = arith.constant 0 : index
    %c0_36 = arith.constant 0 : index
    %45 = vector.load %arg6[%c5, %c0_35, %c0_36] : memref<49x8x4xf32, #tpu.memory_space<vmem>>, vector<1x8x4xf32>
    %46 = vector.shape_cast %45 : vector<1x8x4xf32> to vector<8x4xf32>
    %cst_37 = arith.constant dense<0.000000e+00> : vector<8x512xf32>
    %47 = tpu.matmul %46, %44, %cst_37 {dimension_numbers = #tpu.dot_dimension_numbers<[1], [0], [0], [1], [0, 0, 1, 1], [], []>} : vector<8x4xf32>, vector<4x512xf32>, vector<8x512xf32> -> vector<8x512xf32>
    %48 = arith.addf %43, %47 : vector<8x512xf32>
    %c506_i32 = arith.constant 506 : i32
    %49 = tpu.dynamic_rotate %1 by %c506_i32 dim 1 : vector<4x512xf32>, i32 -> vector<4x512xf32>
    %c6 = arith.constant 6 : index
    %c0_38 = arith.constant 0 : index
    %c0_39 = arith.constant 0 : index
    %50 = vector.load %arg6[%c6, %c0_38, %c0_39] : memref<49x8x4xf32, #tpu.memory_space<vmem>>, vector<1x8x4xf32>
    %51 = vector.shape_cast %50 : vector<1x8x4xf32> to vector<8x4xf32>
    %cst_40 = arith.constant dense<0.000000e+00> : vector<8x512xf32>
    %52 = tpu.matmul %51, %49, %cst_40 {dimension_numbers = #tpu.dot_dimension_numbers<[1], [0], [0], [1], [0, 0, 1, 1], [], []>} : vector<8x4xf32>, vector<4x512xf32>, vector<8x512xf32> -> vector<8x512xf32>
    %53 = arith.addf %48, %52 : vector<8x512xf32>
    %c490_i32 = arith.constant 490 : i32
    %54 = tpu.dynamic_rotate %1 by %c490_i32 dim 1 : vector<4x512xf32>, i32 -> vector<4x512xf32>
    %c7 = arith.constant 7 : index
    %c0_41 = arith.constant 0 : index
    %c0_42 = arith.constant 0 : index
    %55 = vector.load %arg6[%c7, %c0_41, %c0_42] : memref<49x8x4xf32, #tpu.memory_space<vmem>>, vector<1x8x4xf32>
    %56 = vector.shape_cast %55 : vector<1x8x4xf32> to vector<8x4xf32>
    %cst_43 = arith.constant dense<0.000000e+00> : vector<8x512xf32>
    %57 = tpu.matmul %56, %54, %cst_43 {dimension_numbers = #tpu.dot_dimension_numbers<[1], [0], [0], [1], [0, 0, 1, 1], [], []>} : vector<8x4xf32>, vector<4x512xf32>, vector<8x512xf32> -> vector<8x512xf32>
    %58 = arith.addf %53, %57 : vector<8x512xf32>
    %c489_i32 = arith.constant 489 : i32
    %59 = tpu.dynamic_rotate %1 by %c489_i32 dim 1 : vector<4x512xf32>, i32 -> vector<4x512xf32>
    %c8 = arith.constant 8 : index
    %c0_44 = arith.constant 0 : index
    %c0_45 = arith.constant 0 : index
    %60 = vector.load %arg6[%c8, %c0_44, %c0_45] : memref<49x8x4xf32, #tpu.memory_space<vmem>>, vector<1x8x4xf32>
    %61 = vector.shape_cast %60 : vector<1x8x4xf32> to vector<8x4xf32>
    %cst_46 = arith.constant dense<0.000000e+00> : vector<8x512xf32>
    %62 = tpu.matmul %61, %59, %cst_46 {dimension_numbers = #tpu.dot_dimension_numbers<[1], [0], [0], [1], [0, 0, 1, 1], [], []>} : vector<8x4xf32>, vector<4x512xf32>, vector<8x512xf32> -> vector<8x512xf32>
    %63 = arith.addf %58, %62 : vector<8x512xf32>
    %c488_i32 = arith.constant 488 : i32
    %64 = tpu.dynamic_rotate %1 by %c488_i32 dim 1 : vector<4x512xf32>, i32 -> vector<4x512xf32>
    %c9 = arith.constant 9 : index
    %c0_47 = arith.constant 0 : index
    %c0_48 = arith.constant 0 : index
    %65 = vector.load %arg6[%c9, %c0_47, %c0_48] : memref<49x8x4xf32, #tpu.memory_space<vmem>>, vector<1x8x4xf32>
    %66 = vector.shape_cast %65 : vector<1x8x4xf32> to vector<8x4xf32>
    %cst_49 = arith.constant dense<0.000000e+00> : vector<8x512xf32>
    %67 = tpu.matmul %66, %64, %cst_49 {dimension_numbers = #tpu.dot_dimension_numbers<[1], [0], [0], [1], [0, 0, 1, 1], [], []>} : vector<8x4xf32>, vector<4x512xf32>, vector<8x512xf32> -> vector<8x512xf32>
    %68 = arith.addf %63, %67 : vector<8x512xf32>
    %c487_i32 = arith.constant 487 : i32
    %69 = tpu.dynamic_rotate %1 by %c487_i32 dim 1 : vector<4x512xf32>, i32 -> vector<4x512xf32>
    %c10 = arith.constant 10 : index
    %c0_50 = arith.constant 0 : index
    %c0_51 = arith.constant 0 : index
    %70 = vector.load %arg6[%c10, %c0_50, %c0_51] : memref<49x8x4xf32, #tpu.memory_space<vmem>>, vector<1x8x4xf32>
    %71 = vector.shape_cast %70 : vector<1x8x4xf32> to vector<8x4xf32>
    %cst_52 = arith.constant dense<0.000000e+00> : vector<8x512xf32>
    %72 = tpu.matmul %71, %69, %cst_52 {dimension_numbers = #tpu.dot_dimension_numbers<[1], [0], [0], [1], [0, 0, 1, 1], [], []>} : vector<8x4xf32>, vector<4x512xf32>, vector<8x512xf32> -> vector<8x512xf32>
    %73 = arith.addf %68, %72 : vector<8x512xf32>
    %c486_i32 = arith.constant 486 : i32
    %74 = tpu.dynamic_rotate %1 by %c486_i32 dim 1 : vector<4x512xf32>, i32 -> vector<4x512xf32>
    %c11 = arith.constant 11 : index
    %c0_53 = arith.constant 0 : index
    %c0_54 = arith.constant 0 : index
    %75 = vector.load %arg6[%c11, %c0_53, %c0_54] : memref<49x8x4xf32, #tpu.memory_space<vmem>>, vector<1x8x4xf32>
    %76 = vector.shape_cast %75 : vector<1x8x4xf32> to vector<8x4xf32>
    %cst_55 = arith.constant dense<0.000000e+00> : vector<8x512xf32>
    %77 = tpu.matmul %76, %74, %cst_55 {dimension_numbers = #tpu.dot_dimension_numbers<[1], [0], [0], [1], [0, 0, 1, 1], [], []>} : vector<8x4xf32>, vector<4x512xf32>, vector<8x512xf32> -> vector<8x512xf32>
    %78 = arith.addf %73, %77 : vector<8x512xf32>
    %c485_i32 = arith.constant 485 : i32
    %79 = tpu.dynamic_rotate %1 by %c485_i32 dim 1 : vector<4x512xf32>, i32 -> vector<4x512xf32>
    %c12 = arith.constant 12 : index
    %c0_56 = arith.constant 0 : index
    %c0_57 = arith.constant 0 : index
    %80 = vector.load %arg6[%c12, %c0_56, %c0_57] : memref<49x8x4xf32, #tpu.memory_space<vmem>>, vector<1x8x4xf32>
    %81 = vector.shape_cast %80 : vector<1x8x4xf32> to vector<8x4xf32>
    %cst_58 = arith.constant dense<0.000000e+00> : vector<8x512xf32>
    %82 = tpu.matmul %81, %79, %cst_58 {dimension_numbers = #tpu.dot_dimension_numbers<[1], [0], [0], [1], [0, 0, 1, 1], [], []>} : vector<8x4xf32>, vector<4x512xf32>, vector<8x512xf32> -> vector<8x512xf32>
    %83 = arith.addf %78, %82 : vector<8x512xf32>
    %c484_i32 = arith.constant 484 : i32
    %84 = tpu.dynamic_rotate %1 by %c484_i32 dim 1 : vector<4x512xf32>, i32 -> vector<4x512xf32>
    %c13 = arith.constant 13 : index
    %c0_59 = arith.constant 0 : index
    %c0_60 = arith.constant 0 : index
    %85 = vector.load %arg6[%c13, %c0_59, %c0_60] : memref<49x8x4xf32, #tpu.memory_space<vmem>>, vector<1x8x4xf32>
    %86 = vector.shape_cast %85 : vector<1x8x4xf32> to vector<8x4xf32>
    %cst_61 = arith.constant dense<0.000000e+00> : vector<8x512xf32>
    %87 = tpu.matmul %86, %84, %cst_61 {dimension_numbers = #tpu.dot_dimension_numbers<[1], [0], [0], [1], [0, 0, 1, 1], [], []>} : vector<8x4xf32>, vector<4x512xf32>, vector<8x512xf32> -> vector<8x512xf32>
    %88 = arith.addf %83, %87 : vector<8x512xf32>
    %c468_i32 = arith.constant 468 : i32
    %89 = tpu.dynamic_rotate %1 by %c468_i32 dim 1 : vector<4x512xf32>, i32 -> vector<4x512xf32>
    %c14 = arith.constant 14 : index
    %c0_62 = arith.constant 0 : index
    %c0_63 = arith.constant 0 : index
    %90 = vector.load %arg6[%c14, %c0_62, %c0_63] : memref<49x8x4xf32, #tpu.memory_space<vmem>>, vector<1x8x4xf32>
    %91 = vector.shape_cast %90 : vector<1x8x4xf32> to vector<8x4xf32>
    %cst_64 = arith.constant dense<0.000000e+00> : vector<8x512xf32>
    %92 = tpu.matmul %91, %89, %cst_64 {dimension_numbers = #tpu.dot_dimension_numbers<[1], [0], [0], [1], [0, 0, 1, 1], [], []>} : vector<8x4xf32>, vector<4x512xf32>, vector<8x512xf32> -> vector<8x512xf32>
    %93 = arith.addf %88, %92 : vector<8x512xf32>
    %c467_i32 = arith.constant 467 : i32
    %94 = tpu.dynamic_rotate %1 by %c467_i32 dim 1 : vector<4x512xf32>, i32 -> vector<4x512xf32>
    %c15 = arith.constant 15 : index
    %c0_65 = arith.constant 0 : index
    %c0_66 = arith.constant 0 : index
    %95 = vector.load %arg6[%c15, %c0_65, %c0_66] : memref<49x8x4xf32, #tpu.memory_space<vmem>>, vector<1x8x4xf32>
    %96 = vector.shape_cast %95 : vector<1x8x4xf32> to vector<8x4xf32>
    %cst_67 = arith.constant dense<0.000000e+00> : vector<8x512xf32>
    %97 = tpu.matmul %96, %94, %cst_67 {dimension_numbers = #tpu.dot_dimension_numbers<[1], [0], [0], [1], [0, 0, 1, 1], [], []>} : vector<8x4xf32>, vector<4x512xf32>, vector<8x512xf32> -> vector<8x512xf32>
    %98 = arith.addf %93, %97 : vector<8x512xf32>
    %c466_i32 = arith.constant 466 : i32
    %99 = tpu.dynamic_rotate %1 by %c466_i32 dim 1 : vector<4x512xf32>, i32 -> vector<4x512xf32>
    %c16 = arith.constant 16 : index
    %c0_68 = arith.constant 0 : index
    %c0_69 = arith.constant 0 : index
    %100 = vector.load %arg6[%c16, %c0_68, %c0_69] : memref<49x8x4xf32, #tpu.memory_space<vmem>>, vector<1x8x4xf32>
    %101 = vector.shape_cast %100 : vector<1x8x4xf32> to vector<8x4xf32>
    %cst_70 = arith.constant dense<0.000000e+00> : vector<8x512xf32>
    %102 = tpu.matmul %101, %99, %cst_70 {dimension_numbers = #tpu.dot_dimension_numbers<[1], [0], [0], [1], [0, 0, 1, 1], [], []>} : vector<8x4xf32>, vector<4x512xf32>, vector<8x512xf32> -> vector<8x512xf32>
    %103 = arith.addf %98, %102 : vector<8x512xf32>
    %c465_i32 = arith.constant 465 : i32
    %104 = tpu.dynamic_rotate %1 by %c465_i32 dim 1 : vector<4x512xf32>, i32 -> vector<4x512xf32>
    %c17 = arith.constant 17 : index
    %c0_71 = arith.constant 0 : index
    %c0_72 = arith.constant 0 : index
    %105 = vector.load %arg6[%c17, %c0_71, %c0_72] : memref<49x8x4xf32, #tpu.memory_space<vmem>>, vector<1x8x4xf32>
    %106 = vector.shape_cast %105 : vector<1x8x4xf32> to vector<8x4xf32>
    %cst_73 = arith.constant dense<0.000000e+00> : vector<8x512xf32>
    %107 = tpu.matmul %106, %104, %cst_73 {dimension_numbers = #tpu.dot_dimension_numbers<[1], [0], [0], [1], [0, 0, 1, 1], [], []>} : vector<8x4xf32>, vector<4x512xf32>, vector<8x512xf32> -> vector<8x512xf32>
    %108 = arith.addf %103, %107 : vector<8x512xf32>
    %c464_i32 = arith.constant 464 : i32
    %109 = tpu.dynamic_rotate %1 by %c464_i32 dim 1 : vector<4x512xf32>, i32 -> vector<4x512xf32>
    %c18 = arith.constant 18 : index
    %c0_74 = arith.constant 0 : index
    %c0_75 = arith.constant 0 : index
    %110 = vector.load %arg6[%c18, %c0_74, %c0_75] : memref<49x8x4xf32, #tpu.memory_space<vmem>>, vector<1x8x4xf32>
    %111 = vector.shape_cast %110 : vector<1x8x4xf32> to vector<8x4xf32>
    %cst_76 = arith.constant dense<0.000000e+00> : vector<8x512xf32>
    %112 = tpu.matmul %111, %109, %cst_76 {dimension_numbers = #tpu.dot_dimension_numbers<[1], [0], [0], [1], [0, 0, 1, 1], [], []>} : vector<8x4xf32>, vector<4x512xf32>, vector<8x512xf32> -> vector<8x512xf32>
    %113 = arith.addf %108, %112 : vector<8x512xf32>
    %c463_i32 = arith.constant 463 : i32
    %114 = tpu.dynamic_rotate %1 by %c463_i32 dim 1 : vector<4x512xf32>, i32 -> vector<4x512xf32>
    %c19 = arith.constant 19 : index
    %c0_77 = arith.constant 0 : index
    %c0_78 = arith.constant 0 : index
    %115 = vector.load %arg6[%c19, %c0_77, %c0_78] : memref<49x8x4xf32, #tpu.memory_space<vmem>>, vector<1x8x4xf32>
    %116 = vector.shape_cast %115 : vector<1x8x4xf32> to vector<8x4xf32>
    %cst_79 = arith.constant dense<0.000000e+00> : vector<8x512xf32>
    %117 = tpu.matmul %116, %114, %cst_79 {dimension_numbers = #tpu.dot_dimension_numbers<[1], [0], [0], [1], [0, 0, 1, 1], [], []>} : vector<8x4xf32>, vector<4x512xf32>, vector<8x512xf32> -> vector<8x512xf32>
    %118 = arith.addf %113, %117 : vector<8x512xf32>
    %c462_i32 = arith.constant 462 : i32
    %119 = tpu.dynamic_rotate %1 by %c462_i32 dim 1 : vector<4x512xf32>, i32 -> vector<4x512xf32>
    %c20 = arith.constant 20 : index
    %c0_80 = arith.constant 0 : index
    %c0_81 = arith.constant 0 : index
    %120 = vector.load %arg6[%c20, %c0_80, %c0_81] : memref<49x8x4xf32, #tpu.memory_space<vmem>>, vector<1x8x4xf32>
    %121 = vector.shape_cast %120 : vector<1x8x4xf32> to vector<8x4xf32>
    %cst_82 = arith.constant dense<0.000000e+00> : vector<8x512xf32>
    %122 = tpu.matmul %121, %119, %cst_82 {dimension_numbers = #tpu.dot_dimension_numbers<[1], [0], [0], [1], [0, 0, 1, 1], [], []>} : vector<8x4xf32>, vector<4x512xf32>, vector<8x512xf32> -> vector<8x512xf32>
    %123 = arith.addf %118, %122 : vector<8x512xf32>
    %c446_i32 = arith.constant 446 : i32
    %124 = tpu.dynamic_rotate %1 by %c446_i32 dim 1 : vector<4x512xf32>, i32 -> vector<4x512xf32>
    %c21 = arith.constant 21 : index
    %c0_83 = arith.constant 0 : index
    %c0_84 = arith.constant 0 : index
    %125 = vector.load %arg6[%c21, %c0_83, %c0_84] : memref<49x8x4xf32, #tpu.memory_space<vmem>>, vector<1x8x4xf32>
    %126 = vector.shape_cast %125 : vector<1x8x4xf32> to vector<8x4xf32>
    %cst_85 = arith.constant dense<0.000000e+00> : vector<8x512xf32>
    %127 = tpu.matmul %126, %124, %cst_85 {dimension_numbers = #tpu.dot_dimension_numbers<[1], [0], [0], [1], [0, 0, 1, 1], [], []>} : vector<8x4xf32>, vector<4x512xf32>, vector<8x512xf32> -> vector<8x512xf32>
    %128 = arith.addf %123, %127 : vector<8x512xf32>
    %c445_i32 = arith.constant 445 : i32
    %129 = tpu.dynamic_rotate %1 by %c445_i32 dim 1 : vector<4x512xf32>, i32 -> vector<4x512xf32>
    %c22 = arith.constant 22 : index
    %c0_86 = arith.constant 0 : index
    %c0_87 = arith.constant 0 : index
    %130 = vector.load %arg6[%c22, %c0_86, %c0_87] : memref<49x8x4xf32, #tpu.memory_space<vmem>>, vector<1x8x4xf32>
    %131 = vector.shape_cast %130 : vector<1x8x4xf32> to vector<8x4xf32>
    %cst_88 = arith.constant dense<0.000000e+00> : vector<8x512xf32>
    %132 = tpu.matmul %131, %129, %cst_88 {dimension_numbers = #tpu.dot_dimension_numbers<[1], [0], [0], [1], [0, 0, 1, 1], [], []>} : vector<8x4xf32>, vector<4x512xf32>, vector<8x512xf32> -> vector<8x512xf32>
    %133 = arith.addf %128, %132 : vector<8x512xf32>
    %c444_i32 = arith.constant 444 : i32
    %134 = tpu.dynamic_rotate %1 by %c444_i32 dim 1 : vector<4x512xf32>, i32 -> vector<4x512xf32>
    %c23 = arith.constant 23 : index
    %c0_89 = arith.constant 0 : index
    %c0_90 = arith.constant 0 : index
    %135 = vector.load %arg6[%c23, %c0_89, %c0_90] : memref<49x8x4xf32, #tpu.memory_space<vmem>>, vector<1x8x4xf32>
    %136 = vector.shape_cast %135 : vector<1x8x4xf32> to vector<8x4xf32>
    %cst_91 = arith.constant dense<0.000000e+00> : vector<8x512xf32>
    %137 = tpu.matmul %136, %134, %cst_91 {dimension_numbers = #tpu.dot_dimension_numbers<[1], [0], [0], [1], [0, 0, 1, 1], [], []>} : vector<8x4xf32>, vector<4x512xf32>, vector<8x512xf32> -> vector<8x512xf32>
    %138 = arith.addf %133, %137 : vector<8x512xf32>
    %c443_i32 = arith.constant 443 : i32
    %139 = tpu.dynamic_rotate %1 by %c443_i32 dim 1 : vector<4x512xf32>, i32 -> vector<4x512xf32>
    %c24 = arith.constant 24 : index
    %c0_92 = arith.constant 0 : index
    %c0_93 = arith.constant 0 : index
    %140 = vector.load %arg6[%c24, %c0_92, %c0_93] : memref<49x8x4xf32, #tpu.memory_space<vmem>>, vector<1x8x4xf32>
    %141 = vector.shape_cast %140 : vector<1x8x4xf32> to vector<8x4xf32>
    %cst_94 = arith.constant dense<0.000000e+00> : vector<8x512xf32>
    %142 = tpu.matmul %141, %139, %cst_94 {dimension_numbers = #tpu.dot_dimension_numbers<[1], [0], [0], [1], [0, 0, 1, 1], [], []>} : vector<8x4xf32>, vector<4x512xf32>, vector<8x512xf32> -> vector<8x512xf32>
    %143 = arith.addf %138, %142 : vector<8x512xf32>
    %c442_i32 = arith.constant 442 : i32
    %144 = tpu.dynamic_rotate %1 by %c442_i32 dim 1 : vector<4x512xf32>, i32 -> vector<4x512xf32>
    %c25 = arith.constant 25 : index
    %c0_95 = arith.constant 0 : index
    %c0_96 = arith.constant 0 : index
    %145 = vector.load %arg6[%c25, %c0_95, %c0_96] : memref<49x8x4xf32, #tpu.memory_space<vmem>>, vector<1x8x4xf32>
    %146 = vector.shape_cast %145 : vector<1x8x4xf32> to vector<8x4xf32>
    %cst_97 = arith.constant dense<0.000000e+00> : vector<8x512xf32>
    %147 = tpu.matmul %146, %144, %cst_97 {dimension_numbers = #tpu.dot_dimension_numbers<[1], [0], [0], [1], [0, 0, 1, 1], [], []>} : vector<8x4xf32>, vector<4x512xf32>, vector<8x512xf32> -> vector<8x512xf32>
    %148 = arith.addf %143, %147 : vector<8x512xf32>
    %c441_i32 = arith.constant 441 : i32
    %149 = tpu.dynamic_rotate %1 by %c441_i32 dim 1 : vector<4x512xf32>, i32 -> vector<4x512xf32>
    %c26 = arith.constant 26 : index
    %c0_98 = arith.constant 0 : index
    %c0_99 = arith.constant 0 : index
    %150 = vector.load %arg6[%c26, %c0_98, %c0_99] : memref<49x8x4xf32, #tpu.memory_space<vmem>>, vector<1x8x4xf32>
    %151 = vector.shape_cast %150 : vector<1x8x4xf32> to vector<8x4xf32>
    %cst_100 = arith.constant dense<0.000000e+00> : vector<8x512xf32>
    %152 = tpu.matmul %151, %149, %cst_100 {dimension_numbers = #tpu.dot_dimension_numbers<[1], [0], [0], [1], [0, 0, 1, 1], [], []>} : vector<8x4xf32>, vector<4x512xf32>, vector<8x512xf32> -> vector<8x512xf32>
    %153 = arith.addf %148, %152 : vector<8x512xf32>
    %c440_i32 = arith.constant 440 : i32
    %154 = tpu.dynamic_rotate %1 by %c440_i32 dim 1 : vector<4x512xf32>, i32 -> vector<4x512xf32>
    %c27 = arith.constant 27 : index
    %c0_101 = arith.constant 0 : index
    %c0_102 = arith.constant 0 : index
    %155 = vector.load %arg6[%c27, %c0_101, %c0_102] : memref<49x8x4xf32, #tpu.memory_space<vmem>>, vector<1x8x4xf32>
    %156 = vector.shape_cast %155 : vector<1x8x4xf32> to vector<8x4xf32>
    %cst_103 = arith.constant dense<0.000000e+00> : vector<8x512xf32>
    %157 = tpu.matmul %156, %154, %cst_103 {dimension_numbers = #tpu.dot_dimension_numbers<[1], [0], [0], [1], [0, 0, 1, 1], [], []>} : vector<8x4xf32>, vector<4x512xf32>, vector<8x512xf32> -> vector<8x512xf32>
    %158 = arith.addf %153, %157 : vector<8x512xf32>
    %c424_i32 = arith.constant 424 : i32
    %159 = tpu.dynamic_rotate %1 by %c424_i32 dim 1 : vector<4x512xf32>, i32 -> vector<4x512xf32>
    %c28 = arith.constant 28 : index
    %c0_104 = arith.constant 0 : index
    %c0_105 = arith.constant 0 : index
    %160 = vector.load %arg6[%c28, %c0_104, %c0_105] : memref<49x8x4xf32, #tpu.memory_space<vmem>>, vector<1x8x4xf32>
    %161 = vector.shape_cast %160 : vector<1x8x4xf32> to vector<8x4xf32>
    %cst_106 = arith.constant dense<0.000000e+00> : vector<8x512xf32>
    %162 = tpu.matmul %161, %159, %cst_106 {dimension_numbers = #tpu.dot_dimension_numbers<[1], [0], [0], [1], [0, 0, 1, 1], [], []>} : vector<8x4xf32>, vector<4x512xf32>, vector<8x512xf32> -> vector<8x512xf32>
    %163 = arith.addf %158, %162 : vector<8x512xf32>
    %c423_i32 = arith.constant 423 : i32
    %164 = tpu.dynamic_rotate %1 by %c423_i32 dim 1 : vector<4x512xf32>, i32 -> vector<4x512xf32>
    %c29 = arith.constant 29 : index
    %c0_107 = arith.constant 0 : index
    %c0_108 = arith.constant 0 : index
    %165 = vector.load %arg6[%c29, %c0_107, %c0_108] : memref<49x8x4xf32, #tpu.memory_space<vmem>>, vector<1x8x4xf32>
    %166 = vector.shape_cast %165 : vector<1x8x4xf32> to vector<8x4xf32>
    %cst_109 = arith.constant dense<0.000000e+00> : vector<8x512xf32>
    %167 = tpu.matmul %166, %164, %cst_109 {dimension_numbers = #tpu.dot_dimension_numbers<[1], [0], [0], [1], [0, 0, 1, 1], [], []>} : vector<8x4xf32>, vector<4x512xf32>, vector<8x512xf32> -> vector<8x512xf32>
    %168 = arith.addf %163, %167 : vector<8x512xf32>
    %c422_i32 = arith.constant 422 : i32
    %169 = tpu.dynamic_rotate %1 by %c422_i32 dim 1 : vector<4x512xf32>, i32 -> vector<4x512xf32>
    %c30 = arith.constant 30 : index
    %c0_110 = arith.constant 0 : index
    %c0_111 = arith.constant 0 : index
    %170 = vector.load %arg6[%c30, %c0_110, %c0_111] : memref<49x8x4xf32, #tpu.memory_space<vmem>>, vector<1x8x4xf32>
    %171 = vector.shape_cast %170 : vector<1x8x4xf32> to vector<8x4xf32>
    %cst_112 = arith.constant dense<0.000000e+00> : vector<8x512xf32>
    %172 = tpu.matmul %171, %169, %cst_112 {dimension_numbers = #tpu.dot_dimension_numbers<[1], [0], [0], [1], [0, 0, 1, 1], [], []>} : vector<8x4xf32>, vector<4x512xf32>, vector<8x512xf32> -> vector<8x512xf32>
    %173 = arith.addf %168, %172 : vector<8x512xf32>
    %c421_i32 = arith.constant 421 : i32
    %174 = tpu.dynamic_rotate %1 by %c421_i32 dim 1 : vector<4x512xf32>, i32 -> vector<4x512xf32>
    %c31 = arith.constant 31 : index
    %c0_113 = arith.constant 0 : index
    %c0_114 = arith.constant 0 : index
    %175 = vector.load %arg6[%c31, %c0_113, %c0_114] : memref<49x8x4xf32, #tpu.memory_space<vmem>>, vector<1x8x4xf32>
    %176 = vector.shape_cast %175 : vector<1x8x4xf32> to vector<8x4xf32>
    %cst_115 = arith.constant dense<0.000000e+00> : vector<8x512xf32>
    %177 = tpu.matmul %176, %174, %cst_115 {dimension_numbers = #tpu.dot_dimension_numbers<[1], [0], [0], [1], [0, 0, 1, 1], [], []>} : vector<8x4xf32>, vector<4x512xf32>, vector<8x512xf32> -> vector<8x512xf32>
    %178 = arith.addf %173, %177 : vector<8x512xf32>
    %c420_i32 = arith.constant 420 : i32
    %179 = tpu.dynamic_rotate %1 by %c420_i32 dim 1 : vector<4x512xf32>, i32 -> vector<4x512xf32>
    %c32 = arith.constant 32 : index
    %c0_116 = arith.constant 0 : index
    %c0_117 = arith.constant 0 : index
    %180 = vector.load %arg6[%c32, %c0_116, %c0_117] : memref<49x8x4xf32, #tpu.memory_space<vmem>>, vector<1x8x4xf32>
    %181 = vector.shape_cast %180 : vector<1x8x4xf32> to vector<8x4xf32>
    %cst_118 = arith.constant dense<0.000000e+00> : vector<8x512xf32>
    %182 = tpu.matmul %181, %179, %cst_118 {dimension_numbers = #tpu.dot_dimension_numbers<[1], [0], [0], [1], [0, 0, 1, 1], [], []>} : vector<8x4xf32>, vector<4x512xf32>, vector<8x512xf32> -> vector<8x512xf32>
    %183 = arith.addf %178, %182 : vector<8x512xf32>
    %c419_i32 = arith.constant 419 : i32
    %184 = tpu.dynamic_rotate %1 by %c419_i32 dim 1 : vector<4x512xf32>, i32 -> vector<4x512xf32>
    %c33 = arith.constant 33 : index
    %c0_119 = arith.constant 0 : index
    %c0_120 = arith.constant 0 : index
    %185 = vector.load %arg6[%c33, %c0_119, %c0_120] : memref<49x8x4xf32, #tpu.memory_space<vmem>>, vector<1x8x4xf32>
    %186 = vector.shape_cast %185 : vector<1x8x4xf32> to vector<8x4xf32>
    %cst_121 = arith.constant dense<0.000000e+00> : vector<8x512xf32>
    %187 = tpu.matmul %186, %184, %cst_121 {dimension_numbers = #tpu.dot_dimension_numbers<[1], [0], [0], [1], [0, 0, 1, 1], [], []>} : vector<8x4xf32>, vector<4x512xf32>, vector<8x512xf32> -> vector<8x512xf32>
    %188 = arith.addf %183, %187 : vector<8x512xf32>
    %c418_i32 = arith.constant 418 : i32
    %189 = tpu.dynamic_rotate %1 by %c418_i32 dim 1 : vector<4x512xf32>, i32 -> vector<4x512xf32>
    %c34 = arith.constant 34 : index
    %c0_122 = arith.constant 0 : index
    %c0_123 = arith.constant 0 : index
    %190 = vector.load %arg6[%c34, %c0_122, %c0_123] : memref<49x8x4xf32, #tpu.memory_space<vmem>>, vector<1x8x4xf32>
    %191 = vector.shape_cast %190 : vector<1x8x4xf32> to vector<8x4xf32>
    %cst_124 = arith.constant dense<0.000000e+00> : vector<8x512xf32>
    %192 = tpu.matmul %191, %189, %cst_124 {dimension_numbers = #tpu.dot_dimension_numbers<[1], [0], [0], [1], [0, 0, 1, 1], [], []>} : vector<8x4xf32>, vector<4x512xf32>, vector<8x512xf32> -> vector<8x512xf32>
    %193 = arith.addf %188, %192 : vector<8x512xf32>
    %c402_i32 = arith.constant 402 : i32
    %194 = tpu.dynamic_rotate %1 by %c402_i32 dim 1 : vector<4x512xf32>, i32 -> vector<4x512xf32>
    %c35 = arith.constant 35 : index
    %c0_125 = arith.constant 0 : index
    %c0_126 = arith.constant 0 : index
    %195 = vector.load %arg6[%c35, %c0_125, %c0_126] : memref<49x8x4xf32, #tpu.memory_space<vmem>>, vector<1x8x4xf32>
    %196 = vector.shape_cast %195 : vector<1x8x4xf32> to vector<8x4xf32>
    %cst_127 = arith.constant dense<0.000000e+00> : vector<8x512xf32>
    %197 = tpu.matmul %196, %194, %cst_127 {dimension_numbers = #tpu.dot_dimension_numbers<[1], [0], [0], [1], [0, 0, 1, 1], [], []>} : vector<8x4xf32>, vector<4x512xf32>, vector<8x512xf32> -> vector<8x512xf32>
    %198 = arith.addf %193, %197 : vector<8x512xf32>
    %c401_i32 = arith.constant 401 : i32
    %199 = tpu.dynamic_rotate %1 by %c401_i32 dim 1 : vector<4x512xf32>, i32 -> vector<4x512xf32>
    %c36 = arith.constant 36 : index
    %c0_128 = arith.constant 0 : index
    %c0_129 = arith.constant 0 : index
    %200 = vector.load %arg6[%c36, %c0_128, %c0_129] : memref<49x8x4xf32, #tpu.memory_space<vmem>>, vector<1x8x4xf32>
    %201 = vector.shape_cast %200 : vector<1x8x4xf32> to vector<8x4xf32>
    %cst_130 = arith.constant dense<0.000000e+00> : vector<8x512xf32>
    %202 = tpu.matmul %201, %199, %cst_130 {dimension_numbers = #tpu.dot_dimension_numbers<[1], [0], [0], [1], [0, 0, 1, 1], [], []>} : vector<8x4xf32>, vector<4x512xf32>, vector<8x512xf32> -> vector<8x512xf32>
    %203 = arith.addf %198, %202 : vector<8x512xf32>
    %c400_i32 = arith.constant 400 : i32
    %204 = tpu.dynamic_rotate %1 by %c400_i32 dim 1 : vector<4x512xf32>, i32 -> vector<4x512xf32>
    %c37 = arith.constant 37 : index
    %c0_131 = arith.constant 0 : index
    %c0_132 = arith.constant 0 : index
    %205 = vector.load %arg6[%c37, %c0_131, %c0_132] : memref<49x8x4xf32, #tpu.memory_space<vmem>>, vector<1x8x4xf32>
    %206 = vector.shape_cast %205 : vector<1x8x4xf32> to vector<8x4xf32>
    %cst_133 = arith.constant dense<0.000000e+00> : vector<8x512xf32>
    %207 = tpu.matmul %206, %204, %cst_133 {dimension_numbers = #tpu.dot_dimension_numbers<[1], [0], [0], [1], [0, 0, 1, 1], [], []>} : vector<8x4xf32>, vector<4x512xf32>, vector<8x512xf32> -> vector<8x512xf32>
    %208 = arith.addf %203, %207 : vector<8x512xf32>
    %c399_i32 = arith.constant 399 : i32
    %209 = tpu.dynamic_rotate %1 by %c399_i32 dim 1 : vector<4x512xf32>, i32 -> vector<4x512xf32>
    %c38 = arith.constant 38 : index
    %c0_134 = arith.constant 0 : index
    %c0_135 = arith.constant 0 : index
    %210 = vector.load %arg6[%c38, %c0_134, %c0_135] : memref<49x8x4xf32, #tpu.memory_space<vmem>>, vector<1x8x4xf32>
    %211 = vector.shape_cast %210 : vector<1x8x4xf32> to vector<8x4xf32>
    %cst_136 = arith.constant dense<0.000000e+00> : vector<8x512xf32>
    %212 = tpu.matmul %211, %209, %cst_136 {dimension_numbers = #tpu.dot_dimension_numbers<[1], [0], [0], [1], [0, 0, 1, 1], [], []>} : vector<8x4xf32>, vector<4x512xf32>, vector<8x512xf32> -> vector<8x512xf32>
    %213 = arith.addf %208, %212 : vector<8x512xf32>
    %c398_i32 = arith.constant 398 : i32
    %214 = tpu.dynamic_rotate %1 by %c398_i32 dim 1 : vector<4x512xf32>, i32 -> vector<4x512xf32>
    %c39 = arith.constant 39 : index
    %c0_137 = arith.constant 0 : index
    %c0_138 = arith.constant 0 : index
    %215 = vector.load %arg6[%c39, %c0_137, %c0_138] : memref<49x8x4xf32, #tpu.memory_space<vmem>>, vector<1x8x4xf32>
    %216 = vector.shape_cast %215 : vector<1x8x4xf32> to vector<8x4xf32>
    %cst_139 = arith.constant dense<0.000000e+00> : vector<8x512xf32>
    %217 = tpu.matmul %216, %214, %cst_139 {dimension_numbers = #tpu.dot_dimension_numbers<[1], [0], [0], [1], [0, 0, 1, 1], [], []>} : vector<8x4xf32>, vector<4x512xf32>, vector<8x512xf32> -> vector<8x512xf32>
    %218 = arith.addf %213, %217 : vector<8x512xf32>
    %c397_i32 = arith.constant 397 : i32
    %219 = tpu.dynamic_rotate %1 by %c397_i32 dim 1 : vector<4x512xf32>, i32 -> vector<4x512xf32>
    %c40 = arith.constant 40 : index
    %c0_140 = arith.constant 0 : index
    %c0_141 = arith.constant 0 : index
    %220 = vector.load %arg6[%c40, %c0_140, %c0_141] : memref<49x8x4xf32, #tpu.memory_space<vmem>>, vector<1x8x4xf32>
    %221 = vector.shape_cast %220 : vector<1x8x4xf32> to vector<8x4xf32>
    %cst_142 = arith.constant dense<0.000000e+00> : vector<8x512xf32>
    %222 = tpu.matmul %221, %219, %cst_142 {dimension_numbers = #tpu.dot_dimension_numbers<[1], [0], [0], [1], [0, 0, 1, 1], [], []>} : vector<8x4xf32>, vector<4x512xf32>, vector<8x512xf32> -> vector<8x512xf32>
    %223 = arith.addf %218, %222 : vector<8x512xf32>
    %c396_i32 = arith.constant 396 : i32
    %224 = tpu.dynamic_rotate %1 by %c396_i32 dim 1 : vector<4x512xf32>, i32 -> vector<4x512xf32>
    %c41 = arith.constant 41 : index
    %c0_143 = arith.constant 0 : index
    %c0_144 = arith.constant 0 : index
    %225 = vector.load %arg6[%c41, %c0_143, %c0_144] : memref<49x8x4xf32, #tpu.memory_space<vmem>>, vector<1x8x4xf32>
    %226 = vector.shape_cast %225 : vector<1x8x4xf32> to vector<8x4xf32>
    %cst_145 = arith.constant dense<0.000000e+00> : vector<8x512xf32>
    %227 = tpu.matmul %226, %224, %cst_145 {dimension_numbers = #tpu.dot_dimension_numbers<[1], [0], [0], [1], [0, 0, 1, 1], [], []>} : vector<8x4xf32>, vector<4x512xf32>, vector<8x512xf32> -> vector<8x512xf32>
    %228 = arith.addf %223, %227 : vector<8x512xf32>
    %c380_i32 = arith.constant 380 : i32
    %229 = tpu.dynamic_rotate %1 by %c380_i32 dim 1 : vector<4x512xf32>, i32 -> vector<4x512xf32>
    %c42 = arith.constant 42 : index
    %c0_146 = arith.constant 0 : index
    %c0_147 = arith.constant 0 : index
    %230 = vector.load %arg6[%c42, %c0_146, %c0_147] : memref<49x8x4xf32, #tpu.memory_space<vmem>>, vector<1x8x4xf32>
    %231 = vector.shape_cast %230 : vector<1x8x4xf32> to vector<8x4xf32>
    %cst_148 = arith.constant dense<0.000000e+00> : vector<8x512xf32>
    %232 = tpu.matmul %231, %229, %cst_148 {dimension_numbers = #tpu.dot_dimension_numbers<[1], [0], [0], [1], [0, 0, 1, 1], [], []>} : vector<8x4xf32>, vector<4x512xf32>, vector<8x512xf32> -> vector<8x512xf32>
    %233 = arith.addf %228, %232 : vector<8x512xf32>
    %c379_i32 = arith.constant 379 : i32
    %234 = tpu.dynamic_rotate %1 by %c379_i32 dim 1 : vector<4x512xf32>, i32 -> vector<4x512xf32>
    %c43 = arith.constant 43 : index
    %c0_149 = arith.constant 0 : index
    %c0_150 = arith.constant 0 : index
    %235 = vector.load %arg6[%c43, %c0_149, %c0_150] : memref<49x8x4xf32, #tpu.memory_space<vmem>>, vector<1x8x4xf32>
    %236 = vector.shape_cast %235 : vector<1x8x4xf32> to vector<8x4xf32>
    %cst_151 = arith.constant dense<0.000000e+00> : vector<8x512xf32>
    %237 = tpu.matmul %236, %234, %cst_151 {dimension_numbers = #tpu.dot_dimension_numbers<[1], [0], [0], [1], [0, 0, 1, 1], [], []>} : vector<8x4xf32>, vector<4x512xf32>, vector<8x512xf32> -> vector<8x512xf32>
    %238 = arith.addf %233, %237 : vector<8x512xf32>
    %c378_i32 = arith.constant 378 : i32
    %239 = tpu.dynamic_rotate %1 by %c378_i32 dim 1 : vector<4x512xf32>, i32 -> vector<4x512xf32>
    %c44 = arith.constant 44 : index
    %c0_152 = arith.constant 0 : index
    %c0_153 = arith.constant 0 : index
    %240 = vector.load %arg6[%c44, %c0_152, %c0_153] : memref<49x8x4xf32, #tpu.memory_space<vmem>>, vector<1x8x4xf32>
    %241 = vector.shape_cast %240 : vector<1x8x4xf32> to vector<8x4xf32>
    %cst_154 = arith.constant dense<0.000000e+00> : vector<8x512xf32>
    %242 = tpu.matmul %241, %239, %cst_154 {dimension_numbers = #tpu.dot_dimension_numbers<[1], [0], [0], [1], [0, 0, 1, 1], [], []>} : vector<8x4xf32>, vector<4x512xf32>, vector<8x512xf32> -> vector<8x512xf32>
    %243 = arith.addf %238, %242 : vector<8x512xf32>
    %c377_i32 = arith.constant 377 : i32
    %244 = tpu.dynamic_rotate %1 by %c377_i32 dim 1 : vector<4x512xf32>, i32 -> vector<4x512xf32>
    %c45 = arith.constant 45 : index
    %c0_155 = arith.constant 0 : index
    %c0_156 = arith.constant 0 : index
    %245 = vector.load %arg6[%c45, %c0_155, %c0_156] : memref<49x8x4xf32, #tpu.memory_space<vmem>>, vector<1x8x4xf32>
    %246 = vector.shape_cast %245 : vector<1x8x4xf32> to vector<8x4xf32>
    %cst_157 = arith.constant dense<0.000000e+00> : vector<8x512xf32>
    %247 = tpu.matmul %246, %244, %cst_157 {dimension_numbers = #tpu.dot_dimension_numbers<[1], [0], [0], [1], [0, 0, 1, 1], [], []>} : vector<8x4xf32>, vector<4x512xf32>, vector<8x512xf32> -> vector<8x512xf32>
    %248 = arith.addf %243, %247 : vector<8x512xf32>
    %c376_i32 = arith.constant 376 : i32
    %249 = tpu.dynamic_rotate %1 by %c376_i32 dim 1 : vector<4x512xf32>, i32 -> vector<4x512xf32>
    %c46 = arith.constant 46 : index
    %c0_158 = arith.constant 0 : index
    %c0_159 = arith.constant 0 : index
    %250 = vector.load %arg6[%c46, %c0_158, %c0_159] : memref<49x8x4xf32, #tpu.memory_space<vmem>>, vector<1x8x4xf32>
    %251 = vector.shape_cast %250 : vector<1x8x4xf32> to vector<8x4xf32>
    %cst_160 = arith.constant dense<0.000000e+00> : vector<8x512xf32>
    %252 = tpu.matmul %251, %249, %cst_160 {dimension_numbers = #tpu.dot_dimension_numbers<[1], [0], [0], [1], [0, 0, 1, 1], [], []>} : vector<8x4xf32>, vector<4x512xf32>, vector<8x512xf32> -> vector<8x512xf32>
    %253 = arith.addf %248, %252 : vector<8x512xf32>
    %c375_i32 = arith.constant 375 : i32
    %254 = tpu.dynamic_rotate %1 by %c375_i32 dim 1 : vector<4x512xf32>, i32 -> vector<4x512xf32>
    %c47 = arith.constant 47 : index
    %c0_161 = arith.constant 0 : index
    %c0_162 = arith.constant 0 : index
    %255 = vector.load %arg6[%c47, %c0_161, %c0_162] : memref<49x8x4xf32, #tpu.memory_space<vmem>>, vector<1x8x4xf32>
    %256 = vector.shape_cast %255 : vector<1x8x4xf32> to vector<8x4xf32>
    %cst_163 = arith.constant dense<0.000000e+00> : vector<8x512xf32>
    %257 = tpu.matmul %256, %254, %cst_163 {dimension_numbers = #tpu.dot_dimension_numbers<[1], [0], [0], [1], [0, 0, 1, 1], [], []>} : vector<8x4xf32>, vector<4x512xf32>, vector<8x512xf32> -> vector<8x512xf32>
    %258 = arith.addf %253, %257 : vector<8x512xf32>
    %c374_i32 = arith.constant 374 : i32
    %259 = tpu.dynamic_rotate %1 by %c374_i32 dim 1 : vector<4x512xf32>, i32 -> vector<4x512xf32>
    %c48 = arith.constant 48 : index
    %c0_164 = arith.constant 0 : index
    %c0_165 = arith.constant 0 : index
    %260 = vector.load %arg6[%c48, %c0_164, %c0_165] : memref<49x8x4xf32, #tpu.memory_space<vmem>>, vector<1x8x4xf32>
    %261 = vector.shape_cast %260 : vector<1x8x4xf32> to vector<8x4xf32>
    %cst_166 = arith.constant dense<0.000000e+00> : vector<8x512xf32>
    %262 = tpu.matmul %261, %259, %cst_166 {dimension_numbers = #tpu.dot_dimension_numbers<[1], [0], [0], [1], [0, 0, 1, 1], [], []>} : vector<8x4xf32>, vector<4x512xf32>, vector<8x512xf32> -> vector<8x512xf32>
    %263 = arith.addf %258, %262 : vector<8x512xf32>
    %c0_167 = arith.constant 0 : index
    %c0_168 = arith.constant 0 : index
    %264 = vector.load %arg7[%c0_167, %c0_168] : memref<8x1xf32, #tpu.memory_space<vmem>>, vector<8x1xf32>
    %265 = vector.broadcast %264 : vector<8x1xf32> to vector<8x512xf32>
    %266 = arith.addf %263, %265 : vector<8x512xf32>
    %c0_169 = arith.constant 0 : index
    %c0_170 = arith.constant 0 : index
    %c0_171 = arith.constant 0 : index
    %267 = vector.load %arg9[%c0_169, %c0_170, %c0_171] : memref<1x8x512xf32, #tpu.memory_space<vmem>>, vector<1x8x512xf32>
    %268 = vector.shape_cast %267 : vector<1x8x512xf32> to vector<8x512xf32>
    %269 = vector.shape_cast %266 : vector<8x512xf32> to vector<1x8x512xf32>
    tpu.vector_store %arg9[%c0_169, %c0_170, %c0_171], %269 {strides = array<i32>} : memref<1x8x512xf32, #tpu.memory_space<vmem>>, vector<1x8x512xf32>,
    return
  }
  func.func @transform_0(%arg0: i32) -> (i32, i32, i32) {
    %c0_i32 = arith.constant 0 : i32
    %c0_i32_0 = arith.constant 0 : i32
    %c0_i32_1 = arith.constant 0 : i32
    return %arg0, %c0_i32, %c0_i32_0 : i32, i32, i32
  }
  func.func @transform_1(%arg0: i32) -> (i32, i32) {
    %c0_i32 = arith.constant 0 : i32
    %c0_i32_0 = arith.constant 0 : i32
    %c0_i32_1 = arith.constant 0 : i32
    return %c0_i32, %c0_i32_0 : i32, i32
  }
  func.func @transform_2(%arg0: i32) -> (i32, i32) {
    %c0_i32 = arith.constant 0 : i32
    %c0_i32_0 = arith.constant 0 : i32
    %c0_i32_1 = arith.constant 0 : i32
    return %c0_i32, %c0_i32_0 : i32, i32
  }
  func.func @transform_3(%arg0: i32) -> (i32, i32) {
    %c0_i32 = arith.constant 0 : i32
    %c0_i32_0 = arith.constant 0 : i32
    %c0_i32_1 = arith.constant 0 : i32
    return %c0_i32, %c0_i32_0 : i32, i32
  }
  func.func @transform_4(%arg0: i32) -> (i32, i32) {
    %c0_i32 = arith.constant 0 : i32
    %c0_i32_0 = arith.constant 0 : i32
    %c0_i32_1 = arith.constant 0 : i32
    return %c0_i32, %c0_i32_0 : i32, i32
  }
  func.func @transform_5(%arg0: i32) -> (i32, i32, i32) {
    %c0_i32 = arith.constant 0 : i32
    %c0_i32_0 = arith.constant 0 : i32
    %c0_i32_1 = arith.constant 0 : i32
    %c0_i32_2 = arith.constant 0 : i32
    return %c0_i32, %c0_i32_0, %c0_i32_1 : i32, i32, i32
  }
  func.func @transform_6(%arg0: i32) -> (i32, i32) {
    %c0_i32 = arith.constant 0 : i32
    %c0_i32_0 = arith.constant 0 : i32
    %c0_i32_1 = arith.constant 0 : i32
    return %c0_i32, %c0_i32_0 : i32, i32
  }
  func.func @transform_7(%arg0: i32) -> (i32, i32, i32) {
    %c0_i32 = arith.constant 0 : i32
    %c0_i32_0 = arith.constant 0 : i32
    %c0_i32_1 = arith.constant 0 : i32
    return %arg0, %c0_i32, %c0_i32_0 : i32, i32, i32
  }
  func.func @transform_8(%arg0: i32) -> (i32, i32, i32) {
    %c0_i32 = arith.constant 0 : i32
    %c0_i32_0 = arith.constant 0 : i32
    %c0_i32_1 = arith.constant 0 : i32
    return %arg0, %c0_i32, %c0_i32_0 : i32, i32, i32
  }
  func.func @transform_9(%arg0: i32) -> (i32, i32, i32) {
    %c0_i32 = arith.constant 0 : i32
    %c0_i32_0 = arith.constant 0 : i32
    %c0_i32_1 = arith.constant 0 : i32
    return %arg0, %c0_i32, %c0_i32_0 : i32, i32, i32
  }
}

</mosaic_0001>

<bundles_post_ra>
// kernel: tpu_custom_call.1
= control target key start
LH: loop header
LB: loop body
LE: loop exit
PB: predicated region body
PF: predicated region fallthrough
CT: control target
= control target key end

     0   :  { %s11657_s0 = inlined_call_operand.vmem [shape: f32[2,4,512], index: 0, kind: input, shape index: {}]   ;;  %s11658_s1 = inlined_call_operand.vmem [shape: f32[4,4], index: 1, kind: input, shape index: {}]   ;;  %s11659_s2 = inlined_call_operand.vmem [shape: f32[4,1], index: 2, kind: input, shape index: {}]   ;;  %s11660_s3 = inlined_call_operand.vmem [shape: f32[4,4], index: 3, kind: input, shape index: {}]   ;;  %s11661_s4 = inlined_call_operand.vmem [shape: f32[4,1], index: 4, kind: input, shape index: {}]   ;;  %s11662_s5 = inlined_call_operand.vmem [shape: f32[49,8,4], index: 5, kind: input, shape index: {}]   ;;  %s11663_s6 = inlined_call_operand.vmem [shape: f32[8,1], index: 6, kind: input, shape index: {}]   ;;  %s11664_s7 = inlined_call_operand.hbm [shape: f32[2,4,512], index: 7, kind: output, shape index: {0}]   ;;  %s11665_s8 = inlined_call_operand.hbm [shape: f32[2,8,512], index: 8, kind: output, shape index: {1}]   ;;  %s11666_s9 = inlined_call_operand.vmem [shape: f32[2,4,1], index: 9, kind: output, shape index: {2}]  }
   0x1   :  { %11667 = sst [smem:[#allocation21_spill]] %s11657_s0 }
   0x2   :  { %15 = vsyncpa [#allocation3], 0 }
   0x3   :  { %17 = vsyncpa [#allocation3 + $0x1], 0 }
   0x4   :  { %18 = vsyncpa [#allocation5], 0 }
   0x5   :  { %20 = vsyncpa [#allocation5 + $0x1], 0  ;;  %s9976_s30 = smov 0   ;;  %s9978_s10 = smov 0  }
   0x6   :  { %s9980_s11 = smov 0   ;;  %s9982_s12 = smov 0  }
   0x7 LB: > { %s9997_s13 = sadd.s32 4294967295, %s9874_s12   ;;  %s9309_s14 = sadd.s32 4294967294, %s9874_s12   ;;  %s9874_s12 = sphi %s9982_s12, %s11700_s12   ;;  %s9870_s11 = sphi %s9980_s11, %s11699_s11   ;;  %s9866_s10 = sphi %s9978_s10, %s11698_s10   ;;  %s9862_s30 = sphi %s9976_s30, %s11697_s30  }
   0x8   : > { %s10001_s15 = sadd.s32 1, %s9874_s12   ;;  %s185_s16 = sadd.s32 1, %s9870_s11 }
   0x9   : > { %s182_s17 = ssub.s32 %s9874_s12, %s10001_s15  ;;  %p195_p0 = scmp.ne.s32.totalorder %s9870_s11, %s9866_s10 }
   0xa   : > { %p183_p1 = scmp.eq.s32.totalorder %s182_s17, 0  ;;  %p196_p2 = scmp.eq.s32.totalorder %s9997_s13, 1 }
   0xb   : > { %p201_p3 = scmp.ne.s32.totalorder %s9866_s10, %s9862_s30  ;;  %p202_p4 = scmp.eq.s32.totalorder %s9309_s14, 1 }
   0xc   : > { %s10012_s18 = scalar_select %p183_p1, %s9870_s11, %s185_s16  }
   0xd   : > { %p10014_p5 = por %p196_p2, %p195_p0  ;;  %p10018_p6 = por %p202_p4, %p201_p3 }
   0xe   : > { %p9312_p7 = scmp.ge.s32.totalorder %s9874_s12, 1  ;;  %p298_p8 = scmp.lt.s32.totalorder %s9874_s12, 3 }
  0x10   : > { %p299_p9 = pnand %p9312_p7, %p298_p8 }
  0x12   : > { %302 = sbr.rel (%p299_p9) target bundleno = 741 (0x2e5), region = 48 }
  0x17   : > { %p343_p10 = scmp.lt.s32.totalorder %s9997_s13, 1  ;;  %vm369_vm0 = vcmask 1043456   ;;  %s11670_s0 = sld [smem:[#allocation21_spill]]  ;;  %v9878_v11 = vmov 0.0   ;;  %v354_v12 = vld [vmem:[%s11658_s1] sm:$0xf]  ;;  %v631_v13 = vlaneseq }
  0x18   : > { %s9876_s26 = smov 127   ;;  %s9877_s27 = smov 126   ;;  %442 = vmatprep.mubr.f32.mxu0 %v9878_v11  ;;  %513 = vmatprep.mubr.f32.mxu1 %v9878_v11  ;;  %vm365_vm1 = vcmask 31744   ;;  %vm9879_vm2 = vmmov 0   ;;  %v542_v26 = vld [vmem:[%s11660_s3] sm:$0xf] }
  0x19   : > { %s10026_s21 = scalar_select %p343_p10, %s9997_s13, 1  ;;  %v10128_v14 = vand.u32 127, %v631_v13  ;;  %v9326_v29 = vld [vmem:[%s11662_s5 + $0x8] sm:$0xff]  ;;  %v622_v35 = vld [vmem:[%s11662_s5] sm:$0xff]  ;;  %v9339_v43 = vld [vmem:[%s11662_s5 + $0x10] sm:$0xff] }
  0x1a   : > { %s9880_s14 = smov 125   ;;  %s9881_s16 = smov 124   ;;  %v9346_v52 = vld [vmem:[%s11662_s5 + $0x18] sm:$0xff]  ;;  %v9353_v59 = vld [vmem:[%s11662_s5 + $0x20] sm:$0xff] }
  0x1b   : > { %s9676_s22 = sshll.u32 %s10026_s21, 4  ;;  %s9882_s17 = smov 123   ;;  %vm633_vm3 = vcmp.lt.s32.totalorder %v10128_v14, 127  ;;  %vm950_vm4 = vcmp.lt.s32.totalorder %v10128_v14, 126  ;;  %vm1126_vm5 = vcmp.lt.s32.totalorder %v10128_v14, 125  ;;  %vm1302_vm6 = vcmp.lt.s32.totalorder %v10128_v14, 124 }
  0x1c   : > { %s9884_s23 = smov 106   ;;  %s9885_s24 = smov 105   ;;  %vm1478_vm7 = vcmp.lt.s32.totalorder %v10128_v14, 123  ;;  %vm1654_vm8 = vcmp.lt.s32.totalorder %v10128_v14, 122  ;;  %vm1830_vm9 = vcmp.lt.s32.totalorder %v10128_v14, 106  ;;  %vm2006_vm10 = vcmp.lt.s32.totalorder %v10128_v14, 105 }
  0x1d   : > { %s10032_s25 = scalar_lea.vmem %s11670_s0, %s9676_s22  ;;  %s9883_s22 = smov 122   ;;  %vm2182_vm11 = vcmp.lt.s32.totalorder %v10128_v14, 104  ;;  %vm2358_vm12 = vcmp.lt.s32.totalorder %v10128_v14, 103  ;;  %vm2534_vm13 = vcmp.lt.s32.totalorder %v10128_v14, 102  ;;  %vm2710_vm14 = vcmp.lt.s32.totalorder %v10128_v14, 101 }
  0x1e   : > { %v10035_v0 = vld [vmem:[%s10032_s25] sm:$0xff]  ;;  %v10038_v1 = vld [vmem:[%s10032_s25 + $0x8] sm:$0xff]  ;;  %s9888_s28 = smov 102   ;;  %s9889_s29 = smov 101   ;;  %vm2886_vm15 = vcmp.lt.s32.totalorder %v10128_v14, 100 }
  0x1f   : > { %v10042_v2 = vcombine.high %v10035_v0, %v10035_v0  ;;  %v10046_v3 = vcombine.high %v10038_v1, %v10038_v1  ;;  %v532_v4 = vsel %vm369_vm0, %v10035_v0, 0.0  ;;  %v535_v6 = vsel %vm369_vm0, %v10038_v1, 0.0 }
  0x21   : > { %625 = vrot.lane.b32.xlu1 %v10042_v2, %s9876_s26  ;;  %v533_v5 = vsel %vm369_vm0, %v10042_v2, 0.0  ;;  %9321 = vmatprep.subr.msk.mxu1 %vm369_vm0, %v10046_v3  ;;  %v537_v8 = vsel %vm369_vm0, %v10046_v3, 0.0 }
  0x22   : > { %v534_v7 = vadd.f32 %v533_v5, %v532_v4  ;;  %9322 = vmatpush1.msk.msra.mxu1 %vm369_vm0, %v10038_v1  ;;  %9318 = vmatprep.subr.msk.mxu0 %vm369_vm0, %v10042_v2 }
  0x23   : > { %9319 = vmatpush1.msk.msra.mxu0 %vm369_vm0, %v10035_v0  ;;  %9323 = vmatmul.mubr.msk.f32.vlgmr.msra.gmra.mxu1 %vm365_vm1, %v354_v12 }
  0x24   : > { %v536_v9 = vadd.f32 %v535_v6, %v534_v7  ;;  %9681 = vmatprep.subr.mxu0 %v9878_v11  ;;  %9320 = vmatmul.mubr.msk.f32.vlgmr.msra.gmra.mxu0 %vm365_vm1, %v354_v12  ;;  %v9360_v6 = vld [vmem:[%s11662_s5 + $0x28] sm:$0xff] }
  0x25   : > { %627 = vrot.lane.b32.xlu1 %v10038_v1, %s9876_s26  ;;  %719 = vmatprep.mubr.f32.mxu1 %v9878_v11 }
  0x26   : > { %v538_v10 = vadd.f32 %v537_v8, %v536_v9  ;;  %9683 = vmatprep.mubr.msk.f32.mxu0 %vm9879_vm2, %v9878_v11  ;;  %vm3062_vm2 = vcmp.lt.s32.totalorder %v10128_v14, 84 }
  0x28   : > { %539 = vadd.xlane.f32.xlu0 %v538_v10 }
  0x29   : > { %629 = vrot.lane.b32.xlu1 %v10046_v3, %s9876_s26 }
  0x2d   : > { %942 = vrot.lane.b32.xlu1 %v10035_v0, %s9877_s27 }
  0x31   : > { %944 = vrot.lane.b32.xlu1 %v10042_v2, %s9877_s27 }
  0x35   : > { %946 = vrot.lane.b32.xlu1 %v10038_v1, %s9877_s27 }
  0x39   : > { %948 = vrot.lane.b32.xlu1 %v10046_v3, %s9877_s27  ;;  %s9887_s27 = smov 103  }
  0x3d   : > { %1120 = vrot.lane.b32.xlu1 %v10042_v2, %s9880_s14 }
  0x3e   : > { %623 = vrot.lane.b32.xlu0 %v10035_v0, %s9876_s26  ;;  %s9886_s26 = smov 104  }
  0x41   : > { %1124 = vrot.lane.b32.xlu1 %v10046_v3, %s9880_s14 }
  0x42   : > { %1118 = vrot.lane.b32.xlu0 %v10035_v0, %s9880_s14 }
  0x45   : > { %1296 = vrot.lane.b32.xlu1 %v10042_v2, %s9881_s16 }
  0x46   : > { %1122 = vrot.lane.b32.xlu0 %v10038_v1, %s9880_s14  ;;  %s9890_s14 = smov 100  }
  0x49   : > { %1300 = vrot.lane.b32.xlu1 %v10046_v3, %s9881_s16 }
  0x4a   : > { %1294 = vrot.lane.b32.xlu0 %v10035_v0, %s9881_s16 }
  0x4d   : > { %1472 = vrot.lane.b32.xlu1 %v10042_v2, %s9882_s17 }
  0x4e   : > { %1298 = vrot.lane.b32.xlu0 %v10038_v1, %s9881_s16  ;;  %s9891_s16 = smov 84  }
  0x51   : > { %1476 = vrot.lane.b32.xlu1 %v10046_v3, %s9882_s17 }
  0x52   : > { %1470 = vrot.lane.b32.xlu0 %v10035_v0, %s9882_s17 }
  0x55   : > { %1648 = vrot.lane.b32.xlu1 %v10042_v2, %s9883_s22 }
  0x56   : > { %1474 = vrot.lane.b32.xlu0 %v10038_v1, %s9882_s17  ;;  %s9892_s17 = smov 83  }
  0x59   : > { %1652 = vrot.lane.b32.xlu1 %v10046_v3, %s9883_s22 }
  0x5a   : > { %1646 = vrot.lane.b32.xlu0 %v10035_v0, %s9883_s22 }
  0x5d   : > { %1824 = vrot.lane.b32.xlu1 %v10042_v2, %s9884_s23 }
  0x5e   : > { %1650 = vrot.lane.b32.xlu0 %v10038_v1, %s9883_s22  ;;  %s9893_s22 = smov 82  }
  0x61   : > { %1828 = vrot.lane.b32.xlu1 %v10046_v3, %s9884_s23 }
  0x62   : > { %1822 = vrot.lane.b32.xlu0 %v10035_v0, %s9884_s23 }
  0x65   : > { %2000 = vrot.lane.b32.xlu1 %v10042_v2, %s9885_s24 }
  0x66   : > { %1826 = vrot.lane.b32.xlu0 %v10038_v1, %s9884_s23  ;;  %s9894_s23 = smov 81  }
  0x69   : > { %2004 = vrot.lane.b32.xlu1 %v10046_v3, %s9885_s24 }
  0x6a   : > { %1998 = vrot.lane.b32.xlu0 %v10035_v0, %s9885_s24 }
  0x6d   : > { %2176 = vrot.lane.b32.xlu1 %v10042_v2, %s9886_s26 }
  0x6e   : > { %2002 = vrot.lane.b32.xlu0 %v10038_v1, %s9885_s24  ;;  %s9899_s24 = smov 61  }
  0x71   : > { %2180 = vrot.lane.b32.xlu1 %v10046_v3, %s9886_s26 }
  0x72   : > { %2174 = vrot.lane.b32.xlu0 %v10035_v0, %s9886_s26 }
  0x75   : > { %2352 = vrot.lane.b32.xlu1 %v10042_v2, %s9887_s27 }
  0x76   : > { %2178 = vrot.lane.b32.xlu0 %v10038_v1, %s9886_s26  ;;  %s9906_s26 = smov 39  }
  0x79   : > { %2356 = vrot.lane.b32.xlu1 %v10046_v3, %s9887_s27 }
  0x7a   : > { %2350 = vrot.lane.b32.xlu0 %v10035_v0, %s9887_s27 }
  0x7d   : > { %2528 = vrot.lane.b32.xlu1 %v10042_v2, %s9888_s28 }
  0x7e   : > { %2354 = vrot.lane.b32.xlu0 %v10038_v1, %s9887_s27  ;;  %s9903_s27 = smov 57  }
  0x81   : > { %2532 = vrot.lane.b32.xlu1 %v10046_v3, %s9888_s28 }
  0x82   : > { %2526 = vrot.lane.b32.xlu0 %v10035_v0, %s9888_s28 }
  0x85   : > { %2704 = vrot.lane.b32.xlu1 %v10042_v2, %s9889_s29 }
  0x86   : > { %2530 = vrot.lane.b32.xlu0 %v10038_v1, %s9888_s28  ;;  %s9900_s28 = smov 60  }
  0x89   : > { %2708 = vrot.lane.b32.xlu1 %v10046_v3, %s9889_s29 }
  0x8a   : > { %2702 = vrot.lane.b32.xlu0 %v10035_v0, %s9889_s29 }
  0x8d   : > { %2880 = vrot.lane.b32.xlu1 %v10042_v2, %s9890_s14 }
  0x8e   : > { %2706 = vrot.lane.b32.xlu0 %v10038_v1, %s9889_s29  ;;  %s9895_s29 = smov 80  }
  0x91   : > { %2884 = vrot.lane.b32.xlu1 %v10046_v3, %s9890_s14 }
  0x92   : > { %2878 = vrot.lane.b32.xlu0 %v10035_v0, %s9890_s14 }
  0x93   : > { %v626_v15 = vpop.permute.xlu1 %625 }
  0x95   : > { %3056 = vrot.lane.b32.xlu1 %v10042_v2, %s9891_s16 }
  0x96   : > { %2882 = vrot.lane.b32.xlu0 %v10038_v1, %s9890_s14  ;;  %s9904_s14 = smov 56  }
  0x97   : > { %v628_v16 = vpop.permute.xlu1 %627 }
  0x98   : > { %v635_v17 = vsel %vm633_vm3, %v626_v15, %v628_v16 }
  0x99   : > { %3060 = vrot.lane.b32.xlu1 %v10046_v3, %s9891_s16  ;;  %9327 = vmatprep.subr.msk.mxu1 %vm369_vm0, %v635_v17 }
  0x9a   : > { %3054 = vrot.lane.b32.xlu0 %v10035_v0, %s9891_s16 }
  0x9b   : > { %v630_v18 = vpop.permute.xlu1 %629 }
  0x9c   : > { %v634_v32 = vsel %vm633_vm3, %v628_v16, %v630_v18 }
  0x9d   : > { %3232 = vrot.lane.b32.xlu1 %v10042_v2, %s9892_s17 }
  0x9e   : > { %3058 = vrot.lane.b32.xlu0 %v10038_v1, %s9891_s16  ;;  %s9901_s16 = smov 59  }
  0x9f   : > { %v943_v19 = vpop.permute.xlu1 %942 }
  0xa1   : > { %3236 = vrot.lane.b32.xlu1 %v10046_v3, %s9892_s17 }
  0xa2   : > { %3230 = vrot.lane.b32.xlu0 %v10035_v0, %s9892_s17 }
  0xa3   : > { %v945_v20 = vpop.permute.xlu1 %944 }
  0xa4   : > { %v953_v39 = vsel %vm950_vm4, %v943_v19, %v945_v20 }
  0xa5   : > { %3408 = vrot.lane.b32.xlu1 %v10042_v2, %s9893_s22 }
  0xa6   : > { %3234 = vrot.lane.b32.xlu0 %v10038_v1, %s9892_s17  ;;  %s9898_s17 = smov 62  }
  0xa7   : > { %v947_v21 = vpop.permute.xlu1 %946 }
  0xa8   : > { %v952_v36 = vsel %vm950_vm4, %v945_v20, %v947_v21 }
  0xa9   : > { %3412 = vrot.lane.b32.xlu1 %v10046_v3, %s9893_s22 }
  0xaa   : > { %3406 = vrot.lane.b32.xlu0 %v10035_v0, %s9893_s22 }
  0xab   : > { %v949_v22 = vpop.permute.xlu1 %948 }
  0xac   : > { %v954_v38 = vsel %vm950_vm4, %v949_v22, %v943_v19  ;;  %v951_v41 = vsel %vm950_vm4, %v947_v21, %v949_v22  ;;  %vm3414_vm4 = vcmp.lt.s32.totalorder %v10128_v14, 82 }
  0xad   : > { %3584 = vrot.lane.b32.xlu1 %v10042_v2, %s9894_s23 }
  0xae   : > { %3410 = vrot.lane.b32.xlu0 %v10038_v1, %s9893_s22  ;;  %s9905_s22 = smov 40  }
  0xaf   : > { %v1121_v23 = vpop.permute.xlu1 %1120 }
  0xb1   : > { %v540_v24 = vpop.xlane.xlu0 %539  ;;  %3588 = vrot.lane.b32.xlu1 %v10046_v3, %s9894_s23 }
  0xb2   : > { %v541_v25 = vmul.f32 0.00390625, %v540_v24  ;;  %3582 = vrot.lane.b32.xlu0 %v10035_v0, %s9894_s23  ;;  %v9374_v24 = vld [vmem:[%s11662_s5 + $0x38] sm:$0xff] }
  0xb3   : > { %v1125_v27 = vpop.permute.xlu1 %1124 }
  0xb4   : > { %9682 = vmatpush3.msk.msra.mxu0 %vm369_vm0, %v541_v25 }
  0xb5   : > { %v624_v28 = vpop.permute.xlu0 %623  ;;  %9684 = vmatmul.mubr.msk.f32.vlgmr.msra.gmra.mxu0 %vm365_vm1, %v542_v26  ;;  %3760 = vrot.lane.b32.xlu1 %v10042_v2, %s9895_s29 }
  0xb6   : > { %v636_v30 = vsel %vm633_vm3, %v624_v28, %v626_v15  ;;  %3586 = vrot.lane.b32.xlu0 %v10038_v1, %s9894_s23  ;;  %v637_v31 = vsel %vm633_vm3, %v630_v18, %v624_v28  ;;  %790 = vmatprep.mubr.f32.mxu0 %v9878_v11  ;;  %s9896_s23 = smov 79   ;;  %v9367_v15 = vld [vmem:[%s11662_s5 + $0x30] sm:$0xff]  ;;  %vm3238_vm3 = vcmp.lt.s32.totalorder %v10128_v14, 83 }
  0xb7   : > { %9328 = vmatpush1.msk.msra.mxu1 %vm369_vm0, %v636_v30  ;;  %9330 = vmatprep.subr.msk.mxu0 %vm369_vm0, %v637_v31  ;;  %v10171_v33 = vpop.permute.xlu1 %1296 }
  0xb8   : > { %9329 = vmatmul.mubr.msk.f32.vlgmr.msra.gmra.mxu1 %vm365_vm1, %v9326_v29  ;;  %9331 = vmatpush1.msk.msra.mxu0 %vm369_vm0, %v634_v32 }
  0xb9   : > { %9333 = vmatprep.subr.msk.mxu1 %vm369_vm0, %v10042_v2  ;;  %v1119_v34 = vpop.permute.xlu0 %1118  ;;  %9332 = vmatmul.mubr.msk.f32.vlgmr.msra.gmra.mxu0 %vm365_vm1, %v9326_v29 }
  0xba   : > { %9334 = vmatpush1.msk.msra.mxu1 %vm369_vm0, %v10035_v0  ;;  %9336 = vmatprep.subr.msk.mxu0 %vm369_vm0, %v10046_v3  ;;  %v1130_v45 = vsel %vm1126_vm5, %v1125_v27, %v1119_v34  ;;  %v1129_v47 = vsel %vm1126_vm5, %v1119_v34, %v1121_v23 }
  0xbb   : > { %3758 = vrot.lane.b32.xlu0 %v10035_v0, %s9895_s29  ;;  %9337 = vmatpush1.msk.msra.mxu0 %vm369_vm0, %v10038_v1  ;;  %v1301_v37 = vpop.permute.xlu1 %1300 }
  0xbc   : > { %9340 = vmatprep.subr.msk.mxu1 %vm369_vm0, %v952_v36  ;;  %864 = vmatprep.mubr.f32.mxu1 %v9878_v11 }
  0xbd   : > { %9343 = vmatprep.subr.msk.mxu0 %vm369_vm0, %v954_v38  ;;  %9335 = vmatmul.mubr.msk.f32.vlgmr.msra.gmra.mxu1 %vm365_vm1, %v622_v35  ;;  %v1123_v40 = vpop.permute.xlu0 %1122 }
  0xbe   : > { %935 = vmatprep.mubr.f32.mxu0 %v9878_v11  ;;  %9341 = vmatpush1.msk.msra.mxu1 %vm369_vm0, %v953_v39  ;;  %v1128_v42 = vsel %vm1126_vm5, %v1121_v23, %v1123_v40  ;;  %v1127_v50 = vsel %vm1126_vm5, %v1123_v40, %v1125_v27  ;;  %vm3590_vm5 = vcmp.lt.s32.totalorder %v10128_v14, 81 }
  0xbf   : > { %9338 = vmatmul.mubr.msk.f32.vlgmr.msra.gmra.mxu0 %vm365_vm1, %v622_v35  ;;  %3762 = vrot.lane.b32.xlu0 %v10038_v1, %s9895_s29  ;;  %v1473_v44 = vpop.permute.xlu1 %1472 }
  0xc0   : > { %9344 = vmatpush1.msk.msra.mxu0 %vm369_vm0, %v951_v41  ;;  %3764 = vrot.lane.b32.xlu1 %v10046_v3, %s9895_s29  ;;  %s9897_s29 = smov 78  }
  0xc1   : > { %9350 = vmatprep.subr.msk.mxu0 %vm369_vm0, %v1130_v45  ;;  %1036 = vmatprep.mubr.f32.mxu1 %v9878_v11  ;;  %v1295_v46 = vpop.permute.xlu0 %1294 }
  0xc2   : > { %9347 = vmatprep.subr.msk.mxu1 %vm369_vm0, %v1128_v42  ;;  %9342 = vmatmul.mubr.msk.f32.vlgmr.msra.gmra.mxu1 %vm365_vm1, %v9339_v43  ;;  %v10229_v48 = vsel %vm1302_vm6, %v1301_v37, %v1295_v46  ;;  %v10264_v57 = vsel %vm1302_vm6, %v1295_v46, %v10171_v33  ;;  %v9388_v42 = vld [vmem:[%s11662_s5 + $0x48] sm:$0xff] }
  0xc3   : > { %1107 = vmatprep.mubr.f32.mxu0 %v9878_v11  ;;  %9348 = vmatpush1.msk.msra.mxu1 %vm369_vm0, %v1129_v47  ;;  %v1477_v49 = vpop.permute.xlu1 %1476 }
  0xc4   : > { %9345 = vmatmul.mubr.msk.f32.vlgmr.msra.gmra.mxu0 %vm365_vm1, %v9339_v43  ;;  %3934 = vrot.lane.b32.xlu0 %v10035_v0, %s9896_s23 }
  0xc5   : > { %9351 = vmatpush1.msk.msra.mxu0 %vm369_vm0, %v1127_v50  ;;  %3936 = vrot.lane.b32.xlu1 %v10042_v2, %s9896_s23  ;;  %v1299_v51 = vpop.permute.xlu0 %1298 }
  0xc6   : > { %9357 = vmatprep.subr.msk.mxu0 %vm369_vm0, %v10229_v48  ;;  %v10244_v53 = vsel %vm1302_vm6, %v1299_v51, %v1301_v37  ;;  %1283 = vmatprep.mubr.f32.mxu0 %v9878_v11  ;;  %v10250_v54 = vsel %vm1302_vm6, %v10171_v33, %v1299_v51  ;;  %v9381_v33 = vld [vmem:[%s11662_s5 + $0x40] sm:$0xff]  ;;  %vm3766_vm6 = vcmp.lt.s32.totalorder %v10128_v14, 80 }
  0xc7   : > { %1212 = vmatprep.mubr.f32.mxu1 %v9878_v11  ;;  %9354 = vmatprep.subr.msk.mxu1 %vm369_vm0, %v10250_v54  ;;  %v1649_v55 = vpop.permute.xlu1 %1648 }
  0xc8   : > { %3938 = vrot.lane.b32.xlu0 %v10038_v1, %s9896_s23  ;;  %9352 = vmatmul.mubr.msk.f32.vlgmr.msra.gmra.mxu0 %vm365_vm1, %v9346_v52 }
  0xc9   : > { %3940 = vrot.lane.b32.xlu1 %v10046_v3, %s9896_s23  ;;  %9358 = vmatpush1.msk.msra.mxu0 %vm369_vm0, %v10244_v53  ;;  %v1471_v56 = vpop.permute.xlu0 %1470  ;;  %s9902_s23 = smov 58  }
  0xca   : > { %9349 = vmatmul.mubr.msk.f32.vlgmr.msra.gmra.mxu1 %vm365_vm1, %v9346_v52  ;;  %v10269_v58 = vsel %vm1478_vm7, %v1477_v49, %v1471_v56  ;;  %1459 = vmatprep.mubr.f32.mxu0 %v9878_v11  ;;  %v10295_v4 = vsel %vm1478_vm7, %v1471_v56, %v1473_v44  ;;  %v9395_v52 = vld [vmem:[%s11662_s5 + $0x50] sm:$0xff] }
  0xcb   : > { %9355 = vmatpush1.msk.msra.mxu1 %vm369_vm0, %v10264_v57  ;;  %9364 = vmatprep.subr.msk.mxu0 %vm369_vm0, %v10269_v58  ;;  %v1653_v60 = vpop.permute.xlu1 %1652 }
  0xcc   : > { %4110 = vrot.lane.b32.xlu0 %v10035_v0, %s9897_s29  ;;  %1388 = vmatprep.mubr.f32.mxu1 %v9878_v11 }
  0xcd   : > { %4112 = vrot.lane.b32.xlu1 %v10042_v2, %s9897_s29  ;;  %v1475_v61 = vpop.permute.xlu0 %1474  ;;  %9359 = vmatmul.mubr.msk.f32.vlgmr.msra.gmra.mxu0 %vm365_vm1, %v9353_v59 }
  0xce   : > { %v10285_v62 = vsel %vm1478_vm7, %v1475_v61, %v1477_v49  ;;  %v10289_v63 = vsel %vm1478_vm7, %v1473_v44, %v1475_v61  ;;  %9356 = vmatmul.mubr.msk.f32.vlgmr.msra.gmra.mxu1 %vm365_vm1, %v9353_v59  ;;  %1635 = vmatprep.mubr.f32.mxu0 %v9878_v11  ;;  %vm3942_vm7 = vcmp.lt.s32.totalorder %v10128_v14, 79 }
  0xcf   : > { %9361 = vmatprep.subr.msk.mxu1 %vm369_vm0, %v10289_v63  ;;  %9365 = vmatpush1.msk.msra.mxu0 %vm369_vm0, %v10285_v62  ;;  %v1825_v5 = vpop.permute.xlu1 %1824 }
  0xd0   : > { %4114 = vrot.lane.b32.xlu0 %v10038_v1, %s9897_s29  ;;  %9362 = vmatpush1.msk.msra.mxu1 %vm369_vm0, %v10295_v4 }
  0xd1   : > { %4116 = vrot.lane.b32.xlu1 %v10046_v3, %s9897_s29  ;;  %v1647_v7 = vpop.permute.xlu0 %1646  ;;  %1564 = vmatprep.mubr.f32.mxu1 %v9878_v11  ;;  %s9907_s29 = smov 38  }
  0xd2   : > { %v10312_v8 = vsel %vm1654_vm8, %v1653_v60, %v1647_v7  ;;  %9366 = vmatmul.mubr.msk.f32.vlgmr.msra.gmra.mxu0 %vm365_vm1, %v9360_v6  ;;  %9363 = vmatmul.mubr.msk.f32.vlgmr.msra.gmra.mxu1 %vm365_vm1, %v9360_v6  ;;  %v10335_v16 = vsel %vm1654_vm8, %v1647_v7, %v1649_v55 }
  0xd3   : > { %9371 = vmatprep.subr.msk.mxu0 %vm369_vm0, %v10312_v8  ;;  %v1829_v9 = vpop.permute.xlu1 %1828  ;;  %1811 = vmatprep.mubr.f32.mxu0 %v9878_v11 }
  0xd4   : > { %4286 = vrot.lane.b32.xlu0 %v10035_v0, %s9898_s17  ;;  %1740 = vmatprep.mubr.f32.mxu1 %v9878_v11 }
  0xd5   : > { %4288 = vrot.lane.b32.xlu1 %v10042_v2, %s9898_s17  ;;  %v1651_v10 = vpop.permute.xlu0 %1650 }
  0xd6   : > { %v10324_v12 = vsel %vm1654_vm8, %v1651_v10, %v1653_v60  ;;  %v10328_v13 = vsel %vm1654_vm8, %v1649_v55, %v1651_v10  ;;  %vm4118_vm8 = vcmp.lt.s32.totalorder %v10128_v14, 78 }
  0xd7   : > { %9368 = vmatprep.subr.msk.mxu1 %vm369_vm0, %v10328_v13  ;;  %9372 = vmatpush1.msk.msra.mxu0 %vm369_vm0, %v10324_v12  ;;  %v2001_v17 = vpop.permute.xlu1 %2000 }
  0xd8   : > { %4290 = vrot.lane.b32.xlu0 %v10038_v1, %s9898_s17  ;;  %9369 = vmatpush1.msk.msra.mxu1 %vm369_vm0, %v10335_v16 }
  0xd9   : > { %4292 = vrot.lane.b32.xlu1 %v10046_v3, %s9898_s17  ;;  %v1823_v18 = vpop.permute.xlu0 %1822  ;;  %9373 = vmatmul.mubr.msk.f32.vlgmr.msra.gmra.mxu0 %vm365_vm1, %v9367_v15  ;;  %s9909_s17 = smov 37  }
  0xda   : > { %v1834_v19 = vsel %vm1830_vm9, %v1829_v9, %v1823_v18  ;;  %9370 = vmatmul.mubr.msk.f32.vlgmr.msra.gmra.mxu1 %vm365_vm1, %v9367_v15  ;;  %1987 = vmatprep.mubr.f32.mxu0 %v9878_v11  ;;  %v1833_v25 = vsel %vm1830_vm9, %v1823_v18, %v1825_v5 }
  0xdb   : > { %9378 = vmatprep.subr.msk.mxu0 %vm369_vm0, %v1834_v19  ;;  %v2005_v20 = vpop.permute.xlu1 %2004  ;;  %1916 = vmatprep.mubr.f32.mxu1 %v9878_v11 }
  0xdc   : > { %4462 = vrot.lane.b32.xlu0 %v10035_v0, %s9899_s24 }
  0xdd   : > { %4464 = vrot.lane.b32.xlu1 %v10042_v2, %s9899_s24  ;;  %v1827_v21 = vpop.permute.xlu0 %1826 }
  0xde   : > { %v1831_v22 = vsel %vm1830_vm9, %v1827_v21, %v1829_v9  ;;  %v1832_v23 = vsel %vm1830_vm9, %v1825_v5, %v1827_v21  ;;  %v9402_v9 = vld [vmem:[%s11662_s5 + $0x58] sm:$0xff]  ;;  %vm4294_vm9 = vcmp.lt.s32.totalorder %v10128_v14, 62 }
  0xdf   : > { %9375 = vmatprep.subr.msk.mxu1 %vm369_vm0, %v1832_v23  ;;  %9379 = vmatpush1.msk.msra.mxu0 %vm369_vm0, %v1831_v22  ;;  %v2177_v26 = vpop.permute.xlu1 %2176  ;;  %v9409_v23 = vld [vmem:[%s11662_s5 + $0x60] sm:$0xff] }
  0xe0   : > { %4466 = vrot.lane.b32.xlu0 %v10038_v1, %s9899_s24  ;;  %9376 = vmatpush1.msk.msra.mxu1 %vm369_vm0, %v1833_v25 }
  0xe1   : > { %4468 = vrot.lane.b32.xlu1 %v10046_v3, %s9899_s24  ;;  %v1999_v27 = vpop.permute.xlu0 %1998  ;;  %9380 = vmatmul.mubr.msk.f32.vlgmr.msra.gmra.mxu0 %vm365_vm1, %v9374_v24  ;;  %s9910_s24 = smov 36  }
  0xe2   : > { %v2010_v28 = vsel %vm2006_vm10, %v2005_v20, %v1999_v27  ;;  %9377 = vmatmul.mubr.msk.f32.vlgmr.msra.gmra.mxu1 %vm365_vm1, %v9374_v24  ;;  %2163 = vmatprep.mubr.f32.mxu0 %v9878_v11  ;;  %v2009_v34 = vsel %vm2006_vm10, %v1999_v27, %v2001_v17 }
  0xe3   : > { %9385 = vmatprep.subr.msk.mxu0 %vm369_vm0, %v2010_v28  ;;  %v2181_v29 = vpop.permute.xlu1 %2180  ;;  %2092 = vmatprep.mubr.f32.mxu1 %v9878_v11 }
  0xe4   : > { %4638 = vrot.lane.b32.xlu0 %v10035_v0, %s9900_s28 }
  0xe5   : > { %4640 = vrot.lane.b32.xlu1 %v10042_v2, %s9900_s28  ;;  %v2003_v30 = vpop.permute.xlu0 %2002 }
  0xe6   : > { %v2007_v31 = vsel %vm2006_vm10, %v2003_v30, %v2005_v20  ;;  %v2008_v32 = vsel %vm2006_vm10, %v2001_v17, %v2003_v30  ;;  %vm4470_vm10 = vcmp.lt.s32.totalorder %v10128_v14, 61 }
  0xe7   : > { %9382 = vmatprep.subr.msk.mxu1 %vm369_vm0, %v2008_v32  ;;  %9386 = vmatpush1.msk.msra.mxu0 %vm369_vm0, %v2007_v31  ;;  %v2353_v35 = vpop.permute.xlu1 %2352  ;;  %v9416_v32 = vld [vmem:[%s11662_s5 + $0x68] sm:$0xff] }
  0xe8   : > { %4642 = vrot.lane.b32.xlu0 %v10038_v1, %s9900_s28  ;;  %9383 = vmatpush1.msk.msra.mxu1 %vm369_vm0, %v2009_v34 }
  0xe9   : > { %4644 = vrot.lane.b32.xlu1 %v10046_v3, %s9900_s28  ;;  %v2175_v36 = vpop.permute.xlu0 %2174  ;;  %9387 = vmatmul.mubr.msk.f32.vlgmr.msra.gmra.mxu0 %vm365_vm1, %v9381_v33  ;;  %s9911_s28 = smov 35  }
  0xea   : > { %v2186_v37 = vsel %vm2182_vm11, %v2181_v29, %v2175_v36  ;;  %9384 = vmatmul.mubr.msk.f32.vlgmr.msra.gmra.mxu1 %vm365_vm1, %v9381_v33  ;;  %2339 = vmatprep.mubr.f32.mxu0 %v9878_v11  ;;  %v2185_v43 = vsel %vm2182_vm11, %v2175_v36, %v2177_v26 }
  0xeb   : > { %9392 = vmatprep.subr.msk.mxu0 %vm369_vm0, %v2186_v37  ;;  %v2357_v38 = vpop.permute.xlu1 %2356  ;;  %2268 = vmatprep.mubr.f32.mxu1 %v9878_v11 }
  0xec   : > { %4814 = vrot.lane.b32.xlu0 %v10035_v0, %s9901_s16 }
  0xed   : > { %4816 = vrot.lane.b32.xlu1 %v10042_v2, %s9901_s16  ;;  %v2179_v39 = vpop.permute.xlu0 %2178 }
  0xee   : > { %v2183_v40 = vsel %vm2182_vm11, %v2179_v39, %v2181_v29  ;;  %v2184_v41 = vsel %vm2182_vm11, %v2177_v26, %v2179_v39  ;;  %vm4646_vm11 = vcmp.lt.s32.totalorder %v10128_v14, 60 }
  0xef   : > { %9389 = vmatprep.subr.msk.mxu1 %vm369_vm0, %v2184_v41  ;;  %9393 = vmatpush1.msk.msra.mxu0 %vm369_vm0, %v2183_v40  ;;  %v2529_v44 = vpop.permute.xlu1 %2528  ;;  %v9423_v41 = vld [vmem:[%s11662_s5 + $0x70] sm:$0xff] }
  0xf0   : > { %4818 = vrot.lane.b32.xlu0 %v10038_v1, %s9901_s16  ;;  %9390 = vmatpush1.msk.msra.mxu1 %vm369_vm0, %v2185_v43 }
  0xf1   : > { %4820 = vrot.lane.b32.xlu1 %v10046_v3, %s9901_s16  ;;  %v2351_v45 = vpop.permute.xlu0 %2350  ;;  %9394 = vmatmul.mubr.msk.f32.vlgmr.msra.gmra.mxu0 %vm365_vm1, %v9388_v42  ;;  %s9916_s16 = smov 15  }
  0xf2   : > { %v2362_v46 = vsel %vm2358_vm12, %v2357_v38, %v2351_v45  ;;  %9391 = vmatmul.mubr.msk.f32.vlgmr.msra.gmra.mxu1 %vm365_vm1, %v9388_v42  ;;  %2515 = vmatprep.mubr.f32.mxu0 %v9878_v11  ;;  %v2361_v55 = vsel %vm2358_vm12, %v2351_v45, %v2353_v35 }
  0xf3   : > { %9399 = vmatprep.subr.msk.mxu0 %vm369_vm0, %v2362_v46  ;;  %v2533_v47 = vpop.permute.xlu1 %2532  ;;  %2444 = vmatprep.mubr.f32.mxu1 %v9878_v11 }
  0xf4   : > { %4990 = vrot.lane.b32.xlu0 %v10035_v0, %s9902_s23 }
  0xf5   : > { %4992 = vrot.lane.b32.xlu1 %v10042_v2, %s9902_s23  ;;  %v2355_v49 = vpop.permute.xlu0 %2354 }
  0xf6   : > { %v2359_v50 = vsel %vm2358_vm12, %v2355_v49, %v2357_v38  ;;  %v2360_v51 = vsel %vm2358_vm12, %v2353_v35, %v2355_v49  ;;  %vm4822_vm12 = vcmp.lt.s32.totalorder %v10128_v14, 59 }
  0xf7   : > { %9396 = vmatprep.subr.msk.mxu1 %vm369_vm0, %v2360_v51  ;;  %9400 = vmatpush1.msk.msra.mxu0 %vm369_vm0, %v2359_v50  ;;  %v2705_v56 = vpop.permute.xlu1 %2704 }
  0xf8   : > { %4994 = vrot.lane.b32.xlu0 %v10038_v1, %s9902_s23  ;;  %9397 = vmatpush1.msk.msra.mxu1 %vm369_vm0, %v2361_v55 }
  0xf9   : > { %4996 = vrot.lane.b32.xlu1 %v10046_v3, %s9902_s23  ;;  %v2527_v59 = vpop.permute.xlu0 %2526  ;;  %9401 = vmatmul.mubr.msk.f32.vlgmr.msra.gmra.mxu0 %vm365_vm1, %v9395_v52  ;;  %s9917_s23 = smov 14  }
  0xfa   : > { %v2538_v60 = vsel %vm2534_vm13, %v2533_v47, %v2527_v59  ;;  %9398 = vmatmul.mubr.msk.f32.vlgmr.msra.gmra.mxu1 %vm365_vm1, %v9395_v52  ;;  %2691 = vmatprep.mubr.f32.mxu0 %v9878_v11  ;;  %v2537_v10 = vsel %vm2534_vm13, %v2527_v59, %v2529_v44  ;;  %v9430_v52 = vld [vmem:[%s11662_s5 + $0x78] sm:$0xff] }
  0xfb   : > { %9406 = vmatprep.subr.msk.mxu0 %vm369_vm0, %v2538_v60  ;;  %v2709_v61 = vpop.permute.xlu1 %2708  ;;  %2620 = vmatprep.mubr.f32.mxu1 %v9878_v11 }
  0xfc   : > { %5166 = vrot.lane.b32.xlu0 %v10035_v0, %s9903_s27 }
  0xfd   : > { %5168 = vrot.lane.b32.xlu1 %v10042_v2, %s9903_s27  ;;  %v2531_v5 = vpop.permute.xlu0 %2530 }
  0xfe   : > { %v2535_v6 = vsel %vm2534_vm13, %v2531_v5, %v2533_v47  ;;  %v2536_v7 = vsel %vm2534_vm13, %v2529_v44, %v2531_v5  ;;  %v9908_v47 = vmov 0   ;;  %vm4998_vm13 = vcmp.lt.s32.totalorder %v10128_v14, 58 }
  0xff   : > { %9403 = vmatprep.subr.msk.mxu1 %vm369_vm0, %v2536_v7  ;;  %9407 = vmatpush1.msk.msra.mxu0 %vm369_vm0, %v2535_v6  ;;  %v2881_v15 = vpop.permute.xlu1 %2880 }
 0x100   : > { %5170 = vrot.lane.b32.xlu0 %v10038_v1, %s9903_s27  ;;  %9404 = vmatpush1.msk.msra.mxu1 %vm369_vm0, %v2537_v10 }
 0x101   : > { %5172 = vrot.lane.b32.xlu1 %v10046_v3, %s9903_s27  ;;  %v2703_v17 = vpop.permute.xlu0 %2702  ;;  %9408 = vmatmul.mubr.msk.f32.vlgmr.msra.gmra.mxu0 %vm365_vm1, %v9402_v9  ;;  %s9918_s27 = smov 13  }
 0x102   : > { %v2714_v18 = vsel %vm2710_vm14, %v2709_v61, %v2703_v17  ;;  %9405 = vmatmul.mubr.msk.f32.vlgmr.msra.gmra.mxu1 %vm365_vm1, %v9402_v9  ;;  %2867 = vmatprep.mubr.f32.mxu0 %v9878_v11  ;;  %v2713_v24 = vsel %vm2710_vm14, %v2703_v17, %v2705_v56  ;;  %v9437_v9 = vld [vmem:[%s11662_s5 + $0x80] sm:$0xff] }
 0x103   : > { %9413 = vmatprep.subr.msk.mxu0 %vm369_vm0, %v2714_v18  ;;  %v2885_v19 = vpop.permute.xlu1 %2884  ;;  %2796 = vmatprep.mubr.f32.mxu1 %v9878_v11 }
 0x104   : > { %5342 = vrot.lane.b32.xlu0 %v10035_v0, %s9904_s14  ;;  %9779 = vset.pattern.permute.xlu1 %v9908_v47 }
 0x105   : > { %5344 = vrot.lane.b32.xlu1 %v10042_v2, %s9904_s14  ;;  %v2707_v20 = vpop.permute.xlu0 %2706  ;;  %9778 = vset.pattern.permute.xlu0 %v9908_v47 }
 0x106   : > { %v2711_v21 = vsel %vm2710_vm14, %v2707_v20, %v2709_v61  ;;  %v2712_v22 = vsel %vm2710_vm14, %v2705_v56, %v2707_v20  ;;  %vm5174_vm14 = vcmp.lt.s32.totalorder %v10128_v14, 57 }
 0x107   : > { %9410 = vmatprep.subr.msk.mxu1 %vm369_vm0, %v2712_v22  ;;  %9414 = vmatpush1.msk.msra.mxu0 %vm369_vm0, %v2711_v21  ;;  %v3057_v25 = vpop.permute.xlu1 %3056  ;;  %v9444_v22 = vld [vmem:[%s11662_s5 + $0x88] sm:$0xff] }
 0x108   : > { %5346 = vrot.lane.b32.xlu0 %v10038_v1, %s9904_s14  ;;  %9411 = vmatpush1.msk.msra.mxu1 %vm369_vm0, %v2713_v24 }
 0x109   : > { %5348 = vrot.lane.b32.xlu1 %v10046_v3, %s9904_s14  ;;  %v2879_v26 = vpop.permute.xlu0 %2878  ;;  %9415 = vmatmul.mubr.msk.f32.vlgmr.msra.gmra.mxu0 %vm365_vm1, %v9409_v23  ;;  %s9317_s14 = sshll.u32 %s10026_s21, 2  ;;  %s9677_s21 = sshll.u32 %s9997_s13, 8 }
 0x10a   : > { %v2890_v27 = vsel %vm2886_vm15, %v2885_v19, %v2879_v26  ;;  %9412 = vmatmul.mubr.msk.f32.vlgmr.msra.gmra.mxu1 %vm365_vm1, %v9409_v23  ;;  %3043 = vmatprep.mubr.f32.mxu0 %v9878_v11  ;;  %v2889_v33 = vsel %vm2886_vm15, %v2879_v26, %v2881_v15 }
 0x10b   : > { %9420 = vmatprep.subr.msk.mxu0 %vm369_vm0, %v2890_v27  ;;  %v3061_v28 = vpop.permute.xlu1 %3060  ;;  %2972 = vmatprep.mubr.f32.mxu1 %v9878_v11 }
 0x10c   : > { %5518 = vrot.lane.b32.xlu0 %v10035_v0, %s9905_s22 }
 0x10d   : > { %5520 = vrot.lane.b32.xlu1 %v10042_v2, %s9905_s22  ;;  %v2883_v29 = vpop.permute.xlu0 %2882 }
 0x10e   : > { %v2887_v30 = vsel %vm2886_vm15, %v2883_v29, %v2885_v19  ;;  %v2888_v31 = vsel %vm2886_vm15, %v2881_v15, %v2883_v29  ;;  %v9451_v29 = vld [vmem:[%s11662_s5 + $0x90] sm:$0xff]  ;;  %vm620_vm15 = vcmask 3072  }
 0x10f   : > { %9417 = vmatprep.subr.msk.mxu1 %vm369_vm0, %v2888_v31  ;;  %9421 = vmatpush1.msk.msra.mxu0 %vm369_vm0, %v2887_v30  ;;  %v3233_v34 = vpop.permute.xlu1 %3232 }
 0x110   : > { %5522 = vrot.lane.b32.xlu0 %v10038_v1, %s9905_s22  ;;  %9418 = vmatpush1.msk.msra.mxu1 %vm369_vm0, %v2889_v33 }
 0x111   : > { %5524 = vrot.lane.b32.xlu1 %v10046_v3, %s9905_s22  ;;  %v3055_v35 = vpop.permute.xlu0 %3054  ;;  %9422 = vmatmul.mubr.msk.f32.vlgmr.msra.gmra.mxu0 %vm365_vm1, %v9416_v32  ;;  %s9913_s22 = smov 18  }
 0x112   : > { %v3066_v36 = vsel %vm3062_vm2, %v3061_v28, %v3055_v35  ;;  %9419 = vmatmul.mubr.msk.f32.vlgmr.msra.gmra.mxu1 %vm365_vm1, %v9416_v32  ;;  %3219 = vmatprep.mubr.f32.mxu0 %v9878_v11  ;;  %v3065_v42 = vsel %vm3062_vm2, %v3055_v35, %v3057_v25  ;;  %v10634_v32 = vld [vmem:[%s10032_s25 + $0x8] sm:$0xff] }
 0x113   : > { %9427 = vmatprep.subr.msk.mxu0 %vm369_vm0, %v3066_v36  ;;  %v3237_v37 = vpop.permute.xlu1 %3236  ;;  %3148 = vmatprep.mubr.f32.mxu1 %v9878_v11 }
 0x114   : > { %5694 = vrot.lane.b32.xlu0 %v10035_v0, %s9906_s26 }
 0x115   : > { %5696 = vrot.lane.b32.xlu1 %v10042_v2, %s9906_s26  ;;  %v3059_v38 = vpop.permute.xlu0 %3058 }
 0x116   : > { %v3063_v39 = vsel %vm3062_vm2, %v3059_v38, %v3061_v28  ;;  %v3064_v40 = vsel %vm3062_vm2, %v3057_v25, %v3059_v38  ;;  %vm5350_vm2 = vcmp.lt.s32.totalorder %v10128_v14, 56 }
 0x117   : > { %9424 = vmatprep.subr.msk.mxu1 %vm369_vm0, %v3064_v40  ;;  %9428 = vmatpush1.msk.msra.mxu0 %vm369_vm0, %v3063_v39  ;;  %v3409_v43 = vpop.permute.xlu1 %3408  ;;  %v9458_v39 = vld [vmem:[%s11662_s5 + $0x98] sm:$0xff] }
 0x118   : > { %5698 = vrot.lane.b32.xlu0 %v10038_v1, %s9906_s26  ;;  %9425 = vmatpush1.msk.msra.mxu1 %vm369_vm0, %v3065_v42 }
 0x119   : > { %5700 = vrot.lane.b32.xlu1 %v10046_v3, %s9906_s26  ;;  %v3231_v44 = vpop.permute.xlu0 %3230  ;;  %9429 = vmatmul.mubr.msk.f32.vlgmr.msra.gmra.mxu0 %vm365_vm1, %v9423_v41  ;;  %s9914_s26 = smov 17  }
 0x11a   : > { %v3242_v45 = vsel %vm3238_vm3, %v3237_v37, %v3231_v44  ;;  %9426 = vmatmul.mubr.msk.f32.vlgmr.msra.gmra.mxu1 %vm365_vm1, %v9423_v41  ;;  %3395 = vmatprep.mubr.f32.mxu0 %v9878_v11  ;;  %v3241_v55 = vsel %vm3238_vm3, %v3231_v44, %v3233_v34 }
 0x11b   : > { %9434 = vmatprep.subr.msk.mxu0 %vm369_vm0, %v3242_v45  ;;  %v3413_v46 = vpop.permute.xlu1 %3412  ;;  %3324 = vmatprep.mubr.f32.mxu1 %v9878_v11 }
 0x11c   : > { %5870 = vrot.lane.b32.xlu0 %v10035_v0, %s9907_s29 }
 0x11d   : > { %5872 = vrot.lane.b32.xlu1 %v10042_v2, %s9907_s29  ;;  %v3235_v49 = vpop.permute.xlu0 %3234 }
 0x11e   : > { %v3239_v50 = vsel %vm3238_vm3, %v3235_v49, %v3237_v37  ;;  %v3240_v51 = vsel %vm3238_vm3, %v3233_v34, %v3235_v49  ;;  %v9465_v49 = vld [vmem:[%s11662_s5 + $0xa0] sm:$0xff]  ;;  %vm5526_vm3 = vcmp.lt.s32.totalorder %v10128_v14, 40 }
 0x11f   : > { %9431 = vmatprep.subr.msk.mxu1 %vm369_vm0, %v3240_v51  ;;  %9435 = vmatpush1.msk.msra.mxu0 %vm369_vm0, %v3239_v50  ;;  %v3585_v56 = vpop.permute.xlu1 %3584 }
 0x120   : > { %5874 = vrot.lane.b32.xlu0 %v10038_v1, %s9907_s29  ;;  %9432 = vmatpush1.msk.msra.mxu1 %vm369_vm0, %v3241_v55 }
 0x121   : > { %5876 = vrot.lane.b32.xlu1 %v10046_v3, %s9907_s29  ;;  %v3407_v59 = vpop.permute.xlu0 %3406  ;;  %9436 = vmatmul.mubr.msk.f32.vlgmr.msra.gmra.mxu0 %vm365_vm1, %v9430_v52  ;;  %s9915_s29 = smov 16  }
 0x122   : > { %v3418_v60 = vsel %vm3414_vm4, %v3413_v46, %v3407_v59  ;;  %9433 = vmatmul.mubr.msk.f32.vlgmr.msra.gmra.mxu1 %vm365_vm1, %v9430_v52  ;;  %3571 = vmatprep.mubr.f32.mxu0 %v9878_v11  ;;  %v3417_v10 = vsel %vm3414_vm4, %v3407_v59, %v3409_v43 }
 0x123   : > { %9441 = vmatprep.subr.msk.mxu0 %vm369_vm0, %v3418_v60  ;;  %3500 = vmatprep.mubr.f32.mxu1 %v9878_v11  ;;  %v3589_v7 = vpop.permute.xlu1 %3588 }
 0x124   : > { %6046 = vrot.lane.b32.xlu0 %v10035_v0, %s9909_s17 }
 0x125   : > { %6048 = vrot.lane.b32.xlu1 %v10042_v2, %s9909_s17  ;;  %v3411_v61 = vpop.permute.xlu0 %3410 }
 0x126   : > { %v3415_v5 = vsel %vm3414_vm4, %v3411_v61, %v3413_v46  ;;  %v3416_v6 = vsel %vm3414_vm4, %v3409_v43, %v3411_v61  ;;  %vm5702_vm4 = vcmp.lt.s32.totalorder %v10128_v14, 39 }
 0x127   : > { %9438 = vmatprep.subr.msk.mxu1 %vm369_vm0, %v3416_v6  ;;  %9442 = vmatpush1.msk.msra.mxu0 %vm369_vm0, %v3415_v5  ;;  %v3761_v18 = vpop.permute.xlu1 %3760  ;;  %v9472_v5 = vld [vmem:[%s11662_s5 + $0xa8] sm:$0xff] }
 0x128   : > { %6050 = vrot.lane.b32.xlu0 %v10038_v1, %s9909_s17  ;;  %9439 = vmatpush1.msk.msra.mxu1 %vm369_vm0, %v3417_v10 }
 0x129   : > { %6052 = vrot.lane.b32.xlu1 %v10046_v3, %s9909_s17  ;;  %v3583_v15 = vpop.permute.xlu0 %3582  ;;  %9443 = vmatmul.mubr.msk.f32.vlgmr.msra.gmra.mxu0 %vm365_vm1, %v9437_v9  ;;  %s9919_s17 = smov 12  }
 0x12a   : > { %v3594_v17 = vsel %vm3590_vm5, %v3589_v7, %v3583_v15  ;;  %9440 = vmatmul.mubr.msk.f32.vlgmr.msra.gmra.mxu1 %vm365_vm1, %v9437_v9  ;;  %3747 = vmatprep.mubr.f32.mxu0 %v9878_v11  ;;  %v3593_v23 = vsel %vm3590_vm5, %v3583_v15, %v3585_v56 }
 0x12b   : > { %9448 = vmatprep.subr.msk.mxu0 %vm369_vm0, %v3594_v17  ;;  %3676 = vmatprep.mubr.f32.mxu1 %v9878_v11 }
 0x12c   : > { %6222 = vrot.lane.b32.xlu0 %v10035_v0, %s9910_s24 }
 0x12d   : > { %6224 = vrot.lane.b32.xlu1 %v10042_v2, %s9910_s24  ;;  %v3587_v19 = vpop.permute.xlu0 %3586 }
 0x12e   : > { %v3591_v20 = vsel %vm3590_vm5, %v3587_v19, %v3589_v7  ;;  %v3592_v21 = vsel %vm3590_vm5, %v3585_v56, %v3587_v19  ;;  %vm5878_vm5 = vcmp.lt.s32.totalorder %v10128_v14, 38 }
 0x12f   : > { %9445 = vmatprep.subr.msk.mxu1 %vm369_vm0, %v3592_v21  ;;  %9449 = vmatpush1.msk.msra.mxu0 %vm369_vm0, %v3591_v20  ;;  %v9479_v20 = vld [vmem:[%s11662_s5 + $0xb0] sm:$0xff] }
 0x130   : > { %6226 = vrot.lane.b32.xlu0 %v10038_v1, %s9910_s24  ;;  %9446 = vmatpush1.msk.msra.mxu1 %vm369_vm0, %v3593_v23  ;;  %v10617_v1 = vld [vmem:[%s10032_s25] sm:$0xff]  ;;  %s9912_s25 = smov 34  }
 0x131   : > { %6228 = vrot.lane.b32.xlu1 %v10046_v3, %s9910_s24  ;;  %v3759_v0 = vpop.permute.xlu0 %3758  ;;  %9450 = vmatmul.mubr.msk.f32.vlgmr.msra.gmra.mxu0 %vm365_vm1, %v9444_v22  ;;  %s11399_s24 = scalar_lea.hbm %s11664_s7, %s9677_s21 }
 0x132   : > { %v3765_v24 = vpop.permute.xlu1 %3764  ;;  %9447 = vmatmul.mubr.msk.f32.vlgmr.msra.gmra.mxu1 %vm365_vm1, %v9444_v22  ;;  %3923 = vmatprep.mubr.f32.mxu0 %v9878_v11  ;;  %v3769_v30 = vsel %vm3766_vm6, %v3759_v0, %v3761_v18 }
 0x133   : > { %v3770_v25 = vsel %vm3766_vm6, %v3765_v24, %v3759_v0  ;;  %3852 = vmatprep.mubr.f32.mxu1 %v9878_v11 }
 0x134   : > { %6398 = vrot.lane.b32.xlu0 %v10617_v1, %s9911_s28  ;;  %9455 = vmatprep.subr.msk.mxu0 %vm369_vm0, %v3770_v25 }
 0x135   : > { %6400 = vrot.lane.b32.xlu1 %v10042_v2, %s9911_s28  ;;  %v3763_v26 = vpop.permute.xlu0 %3762 }
 0x136   : > { %v3767_v27 = vsel %vm3766_vm6, %v3763_v26, %v3765_v24  ;;  %v3768_v28 = vsel %vm3766_vm6, %v3761_v18, %v3763_v26  ;;  %vm6054_vm6 = vcmp.lt.s32.totalorder %v10128_v14, 37 }
 0x137   : > { %v3937_v31 = vpop.permute.xlu1 %3936  ;;  %9452 = vmatprep.subr.msk.mxu1 %vm369_vm0, %v3768_v28  ;;  %9456 = vmatpush1.msk.msra.mxu0 %vm369_vm0, %v3767_v27  ;;  %v9486_v28 = vld [vmem:[%s11662_s5 + $0xb8] sm:$0xff] }
 0x138   : > { %6402 = vrot.lane.b32.xlu0 %v10634_v32, %s9911_s28  ;;  %9453 = vmatpush1.msk.msra.mxu1 %vm369_vm0, %v3769_v30 }
 0x139   : > { %6404 = vrot.lane.b32.xlu1 %v10046_v3, %s9911_s28  ;;  %v3935_v33 = vpop.permute.xlu0 %3934  ;;  %9457 = vmatmul.mubr.msk.f32.vlgmr.msra.gmra.mxu0 %vm365_vm1, %v9451_v29 }
 0x13a   : > { %9454 = vmatmul.mubr.msk.f32.vlgmr.msra.gmra.mxu1 %vm365_vm1, %v9451_v29  ;;  %4099 = vmatprep.mubr.f32.mxu0 %v9878_v11  ;;  %v3945_v40 = vsel %vm3942_vm7, %v3935_v33, %v3937_v31 }
 0x13b   : > { %v3941_v34 = vpop.permute.xlu1 %3940  ;;  %4028 = vmatprep.mubr.f32.mxu1 %v9878_v11 }
 0x13c   : > { %6574 = vrot.lane.b32.xlu0 %v10617_v1, %s9912_s25  ;;  %v3946_v35 = vsel %vm3942_vm7, %v3941_v34, %v3935_v33 }
 0x13d   : > { %6576 = vrot.lane.b32.xlu1 %v10042_v2, %s9912_s25  ;;  %9462 = vmatprep.subr.msk.mxu0 %vm369_vm0, %v3946_v35  ;;  %v3939_v36 = vpop.permute.xlu0 %3938 }
 0x13e   : > { %v3943_v37 = vsel %vm3942_vm7, %v3939_v36, %v3941_v34  ;;  %v3944_v38 = vsel %vm3942_vm7, %v3937_v31, %v3939_v36  ;;  %vm6230_vm7 = vcmp.lt.s32.totalorder %v10128_v14, 36 }
 0x13f   : > { %v4113_v41 = vpop.permute.xlu1 %4112  ;;  %9459 = vmatprep.subr.msk.mxu1 %vm369_vm0, %v3944_v38  ;;  %9463 = vmatpush1.msk.msra.mxu0 %vm369_vm0, %v3943_v37  ;;  %v9493_v38 = vld [vmem:[%s11662_s5 + $0xc0] sm:$0xff] }
 0x140   : > { %6578 = vrot.lane.b32.xlu0 %v10634_v32, %s9912_s25  ;;  %9460 = vmatpush1.msk.msra.mxu1 %vm369_vm0, %v3945_v40 }
 0x141   : > { %6580 = vrot.lane.b32.xlu1 %v10046_v3, %s9912_s25  ;;  %v4111_v42 = vpop.permute.xlu0 %4110  ;;  %9464 = vmatmul.mubr.msk.f32.vlgmr.msra.gmra.mxu0 %vm365_vm1, %v9458_v39  ;;  %s11314_s25 = sand.u32 1, %s9866_s10  }
 0x142   : > { %9461 = vmatmul.mubr.msk.f32.vlgmr.msra.gmra.mxu1 %vm365_vm1, %v9458_v39  ;;  %4275 = vmatprep.mubr.f32.mxu0 %v9878_v11  ;;  %v4121_v50 = vsel %vm4118_vm8, %v4111_v42, %v4113_v41 }
 0x143   : > { %v4117_v43 = vpop.permute.xlu1 %4116  ;;  %4204 = vmatprep.mubr.f32.mxu1 %v9878_v11 }
 0x144   : > { %6750 = vrot.lane.b32.xlu0 %v10617_v1, %s9913_s22  ;;  %v4122_v44 = vsel %vm4118_vm8, %v4117_v43, %v4111_v42 }
 0x145   : > { %6752 = vrot.lane.b32.xlu1 %v10042_v2, %s9913_s22  ;;  %9469 = vmatprep.subr.msk.mxu0 %vm369_vm0, %v4122_v44  ;;  %v4115_v45 = vpop.permute.xlu0 %4114 }
 0x146   : > { %v4119_v46 = vsel %vm4118_vm8, %v4115_v45, %v4117_v43  ;;  %v4120_v47 = vsel %vm4118_vm8, %v4113_v41, %v4115_v45  ;;  %v10793_v45 = vpop.f32.mrf.mxu0  ;;  %vm6406_vm8 = vcmp.lt.s32.totalorder %v10128_v14, 35 }
 0x147   : > { %v4289_v51 = vpop.permute.xlu1 %4288  ;;  %9466 = vmatprep.subr.msk.mxu1 %vm369_vm0, %v4120_v47  ;;  %9470 = vmatpush1.msk.msra.mxu0 %vm369_vm0, %v4119_v46 }
 0x148   : > { %6754 = vrot.lane.b32.xlu0 %v10634_v32, %s9913_s22  ;;  %9467 = vmatpush1.msk.msra.mxu1 %vm369_vm0, %v4121_v50 }
 0x149   : > { %6756 = vrot.lane.b32.xlu1 %v10046_v3, %s9913_s22  ;;  %v4287_v52 = vpop.permute.xlu0 %4286  ;;  %9471 = vmatmul.mubr.msk.f32.vlgmr.msra.gmra.mxu0 %vm365_vm1, %v9465_v49 }
 0x14a   : > { %9468 = vmatmul.mubr.msk.f32.vlgmr.msra.gmra.mxu1 %vm365_vm1, %v9465_v49  ;;  %4451 = vmatprep.mubr.f32.mxu0 %v9878_v11  ;;  %v4297_v6 = vsel %vm4294_vm9, %v4287_v52, %v4289_v51  ;;  %v9500_v49 = vld [vmem:[%s11662_s5 + $0xc8] sm:$0xff] }
 0x14b   : > { %v4293_v55 = vpop.permute.xlu1 %4292  ;;  %4380 = vmatprep.mubr.f32.mxu1 %v9878_v11 }
 0x14c   : > { %6926 = vrot.lane.b32.xlu0 %v10617_v1, %s9914_s26  ;;  %v4298_v56 = vsel %vm4294_vm9, %v4293_v55, %v4287_v52  ;;  %v10808_v52 = vpop.f32.mrf.mxu1 }
 0x14d   : > { %6928 = vrot.lane.b32.xlu1 %v10042_v2, %s9914_s26  ;;  %9476 = vmatprep.subr.msk.mxu0 %vm369_vm0, %v4298_v56  ;;  %v4291_v59 = vpop.permute.xlu0 %4290  ;;  %v10813_v56 = vpop.f32.mrf.mxu0 }
 0x14e   : > { %v4295_v60 = vsel %vm4294_vm9, %v4291_v59, %v4293_v55  ;;  %v4296_v61 = vsel %vm4294_vm9, %v4289_v51, %v4291_v59  ;;  %vm6582_vm9 = vcmp.lt.s32.totalorder %v10128_v14, 34 }
 0x14f   : > { %v4465_v7 = vpop.permute.xlu1 %4464  ;;  %9473 = vmatprep.subr.msk.mxu1 %vm369_vm0, %v4296_v61  ;;  %9477 = vmatpush1.msk.msra.mxu0 %vm369_vm0, %v4295_v60  ;;  %v543_v60 = vld [vmem:[%s11661_s4] sm:$0xf] }
 0x150   : > { %6930 = vrot.lane.b32.xlu0 %v10634_v32, %s9914_s26  ;;  %9474 = vmatpush1.msk.msra.mxu1 %vm369_vm0, %v4297_v6 }
 0x151   : > { %6932 = vrot.lane.b32.xlu1 %v10046_v3, %s9914_s26  ;;  %v4463_v9 = vpop.permute.xlu0 %4462  ;;  %9478 = vmatmul.mubr.msk.f32.vlgmr.msra.gmra.mxu0 %vm365_vm1, %v9472_v5 }
 0x152   : > { %9475 = vmatmul.mubr.msk.f32.vlgmr.msra.gmra.mxu1 %vm365_vm1, %v9472_v5  ;;  %4627 = vmatprep.mubr.f32.mxu0 %v9878_v11  ;;  %v4473_v21 = vsel %vm4470_vm10, %v4463_v9, %v4465_v7  ;;  %v10825_v5 = vpop.f32.mrf.mxu1 }
 0x153   : > { %v4469_v10 = vpop.permute.xlu1 %4468  ;;  %4556 = vmatprep.mubr.f32.mxu1 %v9878_v11 }
 0x154   : > { %v4474_v15 = vsel %vm4470_vm10, %v4469_v10, %v4463_v9  ;;  %7102 = vrot.lane.b32.xlu0 %v10617_v1, %s9915_s29 }
 0x155   : > { %7104 = vrot.lane.b32.xlu1 %v10042_v2, %s9915_s29  ;;  %9483 = vmatprep.subr.msk.mxu0 %vm369_vm0, %v4474_v15  ;;  %v4467_v17 = vpop.permute.xlu0 %4466  ;;  %v9507_v15 = vld [vmem:[%s11662_s5 + $0xd0] sm:$0xff] }
 0x156   : > { %v4471_v18 = vsel %vm4470_vm10, %v4467_v17, %v4469_v10  ;;  %v4472_v19 = vsel %vm4470_vm10, %v4465_v7, %v4467_v17  ;;  %vm6758_vm10 = vcmp.lt.s32.totalorder %v10128_v14, 18 }
 0x157   : > { %v4641_v22 = vpop.permute.xlu1 %4640  ;;  %9480 = vmatprep.subr.msk.mxu1 %vm369_vm0, %v4472_v19  ;;  %9484 = vmatpush1.msk.msra.mxu0 %vm369_vm0, %v4471_v18 }
 0x158   : > { %7106 = vrot.lane.b32.xlu0 %v10634_v32, %s9915_s29  ;;  %9481 = vmatpush1.msk.msra.mxu1 %vm369_vm0, %v4473_v21 }
 0x159   : > { %7108 = vrot.lane.b32.xlu1 %v10046_v3, %s9915_s29  ;;  %v4639_v23 = vpop.permute.xlu0 %4638  ;;  %9485 = vmatmul.mubr.msk.f32.vlgmr.msra.gmra.mxu0 %vm365_vm1, %v9479_v20  ;;  %s9924_s29 = smov [#allocation2]  }
 0x15a   : > { %9482 = vmatmul.mubr.msk.f32.vlgmr.msra.gmra.mxu1 %vm365_vm1, %v9479_v20  ;;  %4803 = vmatprep.mubr.f32.mxu0 %v9878_v11  ;;  %v4649_v29 = vsel %vm4646_vm11, %v4639_v23, %v4641_v22 }
 0x15b   : > { %v4645_v0 = vpop.permute.xlu1 %4644  ;;  %4732 = vmatprep.mubr.f32.mxu1 %v9878_v11 }
 0x15c   : > { %v4650_v24 = vsel %vm4646_vm11, %v4645_v0, %v4639_v23  ;;  %7278 = vrot.lane.b32.xlu0 %v10617_v1, %s9916_s16 }
 0x15d   : > { %7280 = vrot.lane.b32.xlu1 %v10042_v2, %s9916_s16  ;;  %9490 = vmatprep.subr.msk.mxu0 %vm369_vm0, %v4650_v24  ;;  %v4643_v25 = vpop.permute.xlu0 %4642 }
 0x15e   : > { %v4647_v26 = vsel %vm4646_vm11, %v4643_v25, %v4645_v0  ;;  %v4648_v27 = vsel %vm4646_vm11, %v4641_v22, %v4643_v25  ;;  %vm6934_vm11 = vcmp.lt.s32.totalorder %v10128_v14, 17 }
 0x15f   : > { %v4817_v30 = vpop.permute.xlu1 %4816  ;;  %9487 = vmatprep.subr.msk.mxu1 %vm369_vm0, %v4648_v27  ;;  %9491 = vmatpush1.msk.msra.mxu0 %vm369_vm0, %v4647_v26 }
 0x160   : > { %7282 = vrot.lane.b32.xlu0 %v10634_v32, %s9916_s16  ;;  %9488 = vmatpush1.msk.msra.mxu1 %vm369_vm0, %v4649_v29 }
 0x161   : > { %7284 = vrot.lane.b32.xlu1 %v10046_v3, %s9916_s16  ;;  %v4815_v31 = vpop.permute.xlu0 %4814  ;;  %9492 = vmatmul.mubr.msk.f32.vlgmr.msra.gmra.mxu0 %vm365_vm1, %v9486_v28  ;;  %s9313_s16 = sshll.u32 %s11314_s25, 4 }
 0x162   : > { %9489 = vmatmul.mubr.msk.f32.vlgmr.msra.gmra.mxu1 %vm365_vm1, %v9486_v28  ;;  %4979 = vmatprep.mubr.f32.mxu0 %v9878_v11  ;;  %v4825_v39 = vsel %vm4822_vm12, %v4815_v31, %v4817_v30 }
 0x163   : > { %v4821_v33 = vpop.permute.xlu1 %4820  ;;  %4908 = vmatprep.mubr.f32.mxu1 %v9878_v11 }
 0x164   : > { %v4826_v34 = vsel %vm4822_vm12, %v4821_v33, %v4815_v31  ;;  %7454 = vrot.lane.b32.xlu0 %v10617_v1, %s9917_s23  ;;  %v9514_v31 = vld [vmem:[%s11662_s5 + $0xd8] sm:$0xff] }
 0x165   : > { %7456 = vrot.lane.b32.xlu1 %v10042_v2, %s9917_s23  ;;  %9497 = vmatprep.subr.msk.mxu0 %vm369_vm0, %v4826_v34  ;;  %v4819_v35 = vpop.permute.xlu0 %4818 }
 0x166   : > { %v4823_v36 = vsel %vm4822_vm12, %v4819_v35, %v4821_v33  ;;  %v4824_v37 = vsel %vm4822_vm12, %v4817_v30, %v4819_v35  ;;  %vm7110_vm12 = vcmp.lt.s32.totalorder %v10128_v14, 16 }
 0x167   : > { %v4993_v40 = vpop.permute.xlu1 %4992  ;;  %9494 = vmatprep.subr.msk.mxu1 %vm369_vm0, %v4824_v37  ;;  %9498 = vmatpush1.msk.msra.mxu0 %vm369_vm0, %v4823_v36 }
 0x168   : > { %7458 = vrot.lane.b32.xlu0 %v10634_v32, %s9917_s23  ;;  %9495 = vmatpush1.msk.msra.mxu1 %vm369_vm0, %v4825_v39 }
 0x169   : > { %7460 = vrot.lane.b32.xlu1 %v10046_v3, %s9917_s23  ;;  %v4991_v41 = vpop.permute.xlu0 %4990  ;;  %9499 = vmatmul.mubr.msk.f32.vlgmr.msra.gmra.mxu0 %vm365_vm1, %v9493_v38  ;;  %s351_s23 = scalar_lea.vmem %s11666_s9, %s9317_s14  ;;  %s9921_s14 = smov 120  }
 0x16a   : > { %9496 = vmatmul.mubr.msk.f32.vlgmr.msra.gmra.mxu1 %vm365_vm1, %v9493_v38  ;;  %5155 = vmatprep.mubr.f32.mxu0 %v9878_v11  ;;  %v5001_v50 = vsel %vm4998_vm13, %v4991_v41, %v4993_v40 }
 0x16b   : > { %v4997_v42 = vpop.permute.xlu1 %4996  ;;  %5084 = vmatprep.mubr.f32.mxu1 %v9878_v11 }
 0x16c   : > { %v5002_v43 = vsel %vm4998_vm13, %v4997_v42, %v4991_v41  ;;  %7630 = vrot.lane.b32.xlu0 %v10617_v1, %s9918_s27 }
 0x16d   : > { %7632 = vrot.lane.b32.xlu1 %v10042_v2, %s9918_s27  ;;  %9504 = vmatprep.subr.msk.mxu0 %vm369_vm0, %v5002_v43  ;;  %v4995_v44 = vpop.permute.xlu0 %4994 }
 0x16e   : > { %v4999_v46 = vsel %vm4998_vm13, %v4995_v44, %v4997_v42  ;;  %v5000_v47 = vsel %vm4998_vm13, %v4993_v40, %v4995_v44  ;;  %vm7286_vm13 = vcmp.lt.s32.totalorder %v10128_v14, 15 }
 0x16f   : > { %v5169_v51 = vpop.permute.xlu1 %5168  ;;  %9501 = vmatprep.subr.msk.mxu1 %vm369_vm0, %v5000_v47  ;;  %9505 = vmatpush1.msk.msra.mxu0 %vm369_vm0, %v4999_v46 }
 0x170   : > { %7634 = vrot.lane.b32.xlu0 %v10634_v32, %s9918_s27  ;;  %9502 = vmatpush1.msk.msra.mxu1 %vm369_vm0, %v5001_v50 }
 0x171   : > { %7636 = vrot.lane.b32.xlu1 %v10046_v3, %s9918_s27  ;;  %v5167_v55 = vpop.permute.xlu0 %5166  ;;  %9506 = vmatmul.mubr.msk.f32.vlgmr.msra.gmra.mxu0 %vm365_vm1, %v9500_v49  ;;  %s9920_s27 = smov 121  }
 0x172   : > { %9503 = vmatmul.mubr.msk.f32.vlgmr.msra.gmra.mxu1 %vm365_vm1, %v9500_v49  ;;  %5331 = vmatprep.mubr.f32.mxu0 %v9878_v11  ;;  %v5177_v18 = vsel %vm5174_vm14, %v5167_v55, %v5169_v51 }
 0x173   : > { %v5173_v59 = vpop.permute.xlu1 %5172  ;;  %5260 = vmatprep.mubr.f32.mxu1 %v9878_v11 }
 0x174   : > { %v5178_v61 = vsel %vm5174_vm14, %v5173_v59, %v5167_v55  ;;  %7806 = vrot.lane.b32.xlu0 %v10617_v1, %s9919_s17 }
 0x175   : > { %7808 = vrot.lane.b32.xlu1 %v10042_v2, %s9919_s17  ;;  %9511 = vmatprep.subr.msk.mxu0 %vm369_vm0, %v5178_v61  ;;  %v5171_v6 = vpop.permute.xlu0 %5170  ;;  %v616_v7 = vpop.f32.mrf.mxu0 }
 0x176   : > { %v5175_v9 = vsel %vm5174_vm14, %v5171_v6, %v5173_v59  ;;  %v5176_v10 = vsel %vm5174_vm14, %v5169_v51, %v5171_v6  ;;  %v617_v17 = vadd.f32 %v616_v7, %v543_v60  ;;  %v9521_v6 = vld [vmem:[%s11662_s5 + $0xe0] sm:$0xff]  ;;  %vm7462_vm14 = vcmp.lt.s32.totalorder %v10128_v14, 14 }
 0x177   : > { %v5345_v19 = vpop.permute.xlu1 %5344  ;;  %9508 = vmatprep.subr.msk.mxu1 %vm369_vm0, %v5176_v10  ;;  %9512 = vmatpush1.msk.msra.mxu0 %vm369_vm0, %v5175_v9  ;;  %v9685_v20 = vpop.f32.mrf.mxu0 }
 0x178   : > { %7810 = vrot.lane.b32.xlu0 %v10634_v32, %s9919_s17  ;;  %9509 = vmatpush1.msk.msra.mxu1 %vm369_vm0, %v5177_v18  ;;  %621 = vst.msk [vmem:[%s351_s23] sm:$0xf] %vm620_vm15, %v617_v17  ;;  %v721_v21 = vpop.f32.mrf.mxu1  ;;  %s9923_s23 = smov 118   ;;  %vm7638_vm15 = vcmp.lt.s32.totalorder %v10128_v14, 13 }
 0x179   : > { %7812 = vrot.lane.b32.xlu1 %v10046_v3, %s9919_s17  ;;  %v5343_v22 = vpop.permute.xlu0 %5342  ;;  %9513 = vmatmul.mubr.msk.f32.vlgmr.msra.gmra.mxu0 %vm365_vm1, %v9507_v15  ;;  %v792_v23 = vpop.f32.mrf.mxu0  ;;  %s9922_s17 = smov 119  }
 0x17a   : > { %9510 = vmatmul.mubr.msk.f32.vlgmr.msra.gmra.mxu1 %vm365_vm1, %v9507_v15  ;;  %5507 = vmatprep.mubr.f32.mxu0 %v9878_v11  ;;  %v723_v0 = vpop.f32.mrf.mxu1  ;;  %v5353_v34 = vsel %vm5350_vm2, %v5343_v22, %v5345_v19 }
 0x17b   : > { %v5349_v24 = vpop.permute.xlu1 %5348  ;;  %5436 = vmatprep.mubr.f32.mxu1 %v9878_v11  ;;  %v794_v25 = vpop.f32.mrf.mxu0 }
 0x17c   : > { %v5354_v26 = vsel %vm5350_vm2, %v5349_v24, %v5343_v22  ;;  %8435 = vrot.lane.b32.xlu0 %v10617_v1, %s9920_s27 }
 0x17d   : > { %8437 = vrot.lane.b32.xlu1 %v10042_v2, %s9920_s27  ;;  %9518 = vmatprep.subr.msk.mxu0 %vm369_vm0, %v5354_v26  ;;  %v5347_v27 = vpop.permute.xlu0 %5346  ;;  %v866_v28 = vpop.f32.mrf.mxu1 }
 0x17e   : > { %v5351_v29 = vsel %vm5350_vm2, %v5347_v27, %v5349_v24  ;;  %v5352_v30 = vsel %vm5350_vm2, %v5345_v19, %v5347_v27  ;;  %v867_v33 = vadd.f32 %v866_v28, %v721_v21  ;;  %vm7814_vm2 = vcmp.lt.s32.totalorder %v10128_v14, 12 }
 0x17f   : > { %v5521_v35 = vpop.permute.xlu1 %5520  ;;  %9515 = vmatprep.subr.msk.mxu1 %vm369_vm0, %v5352_v30  ;;  %9519 = vmatpush1.msk.msra.mxu0 %vm369_vm0, %v5351_v29  ;;  %v937_v36 = vpop.f32.mrf.mxu0 }
 0x180   : > { %8439 = vrot.lane.b32.xlu0 %v10634_v32, %s9920_s27  ;;  %9516 = vmatpush1.msk.msra.mxu1 %vm369_vm0, %v5353_v34  ;;  %v938_v37 = vadd.f32 %v937_v36, %v792_v23  ;;  %v868_v38 = vpop.f32.mrf.mxu1 }
 0x181   : > { %8441 = vrot.lane.b32.xlu1 %v10046_v3, %s9920_s27  ;;  %v5519_v39 = vpop.permute.xlu0 %5518  ;;  %9520 = vmatmul.mubr.msk.f32.vlgmr.msra.gmra.mxu0 %vm365_vm1, %v9514_v31  ;;  %v939_v40 = vpop.f32.mrf.mxu0  ;;  %v869_v41 = vadd.f32 %v868_v38, %v723_v0  ;;  %s9154_s27 = scalar_lea.sflag [#allocation3], %s11314_s25 }
 0x182   : > { %9517 = vmatmul.mubr.msk.f32.vlgmr.msra.gmra.mxu1 %vm365_vm1, %v9514_v31  ;;  %5683 = vmatprep.mubr.f32.mxu0 %v9878_v11  ;;  %v940_v42 = vadd.f32 %v939_v40, %v794_v25  ;;  %v1038_v43 = vpop.f32.mrf.mxu1  ;;  %v5529_v9 = vsel %vm5526_vm3, %v5519_v39, %v5521_v35  ;;  %v9528_v31 = vld [vmem:[%s11662_s5 + $0xe8] sm:$0xff] }
 0x183   : > { %v5525_v44 = vpop.permute.xlu1 %5524  ;;  %5612 = vmatprep.mubr.f32.mxu1 %v9878_v11  ;;  %v1114_v46 = vadd.f32 %v1038_v43, %v867_v33 }
 0x184   : > { %v5530_v47 = vsel %vm5526_vm3, %v5525_v44, %v5519_v39  ;;  %8611 = vrot.lane.b32.xlu0 %v10617_v1, %s9921_s14  ;;  %v1109_v49 = vpop.f32.mrf.mxu0  ;;  %v1040_v50 = vpop.f32.mrf.mxu1 }
 0x185   : > { %8613 = vrot.lane.b32.xlu1 %v10042_v2, %s9921_s14  ;;  %9525 = vmatprep.subr.msk.mxu0 %vm369_vm0, %v5530_v47  ;;  %v5523_v51 = vpop.permute.xlu0 %5522  ;;  %v1116_v55 = vadd.f32 %v1109_v49, %v938_v37  ;;  %v1115_v59 = vadd.f32 %v1040_v50, %v869_v41 }
 0x186   : > { %v5527_v60 = vsel %vm5526_vm3, %v5523_v51, %v5525_v44  ;;  %v5528_v61 = vsel %vm5526_vm3, %v5521_v35, %v5523_v51  ;;  %v1111_v7 = vpop.f32.mrf.mxu0  ;;  %vm8443_vm3 = vcmp.lt.s32.totalorder %v10128_v14, 121 }
 0x187   : > { %v5697_v10 = vpop.permute.xlu1 %5696  ;;  %9522 = vmatprep.subr.msk.mxu1 %vm369_vm0, %v5528_v61  ;;  %9526 = vmatpush1.msk.msra.mxu0 %vm369_vm0, %v5527_v60  ;;  %v1117_v15 = vadd.f32 %v1111_v7, %v940_v42 }
 0x188   : > { %8615 = vrot.lane.b32.xlu0 %v10634_v32, %s9921_s14  ;;  %9523 = vmatpush1.msk.msra.mxu1 %vm369_vm0, %v5529_v9  ;;  %v1285_v17 = vpop.f32.mrf.mxu0  ;;  %v9535_v9 = vld [vmem:[%s11662_s5 + $0xf0] sm:$0xff] }
 0x189   : > { %8617 = vrot.lane.b32.xlu1 %v10046_v3, %s9921_s14  ;;  %9527 = vmatmul.mubr.msk.f32.vlgmr.msra.gmra.mxu0 %vm365_vm1, %v9521_v6  ;;  %v5695_v18 = vpop.permute.xlu0 %5694  ;;  %v1292_v19 = vadd.f32 %v1285_v17, %v1116_v55  ;;  %s9788_s14 = sshll.u32 %s9924_s29, 4  ;;  %s9789_s14 = int_to_ptr.vmem [resolvable:$false] %s9788_s14 }
 0x18a   : > { %9524 = vmatmul.mubr.msk.f32.vlgmr.msra.gmra.mxu1 %vm365_vm1, %v9521_v6  ;;  %5859 = vmatprep.mubr.f32.mxu0 %v9878_v11  ;;  %v1214_v20 = vpop.f32.mrf.mxu1  ;;  %v1287_v21 = vpop.f32.mrf.mxu0  ;;  %v5705_v35 = vsel %vm5702_vm4, %v5695_v18, %v5697_v10 }
 0x18b   : > { %v5701_v22 = vpop.permute.xlu1 %5700  ;;  %5788 = vmatprep.mubr.f32.mxu1 %v9878_v11  ;;  %v1290_v23 = vadd.f32 %v1214_v20, %v1114_v46  ;;  %v1293_v0 = vadd.f32 %v1287_v21, %v1117_v15  ;;  %v355_v15 = vld [vmem:[%s11659_s2] sm:$0xf] }
 0x18c   : > { %v5706_v24 = vsel %vm5702_vm4, %v5701_v22, %v5695_v18  ;;  %8787 = vrot.lane.b32.xlu0 %v10617_v1, %s9922_s17  ;;  %v1216_v25 = vpop.f32.mrf.mxu1 }
 0x18d   : > { %8789 = vrot.lane.b32.xlu1 %v10042_v2, %s9922_s17  ;;  %9532 = vmatprep.subr.msk.mxu0 %vm369_vm0, %v5706_v24  ;;  %v5699_v26 = vpop.permute.xlu0 %5698  ;;  %v1291_v27 = vadd.f32 %v1216_v25, %v1115_v59  ;;  %v1461_v28 = vpop.f32.mrf.mxu0  ;;  %v9542_v24 = vld [vmem:[%s11662_s5 + $0xf8] sm:$0xff] }
 0x18e   : > { %v5703_v29 = vsel %vm5702_vm4, %v5699_v26, %v5701_v22  ;;  %v5704_v30 = vsel %vm5702_vm4, %v5697_v10, %v5699_v26  ;;  %v1468_v33 = vadd.f32 %v1461_v28, %v1292_v19  ;;  %v1390_v34 = vpop.f32.mrf.mxu1  ;;  %vm8619_vm4 = vcmp.lt.s32.totalorder %v10128_v14, 120 }
 0x18f   : > { %v5873_v36 = vpop.permute.xlu1 %5872  ;;  %9529 = vmatprep.subr.msk.mxu1 %vm369_vm0, %v5704_v30  ;;  %9533 = vmatpush1.msk.msra.mxu0 %vm369_vm0, %v5703_v29  ;;  %v1466_v37 = vadd.f32 %v1390_v34, %v1290_v23  ;;  %v1463_v38 = vpop.f32.mrf.mxu0 }
 0x190   : > { %8791 = vrot.lane.b32.xlu0 %v10634_v32, %s9922_s17  ;;  %9530 = vmatpush1.msk.msra.mxu1 %vm369_vm0, %v5705_v35  ;;  %v1469_v39 = vadd.f32 %v1463_v38, %v1293_v0  ;;  %v1392_v40 = vpop.f32.mrf.mxu1 }
 0x191   : > { %8793 = vrot.lane.b32.xlu1 %v10046_v3, %s9922_s17  ;;  %9534 = vmatmul.mubr.msk.f32.vlgmr.msra.gmra.mxu0 %vm365_vm1, %v9528_v31  ;;  %v5871_v41 = vpop.permute.xlu0 %5870  ;;  %v1467_v42 = vadd.f32 %v1392_v40, %v1291_v27  ;;  %s11329_s17 = scalar_lea.vmem [#allocation2], %s9313_s16  ;;  %s9790_s16 = scalar_lea.vmem %s9789_s14, 512 }
 0x192   : > { %9531 = vmatmul.mubr.msk.f32.vlgmr.msra.gmra.mxu1 %vm365_vm1, %v9528_v31  ;;  %6035 = vmatprep.mubr.f32.mxu0 %v9878_v11  ;;  %v1637_v43 = vpop.f32.mrf.mxu0  ;;  %v1566_v44 = vpop.f32.mrf.mxu1  ;;  %s9177_s26 = sshll.u32 %s11329_s17, 4  ;;  %s9178_s26 = int_to_ptr.vmem [resolvable:$true] %s9177_s26 }
 0x193   : > { %v5877_v46 = vpop.permute.xlu1 %5876  ;;  %5964 = vmatprep.mubr.f32.mxu1 %v9878_v11  ;;  %v1644_v47 = vadd.f32 %v1637_v43, %v1468_v33  ;;  %v1642_v49 = vadd.f32 %v1566_v44, %v1466_v37  ;;  %s9784_s28 = scalar_lea.vmem %s9178_s26, 256  ;;  %p9791_p0 = scmp.lt.s32.totalorder %s9178_s26, %s9789_s14 }
 0x194   : > { %v5882_v50 = vsel %vm5878_vm5, %v5877_v46, %v5871_v41  ;;  %8963 = vrot.lane.b32.xlu0 %v10617_v1, %s9923_s23  ;;  %v1639_v51 = vpop.f32.mrf.mxu0  ;;  %v1568_v55 = vpop.f32.mrf.mxu1  ;;  %v5881_v1 = vsel %vm5878_vm5, %v5871_v41, %v5873_v36  ;;  %p9785_p11 = scmp.ne.s32.totalorder %s9178_s26, %s9784_s28  ;;  %p9792_p1 = scmp.lt.s32.totalorder %s9790_s16, %s9784_s28 }
 0x195   : > { %8965 = vrot.lane.b32.xlu1 %v10042_v2, %s9923_s23  ;;  %9539 = vmatprep.subr.msk.mxu0 %vm369_vm0, %v5882_v50  ;;  %v5875_v59 = vpop.permute.xlu0 %5874  ;;  %v1645_v60 = vadd.f32 %v1639_v51, %v1469_v39  ;;  %v1643_v61 = vadd.f32 %v1568_v55, %v1467_v42  ;;  %v9549_v42 = vld [vmem:[%s11662_s5 + $0x100] sm:$0xff] }
 0x196   : > { %v5879_v6 = vsel %vm5878_vm5, %v5875_v59, %v5877_v46  ;;  %v5880_v7 = vsel %vm5878_vm5, %v5873_v36, %v5875_v59  ;;  %vm8795_vm5 = vcmp.lt.s32.totalorder %v10128_v14, 119  ;;  %p9786_p12 = pnand %p9785_p11, %p10014_p5  ;;  %p9793_p2 = por %p9792_p1, %p9791_p0 }
 0x197   : > { %v6049_v10 = vpop.permute.xlu1 %6048  ;;  %9536 = vmatprep.subr.msk.mxu1 %vm369_vm0, %v5880_v7  ;;  %9540 = vmatpush1.msk.msra.mxu0 %vm369_vm0, %v5879_v6 }
 0x198   : > { %8967 = vrot.lane.b32.xlu0 %v10634_v32, %s9923_s23  ;;  %9537 = vmatpush1.msk.msra.mxu1 %vm369_vm0, %v5881_v1  ;;  %p9787_p13 = pneg %p9786_p12 }
 0x199   : > { %8969 = vrot.lane.b32.xlu1 %v10046_v3, %s9923_s23  ;;  %9541 = vmatmul.mubr.msk.f32.vlgmr.msra.gmra.mxu0 %vm365_vm1, %v9535_v9  ;;  %v6047_v2 = vpop.permute.xlu0 %6046  ;;  %v1813_v17 = vpop.f32.mrf.mxu0 }
 0x19a   : > { %9538 = vmatmul.mubr.msk.f32.vlgmr.msra.gmra.mxu1 %vm365_vm1, %v9535_v9  ;;  %6211 = vmatprep.mubr.f32.mxu0 %v9878_v11  ;;  %v1820_v18 = vadd.f32 %v1813_v17, %v1644_v47  ;;  %v1742_v32 = vpop.f32.mrf.mxu1  ;;  %v6057_v28 = vsel %vm6054_vm6, %v6047_v2, %v6049_v10  ;;  %p9794_p3 = pnand %p9793_p2, %p9787_p13 }
 0x19b   : > { %v6053_v19 = vpop.permute.xlu1 %6052  ;;  %6140 = vmatprep.mubr.f32.mxu1 %v9878_v11  ;;  %v1818_v3 = vadd.f32 %v1742_v32, %v1642_v49  ;;  %v1815_v20 = vpop.f32.mrf.mxu0 }
 0x19c   : > { %v6058_v21 = vsel %vm6054_vm6, %v6053_v19, %v6047_v2  ;;  %358 = vperm.xlu0 %9778, %v355_v15   ;;  %v1821_v22 = vadd.f32 %v1815_v20, %v1645_v60  ;;  %v1744_v23 = vpop.f32.mrf.mxu1  ;;  %v9556_v2 = vld [vmem:[%s11662_s5 + $0x108] sm:$0xff] }
 0x19d   : > { %9546 = vmatprep.subr.msk.mxu0 %vm369_vm0, %v6058_v21  ;;  %v6051_v0 = vpop.permute.xlu0 %6050  ;;  %v1819_v25 = vadd.f32 %v1744_v23, %v1643_v61 }
 0x19e   : > { %v6055_v26 = vsel %vm6054_vm6, %v6051_v0, %v6053_v19  ;;  %v6056_v27 = vsel %vm6054_vm6, %v6049_v10, %v6051_v0  ;;  %vm8971_vm6 = vcmp.lt.s32.totalorder %v10128_v14, 118 }
 0x19f   : > { %v6225_v29 = vpop.permute.xlu1 %6224  ;;  %9543 = vmatprep.subr.msk.mxu1 %vm369_vm0, %v6056_v27  ;;  %9547 = vmatpush1.msk.msra.mxu0 %vm369_vm0, %v6055_v26 }
 0x1a0   : > { %9544 = vmatpush1.msk.msra.mxu1 %vm369_vm0, %v6057_v28  ;;  %9548 = vmatmul.mubr.msk.f32.vlgmr.msra.gmra.mxu0 %vm365_vm1, %v9542_v24 }
 0x1a1   : > { %9545 = vmatmul.mubr.msk.f32.vlgmr.msra.gmra.mxu1 %vm365_vm1, %v9542_v24  ;;  %v6223_v30 = vpop.permute.xlu0 %6222  ;;  %6387 = vmatprep.mubr.f32.mxu0 %v9878_v11  ;;  %v1989_v31 = vpop.f32.mrf.mxu0 }
 0x1a2   : > { %6316 = vmatprep.mubr.f32.mxu1 %v9878_v11  ;;  %v1996_v33 = vadd.f32 %v1989_v31, %v1820_v18  ;;  %v1918_v34 = vpop.f32.mrf.mxu1  ;;  %v6233_v47 = vsel %vm6230_vm7, %v6223_v30, %v6225_v29 }
 0x1a3   : > { %v6229_v35 = vpop.permute.xlu1 %6228  ;;  %v1994_v36 = vadd.f32 %v1918_v34, %v1818_v3  ;;  %v1991_v37 = vpop.f32.mrf.mxu0 }
 0x1a4   : > { %v6234_v38 = vsel %vm6230_vm7, %v6229_v35, %v6223_v30  ;;  %v1997_v39 = vadd.f32 %v1991_v37, %v1821_v22  ;;  %v1920_v40 = vpop.f32.mrf.mxu1 }
 0x1a5   : > { %9553 = vmatprep.subr.msk.mxu0 %vm369_vm0, %v6234_v38  ;;  %v6227_v41 = vpop.permute.xlu0 %6226  ;;  %v1995_v43 = vadd.f32 %v1920_v40, %v1819_v25 }
 0x1a6   : > { %v6231_v44 = vsel %vm6230_vm7, %v6227_v41, %v6229_v35  ;;  %v6232_v46 = vsel %vm6230_vm7, %v6225_v29, %v6227_v41  ;;  %v9563_v29 = vld [vmem:[%s11662_s5 + $0x110] sm:$0xff] }
 0x1a7   : > { %v6401_v49 = vpop.permute.xlu1 %6400  ;;  %9550 = vmatprep.subr.msk.mxu1 %vm369_vm0, %v6232_v46  ;;  %9554 = vmatpush1.msk.msra.mxu0 %vm369_vm0, %v6231_v44 }
 0x1a8   : > { %9551 = vmatpush1.msk.msra.mxu1 %vm369_vm0, %v6233_v47  ;;  %9555 = vmatmul.mubr.msk.f32.vlgmr.msra.gmra.mxu0 %vm365_vm1, %v9549_v42 }
 0x1a9   : > { %9552 = vmatmul.mubr.msk.f32.vlgmr.msra.gmra.mxu1 %vm365_vm1, %v9549_v42  ;;  %v6399_v50 = vpop.permute.xlu0 %6398  ;;  %6563 = vmatprep.mubr.f32.mxu0 %v9878_v11  ;;  %v2165_v51 = vpop.f32.mrf.mxu0 }
 0x1aa   : > { %6492 = vmatprep.mubr.f32.mxu1 %v9878_v11  ;;  %v2172_v55 = vadd.f32 %v2165_v51, %v1996_v33  ;;  %v2094_v59 = vpop.f32.mrf.mxu1  ;;  %v6409_v32 = vsel %vm6406_vm8, %v6399_v50, %v6401_v49 }
 0x1ab   : > { %v6405_v60 = vpop.permute.xlu1 %6404  ;;  %v2170_v61 = vadd.f32 %v2094_v59, %v1994_v36  ;;  %v2167_v6 = vpop.f32.mrf.mxu0 }
 0x1ac   : > { %v6410_v7 = vsel %vm6406_vm8, %v6405_v60, %v6399_v50  ;;  %v2173_v9 = vadd.f32 %v2167_v6, %v1997_v39  ;;  %v2096_v1 = vpop.f32.mrf.mxu1 }
 0x1ad   : > { %9560 = vmatprep.subr.msk.mxu0 %vm369_vm0, %v6410_v7  ;;  %v6403_v10 = vpop.permute.xlu0 %6402  ;;  %v2171_v15 = vadd.f32 %v2096_v1, %v1995_v43 }
 0x1ae   : > { %v6407_v17 = vsel %vm6406_vm8, %v6403_v10, %v6405_v60  ;;  %v6408_v18 = vsel %vm6406_vm8, %v6401_v49, %v6403_v10  ;;  %v9570_v49 = vld [vmem:[%s11662_s5 + $0x118] sm:$0xff] }
 0x1af   : > { %v6577_v19 = vpop.permute.xlu1 %6576  ;;  %9557 = vmatprep.subr.msk.mxu1 %vm369_vm0, %v6408_v18  ;;  %9561 = vmatpush1.msk.msra.mxu0 %vm369_vm0, %v6407_v17 }
 0x1b0   : > { %9558 = vmatpush1.msk.msra.mxu1 %vm369_vm0, %v6409_v32  ;;  %9562 = vmatmul.mubr.msk.f32.vlgmr.msra.gmra.mxu0 %vm365_vm1, %v9556_v2 }
 0x1b1   : > { %9559 = vmatmul.mubr.msk.f32.vlgmr.msra.gmra.mxu1 %vm365_vm1, %v9556_v2  ;;  %v6575_v3 = vpop.permute.xlu0 %6574  ;;  %6739 = vmatprep.mubr.f32.mxu0 %v9878_v11  ;;  %v2341_v20 = vpop.f32.mrf.mxu0 }
 0x1b2   : > { %6668 = vmatprep.mubr.f32.mxu1 %v9878_v11  ;;  %v2348_v21 = vadd.f32 %v2341_v20, %v2172_v55  ;;  %v2270_v22 = vpop.f32.mrf.mxu1  ;;  %v6585_v34 = vsel %vm6582_vm9, %v6575_v3, %v6577_v19 }
 0x1b3   : > { %v6581_v23 = vpop.permute.xlu1 %6580  ;;  %v2346_v0 = vadd.f32 %v2270_v22, %v2170_v61  ;;  %v2343_v24 = vpop.f32.mrf.mxu0 }
 0x1b4   : > { %v6586_v25 = vsel %vm6582_vm9, %v6581_v23, %v6575_v3  ;;  %v2349_v26 = vadd.f32 %v2343_v24, %v2173_v9  ;;  %v2272_v27 = vpop.f32.mrf.mxu1 }
 0x1b5   : > { %9567 = vmatprep.subr.msk.mxu0 %vm369_vm0, %v6586_v25  ;;  %v6579_v28 = vpop.permute.xlu0 %6578  ;;  %v2347_v30 = vadd.f32 %v2272_v27, %v2171_v15 }
 0x1b6   : > { %v6583_v31 = vsel %vm6582_vm9, %v6579_v28, %v6581_v23  ;;  %v6584_v33 = vsel %vm6582_vm9, %v6577_v19, %v6579_v28  ;;  %v9577_v19 = vld [vmem:[%s11662_s5 + $0x120] sm:$0xff] }
 0x1b7   : > { %v6753_v35 = vpop.permute.xlu1 %6752  ;;  %9564 = vmatprep.subr.msk.mxu1 %vm369_vm0, %v6584_v33  ;;  %9568 = vmatpush1.msk.msra.mxu0 %vm369_vm0, %v6583_v31 }
 0x1b8   : > { %9565 = vmatpush1.msk.msra.mxu1 %vm369_vm0, %v6585_v34  ;;  %9569 = vmatmul.mubr.msk.f32.vlgmr.msra.gmra.mxu0 %vm365_vm1, %v9563_v29 }
 0x1b9   : > { %9566 = vmatmul.mubr.msk.f32.vlgmr.msra.gmra.mxu1 %vm365_vm1, %v9563_v29  ;;  %v6751_v36 = vpop.permute.xlu0 %6750  ;;  %6915 = vmatprep.mubr.f32.mxu0 %v9878_v11  ;;  %v2517_v37 = vpop.f32.mrf.mxu0 }
 0x1ba   : > { %6844 = vmatprep.mubr.f32.mxu1 %v9878_v11  ;;  %v2524_v38 = vadd.f32 %v2517_v37, %v2348_v21  ;;  %v2446_v39 = vpop.f32.mrf.mxu1  ;;  %v6761_v59 = vsel %vm6758_vm10, %v6751_v36, %v6753_v35 }
 0x1bb   : > { %v6757_v40 = vpop.permute.xlu1 %6756  ;;  %v2522_v41 = vadd.f32 %v2446_v39, %v2346_v0  ;;  %v2519_v42 = vpop.f32.mrf.mxu0 }
 0x1bc   : > { %v6762_v43 = vsel %vm6758_vm10, %v6757_v40, %v6751_v36  ;;  %v2525_v44 = vadd.f32 %v2519_v42, %v2349_v26  ;;  %v2448_v46 = vpop.f32.mrf.mxu1 }
 0x1bd   : > { %9574 = vmatprep.subr.msk.mxu0 %vm369_vm0, %v6762_v43  ;;  %v6755_v47 = vpop.permute.xlu0 %6754  ;;  %v2523_v50 = vadd.f32 %v2448_v46, %v2347_v30 }
 0x1be   : > { %v6759_v51 = vsel %vm6758_vm10, %v6755_v47, %v6757_v40  ;;  %v6760_v55 = vsel %vm6758_vm10, %v6753_v35, %v6755_v47  ;;  %v9584_v35 = vld [vmem:[%s11662_s5 + $0x128] sm:$0xff] }
 0x1bf   : > { %v6929_v60 = vpop.permute.xlu1 %6928  ;;  %9571 = vmatprep.subr.msk.mxu1 %vm369_vm0, %v6760_v55  ;;  %9575 = vmatpush1.msk.msra.mxu0 %vm369_vm0, %v6759_v51 }
 0x1c0   : > { %9572 = vmatpush1.msk.msra.mxu1 %vm369_vm0, %v6761_v59  ;;  %9576 = vmatmul.mubr.msk.f32.vlgmr.msra.gmra.mxu0 %vm365_vm1, %v9570_v49 }
 0x1c1   : > { %9573 = vmatmul.mubr.msk.f32.vlgmr.msra.gmra.mxu1 %vm365_vm1, %v9570_v49  ;;  %v6927_v61 = vpop.permute.xlu0 %6926  ;;  %7091 = vmatprep.mubr.f32.mxu0 %v9878_v11  ;;  %v2693_v6 = vpop.f32.mrf.mxu0 }
 0x1c2   : > { %7020 = vmatprep.mubr.f32.mxu1 %v9878_v11  ;;  %v2700_v7 = vadd.f32 %v2693_v6, %v2524_v38  ;;  %v2622_v9 = vpop.f32.mrf.mxu1  ;;  %v6937_v22 = vsel %vm6934_vm11, %v6927_v61, %v6929_v60  ;;  %v9139_v6 = vld [vmem:[%s11663_s6] sm:$0xff] }
 0x1c3   : > { %v6933_v1 = vpop.permute.xlu1 %6932  ;;  %v2698_v10 = vadd.f32 %v2622_v9, %v2522_v41  ;;  %v2695_v2 = vpop.f32.mrf.mxu0  ;;  %9142 = vperm.xlu1 %9779, %v9139_v6  }
 0x1c4   : > { %v6938_v15 = vsel %vm6934_vm11, %v6933_v1, %v6927_v61  ;;  %v2701_v17 = vadd.f32 %v2695_v2, %v2525_v44  ;;  %v2624_v18 = vpop.f32.mrf.mxu1 }
 0x1c5   : > { %9581 = vmatprep.subr.msk.mxu0 %vm369_vm0, %v6938_v15  ;;  %v6931_v32 = vpop.permute.xlu0 %6930  ;;  %v2699_v3 = vadd.f32 %v2624_v18, %v2523_v50 }
 0x1c6   : > { %v6935_v20 = vsel %vm6934_vm11, %v6931_v32, %v6933_v1  ;;  %v6936_v21 = vsel %vm6934_vm11, %v6929_v60, %v6931_v32  ;;  %v9591_v60 = vld [vmem:[%s11662_s5 + $0x130] sm:$0xff] }
 0x1c7   : > { %v7105_v23 = vpop.permute.xlu1 %7104  ;;  %9578 = vmatprep.subr.msk.mxu1 %vm369_vm0, %v6936_v21  ;;  %9582 = vmatpush1.msk.msra.mxu0 %vm369_vm0, %v6935_v20 }
 0x1c8   : > { %9579 = vmatpush1.msk.msra.mxu1 %vm369_vm0, %v6937_v22  ;;  %9583 = vmatmul.mubr.msk.f32.vlgmr.msra.gmra.mxu0 %vm365_vm1, %v9577_v19 }
 0x1c9   : > { %9580 = vmatmul.mubr.msk.f32.vlgmr.msra.gmra.mxu1 %vm365_vm1, %v9577_v19  ;;  %v7103_v0 = vpop.permute.xlu0 %7102  ;;  %7267 = vmatprep.mubr.f32.mxu0 %v9878_v11  ;;  %v2869_v24 = vpop.f32.mrf.mxu0 }
 0x1ca   : > { %7196 = vmatprep.mubr.f32.mxu1 %v9878_v11  ;;  %v2876_v25 = vadd.f32 %v2869_v24, %v2700_v7  ;;  %v2798_v26 = vpop.f32.mrf.mxu1  ;;  %v7113_v39 = vsel %vm7110_vm12, %v7103_v0, %v7105_v23 }
 0x1cb   : > { %v7109_v27 = vpop.permute.xlu1 %7108  ;;  %v2874_v28 = vadd.f32 %v2798_v26, %v2698_v10  ;;  %v2871_v29 = vpop.f32.mrf.mxu0 }
 0x1cc   : > { %v7114_v30 = vsel %vm7110_vm12, %v7109_v27, %v7103_v0  ;;  %v2877_v31 = vadd.f32 %v2871_v29, %v2701_v17  ;;  %v2800_v33 = vpop.f32.mrf.mxu1  ;;  %v9598_v0 = vld [vmem:[%s11662_s5 + $0x138] sm:$0xff] }
 0x1cd   : > { %9588 = vmatprep.subr.msk.mxu0 %vm369_vm0, %v7114_v30  ;;  %v7107_v34 = vpop.permute.xlu0 %7106  ;;  %v2875_v36 = vadd.f32 %v2800_v33, %v2699_v3 }
 0x1ce   : > { %v7111_v37 = vsel %vm7110_vm12, %v7107_v34, %v7109_v27  ;;  %v7112_v38 = vsel %vm7110_vm12, %v7105_v23, %v7107_v34 }
 0x1cf   : > { %v7281_v40 = vpop.permute.xlu1 %7280  ;;  %9585 = vmatprep.subr.msk.mxu1 %vm369_vm0, %v7112_v38  ;;  %9589 = vmatpush1.msk.msra.mxu0 %vm369_vm0, %v7111_v37 }
 0x1d0   : > { %9586 = vmatpush1.msk.msra.mxu1 %vm369_vm0, %v7113_v39  ;;  %9590 = vmatmul.mubr.msk.f32.vlgmr.msra.gmra.mxu0 %vm365_vm1, %v9584_v35 }
 0x1d1   : > { %9587 = vmatmul.mubr.msk.f32.vlgmr.msra.gmra.mxu1 %vm365_vm1, %v9584_v35  ;;  %v7279_v41 = vpop.permute.xlu0 %7278  ;;  %7443 = vmatprep.mubr.f32.mxu0 %v9878_v11  ;;  %v3045_v42 = vpop.f32.mrf.mxu0 }
 0x1d2   : > { %7372 = vmatprep.mubr.f32.mxu1 %v9878_v11  ;;  %v3052_v43 = vadd.f32 %v3045_v42, %v2876_v25  ;;  %v2974_v44 = vpop.f32.mrf.mxu1  ;;  %v7289_v1 = vsel %vm7286_vm13, %v7279_v41, %v7281_v40 }
 0x1d3   : > { %v7285_v46 = vpop.permute.xlu1 %7284  ;;  %v3050_v47 = vadd.f32 %v2974_v44, %v2874_v28  ;;  %v3047_v49 = vpop.f32.mrf.mxu0 }
 0x1d4   : > { %v7290_v50 = vsel %vm7286_vm13, %v7285_v46, %v7279_v41  ;;  %v3053_v51 = vadd.f32 %v3047_v49, %v2877_v31  ;;  %v2976_v55 = vpop.f32.mrf.mxu1  ;;  %v9605_v41 = vld [vmem:[%s11662_s5 + $0x140] sm:$0xff] }
 0x1d5   : > { %9595 = vmatprep.subr.msk.mxu0 %vm369_vm0, %v7290_v50  ;;  %v7283_v59 = vpop.permute.xlu0 %7282  ;;  %v3051_v61 = vadd.f32 %v2976_v55, %v2875_v36 }
 0x1d6   : > { %v7287_v7 = vsel %vm7286_vm13, %v7283_v59, %v7285_v46  ;;  %v7288_v9 = vsel %vm7286_vm13, %v7281_v40, %v7283_v59 }
 0x1d7   : > { %v7457_v10 = vpop.permute.xlu1 %7456  ;;  %9592 = vmatprep.subr.msk.mxu1 %vm369_vm0, %v7288_v9  ;;  %9596 = vmatpush1.msk.msra.mxu0 %vm369_vm0, %v7287_v7 }
 0x1d8   : > { %9593 = vmatpush1.msk.msra.mxu1 %vm369_vm0, %v7289_v1  ;;  %9597 = vmatmul.mubr.msk.f32.vlgmr.msra.gmra.mxu0 %vm365_vm1, %v9591_v60 }
 0x1d9   : > { %9594 = vmatmul.mubr.msk.f32.vlgmr.msra.gmra.mxu1 %vm365_vm1, %v9591_v60  ;;  %v7455_v2 = vpop.permute.xlu0 %7454  ;;  %7619 = vmatprep.mubr.f32.mxu0 %v9878_v11  ;;  %v3221_v15 = vpop.f32.mrf.mxu0 }
 0x1da   : > { %7548 = vmatprep.mubr.f32.mxu1 %v9878_v11  ;;  %v3228_v17 = vadd.f32 %v3221_v15, %v3052_v43  ;;  %v3150_v18 = vpop.f32.mrf.mxu1  ;;  %v7465_v27 = vsel %vm7462_vm14, %v7455_v2, %v7457_v10 }
 0x1db   : > { %v7461_v32 = vpop.permute.xlu1 %7460  ;;  %v3226_v19 = vadd.f32 %v3150_v18, %v3050_v47  ;;  %v3223_v3 = vpop.f32.mrf.mxu0 }
 0x1dc   : > { %v7466_v20 = vsel %vm7462_vm14, %v7461_v32, %v7455_v2  ;;  %v3229_v21 = vadd.f32 %v3223_v3, %v3053_v51  ;;  %v3152_v22 = vpop.f32.mrf.mxu1  ;;  %v9619_v3 = vld [vmem:[%s11662_s5 + $0x150] sm:$0xff] }
 0x1dd   : > { %9602 = vmatprep.subr.msk.mxu0 %vm369_vm0, %v7466_v20  ;;  %v7459_v23 = vpop.permute.xlu0 %7458  ;;  %v3227_v24 = vadd.f32 %v3152_v22, %v3051_v61  ;;  %v9640_v22 = vld [vmem:[%s11662_s5 + $0x168] sm:$0xff] }
 0x1de   : > { %v7463_v25 = vsel %vm7462_vm14, %v7459_v23, %v7461_v32  ;;  %v7464_v26 = vsel %vm7462_vm14, %v7457_v10, %v7459_v23  ;;  %v9612_v10 = vld [vmem:[%s11662_s5 + $0x148] sm:$0xff] }
 0x1df   : > { %v7633_v28 = vpop.permute.xlu1 %7632  ;;  %9599 = vmatprep.subr.msk.mxu1 %vm369_vm0, %v7464_v26  ;;  %9603 = vmatpush1.msk.msra.mxu0 %vm369_vm0, %v7463_v25 }
 0x1e0   : > { %9600 = vmatpush1.msk.msra.mxu1 %vm369_vm0, %v7465_v27  ;;  %9604 = vmatmul.mubr.msk.f32.vlgmr.msra.gmra.mxu0 %vm365_vm1, %v9598_v0  ;;  %v9647_v27 = vld [vmem:[%s11662_s5 + $0x170] sm:$0xff] }
 0x1e1   : > { %9601 = vmatmul.mubr.msk.f32.vlgmr.msra.gmra.mxu1 %vm365_vm1, %v9598_v0  ;;  %v7631_v29 = vpop.permute.xlu0 %7630  ;;  %7795 = vmatprep.mubr.f32.mxu0 %v9878_v11  ;;  %v3397_v30 = vpop.f32.mrf.mxu0 }
 0x1e2   : > { %7724 = vmatprep.mubr.f32.mxu1 %v9878_v11  ;;  %v3404_v31 = vadd.f32 %v3397_v30, %v3228_v17  ;;  %v3326_v33 = vpop.f32.mrf.mxu1  ;;  %v7641_v46 = vsel %vm7638_vm15, %v7631_v29, %v7633_v28 }
 0x1e3   : > { %v7637_v34 = vpop.permute.xlu1 %7636  ;;  %v3402_v35 = vadd.f32 %v3326_v33, %v3226_v19  ;;  %v3399_v36 = vpop.f32.mrf.mxu0 }
 0x1e4   : > { %v7642_v37 = vsel %vm7638_vm15, %v7637_v34, %v7631_v29  ;;  %v3405_v38 = vadd.f32 %v3399_v36, %v3229_v21  ;;  %v3328_v39 = vpop.f32.mrf.mxu1 }
 0x1e5   : > { %9609 = vmatprep.subr.msk.mxu0 %vm369_vm0, %v7642_v37  ;;  %v7635_v40 = vpop.permute.xlu0 %7634  ;;  %v3403_v42 = vadd.f32 %v3328_v39, %v3227_v24 }
 0x1e6   : > { %v7639_v43 = vsel %vm7638_vm15, %v7635_v40, %v7637_v34  ;;  %v7640_v44 = vsel %vm7638_vm15, %v7633_v28, %v7635_v40  ;;  %v9654_v34 = vld [vmem:[%s11662_s5 + $0x178] sm:$0xff]  ;;  %v9661_v40 = vld [vmem:[%s11662_s5 + $0x180] sm:$0xff] }
 0x1e7   : > { %v7809_v47 = vpop.permute.xlu1 %7808  ;;  %9606 = vmatprep.subr.msk.mxu1 %vm369_vm0, %v7640_v44  ;;  %9610 = vmatpush1.msk.msra.mxu0 %vm369_vm0, %v7639_v43 }
 0x1e8   : > { %9607 = vmatpush1.msk.msra.mxu1 %vm369_vm0, %v7641_v46  ;;  %9611 = vmatmul.mubr.msk.f32.vlgmr.msra.gmra.mxu0 %vm365_vm1, %v9605_v41 }
 0x1e9   : > { %9608 = vmatmul.mubr.msk.f32.vlgmr.msra.gmra.mxu1 %vm365_vm1, %v9605_v41  ;;  %v7807_v49 = vpop.permute.xlu0 %7806  ;;  %7971 = vmatprep.mubr.f32.mxu0 %v9878_v11  ;;  %v3573_v50 = vpop.f32.mrf.mxu0 }
 0x1ea   : > { %7900 = vmatprep.mubr.f32.mxu1 %v9878_v11  ;;  %v11153_v51 = vadd.f32 %v3573_v50, %v3404_v31  ;;  %v3502_v55 = vpop.f32.mrf.mxu1  ;;  %v7817_v18 = vsel %vm7814_vm2, %v7807_v49, %v7809_v47 }
 0x1eb   : > { %v7813_v59 = vpop.permute.xlu1 %7812  ;;  %v11155_v60 = vadd.f32 %v3502_v55, %v3402_v35  ;;  %v3575_v61 = vpop.f32.mrf.mxu0 }
 0x1ec   : > { %v7818_v6 = vsel %vm7814_vm2, %v7813_v59, %v7807_v49  ;;  %v11159_v7 = vadd.f32 %v3575_v61, %v3405_v38  ;;  %v3504_v9 = vpop.f32.mrf.mxu1 }
 0x1ed   : > { %9616 = vmatprep.subr.msk.mxu0 %vm369_vm0, %v7818_v6  ;;  %v7811_v1 = vpop.permute.xlu0 %7810  ;;  %v11165_v2 = vadd.f32 %v3504_v9, %v3403_v42 }
 0x1ee   : > { %v7815_v15 = vsel %vm7814_vm2, %v7811_v1, %v7813_v59  ;;  %v7816_v17 = vsel %vm7814_vm2, %v7809_v47, %v7811_v1 }
 0x1ef   : > { %v8438_v32 = vpop.permute.xlu1 %8437  ;;  %9613 = vmatprep.subr.msk.mxu1 %vm369_vm0, %v7816_v17  ;;  %9617 = vmatpush1.msk.msra.mxu0 %vm369_vm0, %v7815_v15 }
 0x1f0   : > { %9614 = vmatpush1.msk.msra.mxu1 %vm369_vm0, %v7817_v18  ;;  %9618 = vmatmul.mubr.msk.f32.vlgmr.msra.gmra.mxu0 %vm365_vm1, %v9612_v10 }
 0x1f1   : > { %9623 = vmatprep.subr.msk.mxu0 %vm369_vm0, %v10264_v57  ;;  %9615 = vmatmul.mubr.msk.f32.vlgmr.msra.gmra.mxu1 %vm365_vm1, %v9612_v10  ;;  %v8436_v19 = vpop.permute.xlu0 %8435  ;;  %v11287_v38 = vpop.f32.mrf.mxu0 }
 0x1f2   : > { %9620 = vmatprep.subr.msk.mxu1 %vm369_vm0, %v10244_v53  ;;  %9624 = vmatpush1.msk.msra.mxu0 %vm369_vm0, %v10229_v48  ;;  %v9626_v53 = vld [vmem:[%s11662_s5 + $0x158] sm:$0xff]  ;;  %v11297_v43 = vpop.f32.mrf.mxu1 }
 0x1f3   : > { %v8442_v20 = vpop.permute.xlu1 %8441  ;;  %9621 = vmatpush1.msk.msra.mxu1 %vm369_vm0, %v10250_v54  ;;  %9630 = vmatprep.subr.msk.mxu0 %vm369_vm0, %v10295_v4  ;;  %v11304_v47 = vpop.f32.mrf.mxu0 }
 0x1f4   : > { %8122 = vmatprep.mubr.f32.mxu0 %v9878_v11  ;;  %9627 = vmatprep.subr.msk.mxu1 %vm369_vm0, %v10285_v62  ;;  %v9633_v62 = vld [vmem:[%s11662_s5 + $0x160] sm:$0xff] }
 0x1f5   : > { %8051 = vmatprep.mubr.f32.mxu1 %v9878_v11  ;;  %9625 = vmatmul.mubr.msk.f32.vlgmr.msra.gmra.mxu0 %vm365_vm1, %v9619_v3  ;;  %v8440_v48 = vpop.permute.xlu0 %8439 }
 0x1f6   : > { %9631 = vmatpush1.msk.msra.mxu0 %vm369_vm0, %v10269_v58  ;;  %9622 = vmatmul.mubr.msk.f32.vlgmr.msra.gmra.mxu1 %vm365_vm1, %v9619_v3  ;;  %v8446_v58 = vsel %vm8443_vm3, %v8436_v19, %v8438_v32 }
 0x1f7   : > { %v8614_v54 = vpop.permute.xlu1 %8613  ;;  %9628 = vmatpush1.msk.msra.mxu1 %vm369_vm0, %v10289_v63  ;;  %9637 = vmatprep.subr.msk.mxu0 %vm369_vm0, %v10335_v16  ;;  %v8444_v63 = vsel %vm8443_vm3, %v8440_v48, %v8442_v20  ;;  %v8445_v16 = vsel %vm8443_vm3, %v8438_v32, %v8440_v48 }
 0x1f8   : > { %9634 = vmatprep.subr.msk.mxu1 %vm369_vm0, %v10324_v12  ;;  %8273 = vmatprep.mubr.f32.mxu0 %v9878_v11 }
 0x1f9   : > { %8202 = vmatprep.mubr.f32.mxu1 %v9878_v11  ;;  %9632 = vmatmul.mubr.msk.f32.vlgmr.msra.gmra.mxu0 %vm365_vm1, %v9626_v53  ;;  %v8612_v57 = vpop.permute.xlu0 %8611  ;;  %v11311_v49 = vpop.f32.mrf.mxu0 }
 0x1fa   : > { %9638 = vmatpush1.msk.msra.mxu0 %vm369_vm0, %v10312_v8  ;;  %9629 = vmatmul.mubr.msk.f32.vlgmr.msra.gmra.mxu1 %vm365_vm1, %v9626_v53  ;;  %v8447_v8 = vsel %vm8443_vm3, %v8442_v20, %v8436_v19 }
 0x1fb   : > { %v8618_v4 = vpop.permute.xlu1 %8617  ;;  %9635 = vmatpush1.msk.msra.mxu1 %vm369_vm0, %v10328_v13  ;;  %9644 = vmatprep.subr.msk.mxu0 %vm369_vm0, %v8446_v58  ;;  %v8622_v13 = vsel %vm8619_vm4, %v8612_v57, %v8614_v54  ;;  %v11318_v14 = vpop.f32.mrf.mxu0 }
 0x1fc   : > { %9641 = vmatprep.subr.msk.mxu1 %vm369_vm0, %v8444_v63  ;;  %8424 = vmatprep.mubr.f32.mxu0 %v9878_v11  ;;  %v8623_v0 = vsel %vm8619_vm4, %v8618_v4, %v8612_v57 }
 0x1fd   : > { %8353 = vmatprep.mubr.f32.mxu1 %v9878_v11  ;;  %9639 = vmatmul.mubr.msk.f32.vlgmr.msra.gmra.mxu0 %vm365_vm1, %v9633_v62  ;;  %v8616_v12 = vpop.permute.xlu0 %8615 }
 0x1fe   : > { %9645 = vmatpush1.msk.msra.mxu0 %vm369_vm0, %v8447_v8  ;;  %9636 = vmatmul.mubr.msk.f32.vlgmr.msra.gmra.mxu1 %vm365_vm1, %v9633_v62  ;;  %v8620_v21 = vsel %vm8619_vm4, %v8616_v12, %v8618_v4  ;;  %v8621_v25 = vsel %vm8619_vm4, %v8614_v54, %v8616_v12 }
 0x1ff   : > { %v8790_v23 = vpop.permute.xlu1 %8789  ;;  %9642 = vmatpush1.msk.msra.mxu1 %vm369_vm0, %v8445_v16  ;;  %9651 = vmatprep.subr.msk.mxu0 %vm369_vm0, %v8622_v13 }
 0x200   : > { %8600 = vmatprep.mubr.f32.mxu0 %v9878_v11  ;;  %9648 = vmatprep.subr.msk.mxu1 %vm369_vm0, %v8620_v21 }
 0x201   : > { %8529 = vmatprep.mubr.f32.mxu1 %v9878_v11  ;;  %9646 = vmatmul.mubr.msk.f32.vlgmr.msra.gmra.mxu0 %vm365_vm1, %v9640_v22  ;;  %v8788_v24 = vpop.permute.xlu0 %8787  ;;  %v11327_v17 = vpop.f32.mrf.mxu0 }
 0x202   : > { %9652 = vmatpush1.msk.msra.mxu0 %vm369_vm0, %v8623_v0  ;;  %9643 = vmatmul.mubr.msk.f32.vlgmr.msra.gmra.mxu1 %vm365_vm1, %v9640_v22  ;;  %v8798_v26 = vsel %vm8795_vm5, %v8788_v24, %v8790_v23 }
 0x203   : > { %v8794_v28 = vpop.permute.xlu1 %8793  ;;  %9649 = vmatpush1.msk.msra.mxu1 %vm369_vm0, %v8621_v25  ;;  %8776 = vmatprep.mubr.f32.mxu0 %v9878_v11 }
 0x204   : > { %v8799_v29 = vsel %vm8795_vm5, %v8794_v28, %v8788_v24  ;;  %9658 = vmatprep.subr.msk.mxu0 %vm369_vm0, %v8798_v26  ;;  %8705 = vmatprep.mubr.f32.mxu1 %v9878_v11 }
 0x205   : > { %9653 = vmatmul.mubr.msk.f32.vlgmr.msra.gmra.mxu0 %vm365_vm1, %v9647_v27  ;;  %v8792_v30 = vpop.permute.xlu0 %8791 }
 0x206   : > { %9659 = vmatpush1.msk.msra.mxu0 %vm369_vm0, %v8799_v29  ;;  %9650 = vmatmul.mubr.msk.f32.vlgmr.msra.gmra.mxu1 %vm365_vm1, %v9647_v27  ;;  %v8796_v31 = vsel %vm8795_vm5, %v8792_v30, %v8794_v28  ;;  %v8797_v33 = vsel %vm8795_vm5, %v8790_v23, %v8792_v30 }
 0x207   : > { %v8966_v35 = vpop.permute.xlu1 %8965  ;;  %9655 = vmatprep.subr.msk.mxu1 %vm369_vm0, %v8796_v31  ;;  %8952 = vmatprep.mubr.f32.mxu0 %v9878_v11 }
 0x208   : > { %9656 = vmatpush1.msk.msra.mxu1 %vm369_vm0, %v8797_v33  ;;  %8881 = vmatprep.mubr.f32.mxu1 %v9878_v11 }
 0x209   : > { %9660 = vmatmul.mubr.msk.f32.vlgmr.msra.gmra.mxu0 %vm365_vm1, %v9654_v34  ;;  %v8964_v36 = vpop.permute.xlu0 %8963 }
 0x20a   : > { %9657 = vmatmul.mubr.msk.f32.vlgmr.msra.gmra.mxu1 %vm365_vm1, %v9654_v34  ;;  %v8974_v37 = vsel %vm8971_vm6, %v8964_v36, %v8966_v35  ;;  %9128 = vmatprep.mubr.f32.mxu0 %v9878_v11 }
 0x20b   : > { %v8970_v39 = vpop.permute.xlu1 %8969  ;;  %9665 = vmatprep.subr.msk.mxu0 %vm369_vm0, %v8974_v37  ;;  %9057 = vmatprep.mubr.f32.mxu1 %v9878_v11  ;;  %v11309_v11 = vpop.f32.mrf.mxu1 }
 0x20c   : > { %v8975_v41 = vsel %vm8971_vm6, %v8970_v39, %v8964_v36 }
 0x20d   : > { %9666 = vmatpush1.msk.msra.mxu0 %vm369_vm0, %v8975_v41  ;;  %v8968_v42 = vpop.permute.xlu0 %8967  ;;  %v11316_v50 = vpop.f32.mrf.mxu1 }
 0x20e   : > { %v8972_v44 = vsel %vm8971_vm6, %v8968_v42, %v8970_v39  ;;  %v8973_v46 = vsel %vm8971_vm6, %v8966_v35, %v8968_v42  ;;  %9667 = vmatmul.mubr.msk.f32.vlgmr.msra.gmra.mxu0 %vm365_vm1, %v9661_v40 }
 0x20f   : > { %9662 = vmatprep.subr.msk.mxu1 %vm369_vm0, %v8972_v44  ;;  %v11325_v1 = vpop.f32.mrf.mxu1 }
 0x210   : > { %9663 = vmatpush1.msk.msra.mxu1 %vm369_vm0, %v8973_v46 }
 0x211   : > { %9664 = vmatmul.mubr.msk.f32.vlgmr.msra.gmra.mxu1 %vm365_vm1, %v9661_v40  ;;  %v11333_v18 = vpop.f32.mrf.mxu1 }
 0x217   : > { %v359_v55 = vpop.permute.xlu0 %358 }
 0x218   : > { %v445_v59 = vadd.f32 %v10793_v45, %v359_v55  ;;  %v447_v61 = vadd.f32 %v10813_v56, %v359_v55  ;;  %v516_v6 = vadd.f32 %v10808_v52, %v359_v55  ;;  %v518_v9 = vadd.f32 %v10825_v5, %v359_v55  ;;  %v11335_v45 = vpop.f32.mrf.mxu0  ;;  %v11337_v56 = vpop.f32.mrf.mxu1 }
 0x21a   : > { %v524_v10 = vcombine.low %v445_v59, %v447_v61  ;;  %v525_v15 = vcombine.low %v516_v6, %v518_v9  ;;  %v11339_v52 = vpop.f32.mrf.mxu0  ;;  %v11341_v5 = vpop.f32.mrf.mxu1 }
 0x21c   : > { %528 = vst [vmem:[%s11329_s17] sm:$0xff] %v524_v10  ;;  %529 = vst [vmem:[%s11329_s17 + $0x8] sm:$0xff] %v525_v15  ;;  %v11343_v32 = vpop.f32.mrf.mxu0  ;;  %v11345_v19 = vpop.f32.mrf.mxu1 }
 0x21e   : > { %v11347_v3 = vpop.f32.mrf.mxu0  ;;  %v11349_v20 = vpop.f32.mrf.mxu1 }
 0x220   : > { %v11351_v48 = vpop.f32.mrf.mxu0  ;;  %v11353_v53 = vpop.f32.mrf.mxu1 }
 0x222   : > { %v11355_v54 = vpop.f32.mrf.mxu0  ;;  %v11357_v57 = vpop.f32.mrf.mxu1 }
 0x224   : > { %v11359_v58 = vpop.f32.mrf.mxu0  ;;  %v11361_v62 = vpop.f32.mrf.mxu1 }
 0x226   : > { %v11363_v63 = vpop.f32.mrf.mxu0  ;;  %v11365_v4 = vpop.f32.mrf.mxu1 }
 0x228   : > { %v11367_v8 = vpop.f32.mrf.mxu0  ;;  %v11369_v12 = vpop.f32.mrf.mxu1 }
 0x22a   : > { %v11371_v16 = vpop.f32.mrf.mxu0  ;;  %v11373_v13 = vpop.f32.mrf.mxu1 }
 0x22c   : > { %v11375_v21 = vpop.f32.mrf.mxu0  ;;  %v11377_v22 = vpop.f32.mrf.mxu1 }
 0x231   : > { %v11379_v23 = vpop.f32.mrf.mxu0 }
 0x232   : > { %v11381_v0 = vpop.f32.mrf.mxu1 }
 0x233   : > { %v11383_v24 = vpop.f32.mrf.mxu0 }
 0x234   : > { %v11385_v25 = vpop.f32.mrf.mxu1 }
 0x239   : > { %v11387_v26 = vpop.f32.mrf.mxu0 }
 0x23a   : > { %v11389_v27 = vpop.f32.mrf.mxu1 }
 0x23b   : > { %v11391_v28 = vpop.f32.mrf.mxu0 }
 0x23c   : > { %v11394_v29 = vpop.f32.mrf.mxu1 }
 0x241   : > { %v11402_v30 = vpop.f32.mrf.mxu0 }
 0x242   : > { %9797 = shalt.err (!%p9794_p3)
}
 0x243   : > { %s9798_s17 = scalar_lea.hbm %s11399_s24, 256  ;;  %s9802_s23 = scalar_lea.hbm %s11664_s7, 512 }
 0x244   : > { %p9799_p4 = scmp.ne.s32.totalorder %s11399_s24, %s9798_s17  ;;  %p9803_p9 = scmp.lt.s32.totalorder %s11399_s24, %s11664_s7 }
 0x245   : > { %p9804_p10 = scmp.lt.s32.totalorder %s9802_s23, %s9798_s17 }
 0x246   : > { %p9800_p7 = pnand %p9799_p4, %p10014_p5 }
 0x247   : > { %p9805_p11 = por %p9804_p10, %p9803_p9 }
 0x248   : > { %p9801_p8 = pneg %p9800_p7 }
 0x24a   : > { %p9806_p12 = pnand %p9805_p11, %p9801_p8 }
 0x24c   : > { %9809 = shalt.err (!%p9806_p12)
}
 0x24d   : > { %9686 = dma.vmem_to_hbm [thread:$0]  (%p10014_p5), %s9178_s26, 256, %s11399_s24, %s9154_s27   ;;  %v11421_v31 = vpop.f32.mrf.mxu1  ;;  %v11423_v33 = vpop.f32.mrf.mxu0 }
 0x24e   : > { %s9314_s0 = sshll.u32 %s11314_s25, 5  ;;  %s9678_s26 = sshll.u32 %s9997_s13, 9 }
 0x24f   : > { %v11425_v34 = vpop.f32.mrf.mxu1  ;;  %v11427_v35 = vpop.f32.mrf.mxu0  ;;  %s336_s24 = scalar_lea.vmem [#allocation4], %s9314_s0  ;;  %s9189_s16 = scalar_lea.hbm %s11665_s8, %s9678_s26 }
 0x250   : > { %s9191_s27 = sshll.u32 %s336_s24, 4  ;;  %s9159_s17 = scalar_lea.sflag [#allocation5], %s11314_s25  ;;  %s9192_s27 = int_to_ptr.vmem [resolvable:$true] %s9191_s27 }
 0x251   : > { %v11429_v36 = vpop.f32.mrf.mxu1  ;;  %v11431_v37 = vpop.f32.mrf.mxu0  ;;  %s9810_s21 = scalar_lea.vmem %s9192_s27, 512  ;;  %s9925_s22 = smov [#allocation4]  }
 0x252   : > { %p9811_p13 = scmp.ne.s32.totalorder %s9192_s27, %s9810_s21  ;;  %s9814_s13 = sshll.u32 %s9925_s22, 4  ;;  %s9815_s13 = int_to_ptr.vmem [resolvable:$false] %s9814_s13 }
 0x253   : > { %v11433_v39 = vpop.f32.mrf.mxu1  ;;  %v11435_v40 = vpop.f32.mrf.mxu0  ;;  %s9816_s23 = scalar_lea.vmem %s9815_s13, 1024  ;;  %p9817_p2 = scmp.lt.s32.totalorder %s9192_s27, %s9815_s13 }
 0x254   : > { %11671 = vst [vmem:[#allocation8_spill] sm:$0xff] %v11433_v39  ;;  %p9812_p0 = pnand %p9811_p13, %p10014_p5  ;;  %p9818_p3 = scmp.lt.s32.totalorder %s9816_s23, %s9810_s21 }
 0x255   : > { %v11437_v41 = vpop.f32.mrf.mxu1  ;;  %v11439_v42 = vpop.f32.mrf.mxu0 }
 0x256   : > { %11672 = vst [vmem:[#allocation9_spill] sm:$0xff] %v11437_v41  ;;  %p9813_p1 = pneg %p9812_p0  ;;  %p9819_p4 = por %p9818_p3, %p9817_p2 }
 0x257   : > { %v11441_v44 = vpop.f32.mrf.mxu1 }
 0x258   : > { %11673 = vst [vmem:[#allocation10_spill] sm:$0xff] %v11441_v44  ;;  %v3756_v44 = vadd.f32 %v11287_v38, %v11153_v51  ;;  %v3755_v51 = vadd.f32 %v11309_v11, %v11165_v2  ;;  %p9820_p7 = pnand %p9819_p4, %p9813_p1 }
 0x259   : > { %v11443_v46 = vpop.f32.mrf.mxu0 }
 0x25a   : > { %v11445_v55 = vpop.f32.mrf.mxu1 }
 0x25b   : > { %11674 = vst [vmem:[#allocation11_spill] sm:$0xff] %v11445_v55  ;;  %v11447_v59 = vpop.f32.mrf.mxu0 }
 0x25c   : > { %11675 = vst [vmem:[#allocation12_spill] sm:$0xff] %v11447_v59  ;;  %v11449_v61 = vpop.f32.mrf.mxu1 }
 0x25d   : > { %11676 = vst [vmem:[#allocation13_spill] sm:$0xff] %v11449_v61  ;;  %v3757_v61 = vadd.f32 %v11304_v47, %v11159_v7 }
 0x25f   : > { %v3933_v38 = vadd.f32 %v11318_v14, %v3757_v61 }
 0x260   : > { %v11451_v6 = vpop.f32.mrf.mxu0 }
 0x261   : > { %11677 = vst [vmem:[#allocation14_spill] sm:$0xff] %v11451_v6  ;;  %v11453_v9 = vpop.f32.mrf.mxu1  ;;  %v3932_v6 = vadd.f32 %v11311_v49, %v3756_v44  ;;  %v3931_v44 = vadd.f32 %v11325_v1, %v3755_v51 }
 0x262   : > { %11678 = vst [vmem:[#allocation15_spill] sm:$0xff] %v11453_v9  ;;  %v11455_v10 = vpop.f32.mrf.mxu0  ;;  %v3754_v9 = vadd.f32 %v11297_v43, %v11155_v60  ;;  %v4109_v43 = vadd.f32 %v11335_v45, %v3933_v38 }
 0x263   : > { %v11457_v15 = vpop.f32.mrf.mxu1  ;;  %v4107_v11 = vadd.f32 %v11337_v56, %v3931_v44 }
 0x264   : > { %11679 = vst [vmem:[#allocation16_spill] sm:$0xff] %v11457_v15  ;;  %v3930_v7 = vadd.f32 %v11316_v50, %v3754_v9  ;;  %v4285_v50 = vadd.f32 %v11343_v32, %v4109_v43 }
 0x266   : > { %v4106_v2 = vadd.f32 %v11333_v18, %v3930_v7  ;;  %v4461_v18 = vadd.f32 %v11351_v48, %v4285_v50 }
 0x268   : > { %v11459_v41 = vpop.f32.mrf.mxu0  ;;  %v4282_v1 = vadd.f32 %v11341_v5, %v4106_v2  ;;  %v4637_v5 = vadd.f32 %v11359_v58, %v4461_v18 }
 0x269   : > { %11680 = vst [vmem:[#allocation17_spill] sm:$0xff] %v11459_v41  ;;  %v11463_v39 = vpop.f32.mrf.mxu1 }
 0x26a   : > { %11681 = vst [vmem:[#allocation18_spill] sm:$0xff] %v11463_v39  ;;  %v11465_v55 = vpop.f32.mrf.mxu0  ;;  %v4108_v39 = vadd.f32 %v11327_v17, %v3932_v6 }
 0x26b   : > { %v11470_v59 = vpop.f32.mrf.mxu1 }
 0x26c   : > { %11682 = vst [vmem:[#allocation19_spill] sm:$0xff] %v11470_v59 }
 0x270   : > { %v11474_v15 = vpop.f32.mrf.mxu0 }
 0x271   : > { %v11476_v41 = vpop.f32.mrf.mxu1 }
 0x272   : > { %11683 = vst [vmem:[#allocation20_spill] sm:$0xff] %v11476_v41  ;;  %v11483_v47 = vpop.f32.mrf.mxu0  ;;  %v4284_v41 = vadd.f32 %v11339_v52, %v4108_v39  ;;  %v4283_v52 = vadd.f32 %v11345_v19, %v4107_v11  ;;  %v4458_v39 = vadd.f32 %v11349_v20, %v4282_v1  ;;  %v4813_v20 = vadd.f32 %v11367_v8, %v4637_v5 }
 0x273   : > { %v11485_v49 = vpop.f32.mrf.mxu1 }
 0x274   : > { %v4460_v17 = vadd.f32 %v11347_v3, %v4284_v41  ;;  %v4459_v3 = vadd.f32 %v11353_v53, %v4283_v52  ;;  %v4634_v19 = vadd.f32 %v11357_v57, %v4458_v39  ;;  %v4989_v57 = vadd.f32 %v11375_v21, %v4813_v20  ;;  %v11685_v20 = vld [vmem:[#allocation9_spill] sm:$0xff] }
 0x276   : > { %v4636_v56 = vadd.f32 %v11355_v54, %v4460_v17  ;;  %v4635_v48 = vadd.f32 %v11361_v62, %v4459_v3  ;;  %v4810_v53 = vadd.f32 %v11365_v4, %v4634_v19  ;;  %v5165_v4 = vadd.f32 %v11383_v24, %v4989_v57  ;;  %v11688_v57 = vld [vmem:[#allocation10_spill] sm:$0xff] }
 0x278   : > { %v11488_v60 = vpop.f32.mrf.mxu0  ;;  %v4812_v51 = vadd.f32 %v11363_v63, %v4636_v56  ;;  %v4811_v63 = vadd.f32 %v11369_v12, %v4635_v48  ;;  %v4986_v2 = vadd.f32 %v11373_v13, %v4810_v53  ;;  %v5341_v13 = vadd.f32 %v11391_v28, %v5165_v4 }
 0x279   : > { %v11492_v59 = vpop.f32.mrf.mxu1 }
 0x27a   : > { %v11496_v14 = vpop.f32.mrf.mxu0  ;;  %v4988_v7 = vadd.f32 %v11371_v16, %v4812_v51  ;;  %v4987_v16 = vadd.f32 %v11377_v22, %v4811_v63  ;;  %v5162_v12 = vadd.f32 %v11381_v0, %v4986_v2  ;;  %v5517_v0 = vadd.f32 %v11423_v33, %v5341_v13 }
 0x27b   : > { %v11500_v61 = vpop.f32.mrf.mxu1 }
 0x27c   : > { %v5164_v62 = vadd.f32 %v11379_v23, %v4988_v7  ;;  %v5163_v21 = vadd.f32 %v11385_v25, %v4987_v16  ;;  %v5338_v22 = vadd.f32 %v11389_v27, %v5162_v12  ;;  %v5693_v28 = vadd.f32 %v11431_v37, %v5517_v0  ;;  %v11686_v37 = vld [vmem:[#allocation12_spill] sm:$0xff] }
 0x27e   : > { %v5340_v17 = vadd.f32 %v11387_v26, %v5164_v62  ;;  %v5339_v26 = vadd.f32 %v11394_v29, %v5163_v21  ;;  %v5514_v39 = vadd.f32 %v11421_v31, %v5338_v22  ;;  %v5869_v29 = vadd.f32 %v11439_v42, %v5693_v28  ;;  %v11684_v31 = vld [vmem:[#allocation8_spill] sm:$0xff]  ;;  %v11690_v42 = vld [vmem:[#allocation17_spill] sm:$0xff]  ;;  %v11692_v21 = vld [vmem:[#allocation15_spill] sm:$0xff] }
 0x27f   : > { %v11694_v28 = vld [vmem:[#allocation18_spill] sm:$0xff] }
 0x280   : > { %v11503_v6 = vpop.f32.mrf.mxu0  ;;  %v5516_v52 = vadd.f32 %v11402_v30, %v5340_v17  ;;  %v5515_v27 = vadd.f32 %v11425_v34, %v5339_v26  ;;  %v5690_v51 = vadd.f32 %v11429_v36, %v5514_v39  ;;  %v6045_v53 = vadd.f32 %v11686_v37, %v5869_v29  ;;  %v11689_v34 = vld [vmem:[#allocation11_spill] sm:$0xff]  ;;  %v11691_v17 = vld [vmem:[#allocation13_spill] sm:$0xff] }
 0x281   : > { %v11505_v45 = vpop.f32.mrf.mxu1 }
 0x282   : > { %v11511_v9 = vpop.f32.mrf.mxu0  ;;  %v5692_v25 = vadd.f32 %v11427_v35, %v5516_v52  ;;  %v5691_v48 = vadd.f32 %v11684_v31, %v5515_v27  ;;  %v5866_v7 = vadd.f32 %v11685_v20, %v5690_v51  ;;  %v6221_v16 = vadd.f32 %v11455_v10, %v6045_v53 }
 0x283   : > { %v11513_v32 = vpop.f32.mrf.mxu1 }
 0x284   : > { %v5868_v30 = vadd.f32 %v11435_v40, %v5692_v25  ;;  %v11687_v40 = vld [vmem:[#allocation14_spill] sm:$0xff]  ;;  %v5867_v62 = vadd.f32 %v11688_v57, %v5691_v48  ;;  %v6042_v2 = vadd.f32 %v11689_v34, %v5866_v7  ;;  %v6397_v22 = vadd.f32 %v11465_v55, %v6221_v16  ;;  %v11693_v25 = vld [vmem:[#allocation16_spill] sm:$0xff] }
 0x285   : > { %v11696_v48 = vld [vmem:[#allocation20_spill] sm:$0xff] }
 0x286   : > { %v6044_v33 = vadd.f32 %v11443_v46, %v5868_v30  ;;  %v6043_v12 = vadd.f32 %v11691_v17, %v5867_v62  ;;  %v6218_v13 = vadd.f32 %v11692_v21, %v6042_v2  ;;  %v6573_v10 = vadd.f32 %v11483_v47, %v6397_v22 }
 0x288   : > { %v11516_v41 = vpop.f32.mrf.mxu0  ;;  %v6220_v63 = vadd.f32 %v11687_v40, %v6044_v33  ;;  %v6219_v39 = vadd.f32 %v11693_v25, %v6043_v12  ;;  %v6394_v30 = vadd.f32 %v11694_v28, %v6218_v13  ;;  %v11695_v33 = vld [vmem:[#allocation19_spill] sm:$0xff]  ;;  %v6749_v7 = vadd.f32 %v11496_v14, %v6573_v10 }
 0x289   : > { %v11520_v38 = vpop.f32.mrf.mxu1 }
 0x28a   : > { %v11524_v54 = vpop.f32.mrf.mxu0  ;;  %v6396_v4 = vadd.f32 %v11690_v42, %v6220_v63  ;;  %v6395_v31 = vadd.f32 %v11695_v33, %v6219_v39  ;;  %v6570_v20 = vadd.f32 %v11696_v48, %v6394_v30  ;;  %v6925_v63 = vadd.f32 %v11511_v9, %v6749_v7 }
 0x28b   : > { %v11528_v44 = vpop.f32.mrf.mxu1 }
 0x28c   : > { %v6572_v26 = vadd.f32 %v11474_v15, %v6396_v4  ;;  %v6571_v37 = vadd.f32 %v11485_v49, %v6395_v31  ;;  %v6746_v53 = vadd.f32 %v11492_v59, %v6570_v20  ;;  %v7101_v14 = vadd.f32 %v11524_v54, %v6925_v63 }
 0x28e   : > { %v6748_v51 = vadd.f32 %v11488_v60, %v6572_v26  ;;  %v6747_v57 = vadd.f32 %v11500_v61, %v6571_v37  ;;  %v6922_v62 = vadd.f32 %v11505_v45, %v6746_v53 }
 0x290   : > { %v11531_v43 = vpop.f32.mrf.mxu0  ;;  %v6924_v55 = vadd.f32 %v11503_v6, %v6748_v51  ;;  %v6923_v49 = vadd.f32 %v11513_v32, %v6747_v57  ;;  %v7098_v59 = vadd.f32 %v11520_v38, %v6922_v62 }
 0x291   : > { %v11533_v58 = vpop.f32.mrf.mxu1 }
 0x292   : > { %v11539_v11 = vpop.f32.mrf.mxu0  ;;  %v7100_v47 = vadd.f32 %v11516_v41, %v6924_v55  ;;  %v7099_v61 = vadd.f32 %v11528_v44, %v6923_v49  ;;  %v7274_v45 = vadd.f32 %v11533_v58, %v7098_v59 }
 0x293   : > { %v11541_v8 = vpop.f32.mrf.mxu1  ;;  %v7277_v9 = vadd.f32 %v11539_v11, %v7101_v14  ;;  %v9143_v14 = vpop.permute.xlu1 %9142 }
 0x294   : > { %v7276_v6 = vadd.f32 %v11531_v43, %v7100_v47  ;;  %v7275_v32 = vadd.f32 %v11541_v8, %v7099_v61 }
 0x298   : > { %v11544_v50 = vpop.f32.mrf.mxu0 }
 0x299   : > { %v11548_v1 = vpop.f32.mrf.mxu1  ;;  %v7452_v41 = vadd.f32 %v11544_v50, %v7276_v6 }
 0x29a   : > { %v11552_v23 = vpop.f32.mrf.mxu0  ;;  %v7450_v38 = vadd.f32 %v11548_v1, %v7274_v45 }
 0x29b   : > { %v11556_v18 = vpop.f32.mrf.mxu1  ;;  %v7453_v54 = vadd.f32 %v11552_v23, %v7277_v9 }
 0x29c   : > { %v7451_v13 = vadd.f32 %v11556_v18, %v7275_v32 }
 0x2a0   : > { %v11559_v56 = vpop.f32.mrf.mxu0 }
 0x2a1   : > { %v11561_v24 = vpop.f32.mrf.mxu1  ;;  %v7628_v43 = vadd.f32 %v11559_v56, %v7452_v41 }
 0x2a2   : > { %v11567_v3 = vpop.f32.mrf.mxu0  ;;  %v7626_v44 = vadd.f32 %v11561_v24, %v7450_v38 }
 0x2a3   : > { %v11571_v5 = vpop.f32.mrf.mxu1  ;;  %v7629_v11 = vadd.f32 %v11567_v3, %v7453_v54 }
 0x2a4   : > { %v7627_v56 = vadd.f32 %v11571_v5, %v7451_v13 }
 0x2a8   : > { %v7797_v19 = vpop.f32.mrf.mxu0 }
 0x2a9   : > { %v11577_v35 = vpop.f32.mrf.mxu1  ;;  %v7804_v21 = vadd.f32 %v7797_v19, %v7628_v43 }
 0x2aa   : > { %v7799_v36 = vpop.f32.mrf.mxu0  ;;  %v7802_v25 = vadd.f32 %v11577_v35, %v7626_v44 }
 0x2ab   : > { %v7728_v46 = vpop.f32.mrf.mxu1  ;;  %v7805_v22 = vadd.f32 %v7799_v36, %v7629_v11 }
 0x2ac   : > { %v7803_v30 = vadd.f32 %v7728_v46, %v7627_v56 }
 0x2b0   : > { %v7973_v52 = vpop.f32.mrf.mxu0 }
 0x2b1   : > { %v7902_v0 = vpop.f32.mrf.mxu1  ;;  %v7980_v26 = vadd.f32 %v7973_v52, %v7804_v21 }
 0x2b2   : > { %v7975_v27 = vpop.f32.mrf.mxu0  ;;  %v7978_v3 = vadd.f32 %v7902_v0, %v7802_v25 }
 0x2b3   : > { %v7904_v29 = vpop.f32.mrf.mxu1  ;;  %v7981_v39 = vadd.f32 %v7975_v27, %v7805_v22 }
 0x2b4   : > { %v7979_v33 = vadd.f32 %v7904_v29, %v7803_v30 }
 0x2b5   : > { %v8124_v15 = vpop.f32.mrf.mxu0 }
 0x2b6   : > { %v8053_v40 = vpop.f32.mrf.mxu1  ;;  %v8131_v1 = vadd.f32 %v8124_v15, %v7980_v26 }
 0x2b7   : > { %v8126_v60 = vpop.f32.mrf.mxu0  ;;  %v8129_v24 = vadd.f32 %v8053_v40, %v7978_v3 }
 0x2b8   : > { %v8055_v34 = vpop.f32.mrf.mxu1  ;;  %v8132_v10 = vadd.f32 %v8126_v60, %v7981_v39 }
 0x2b9   : > { %v8275_v2 = vpop.f32.mrf.mxu0  ;;  %v8130_v20 = vadd.f32 %v8055_v34, %v7979_v33 }
 0x2ba   : > { %v8204_v16 = vpop.f32.mrf.mxu1  ;;  %v8282_v51 = vadd.f32 %v8275_v2, %v8131_v1 }
 0x2bb   : > { %v8277_v42 = vpop.f32.mrf.mxu0  ;;  %v8280_v5 = vadd.f32 %v8204_v16, %v8129_v24 }
 0x2bc   : > { %v8206_v4 = vpop.f32.mrf.mxu1  ;;  %v8283_v36 = vadd.f32 %v8277_v42, %v8132_v10 }
 0x2bd   : > { %v8426_v17 = vpop.f32.mrf.mxu0  ;;  %v8281_v15 = vadd.f32 %v8206_v4, %v8130_v20 }
 0x2be   : > { %v8355_v12 = vpop.f32.mrf.mxu1  ;;  %v8433_v52 = vadd.f32 %v8426_v17, %v8282_v51 }
 0x2bf   : > { %v8428_v50 = vpop.f32.mrf.mxu0  ;;  %v8431_v46 = vadd.f32 %v8355_v12, %v8280_v5 }
 0x2c0   : > { %v8357_v58 = vpop.f32.mrf.mxu1  ;;  %v8434_v7 = vadd.f32 %v8428_v50, %v8283_v36 }
 0x2c1   : > { %v8602_v23 = vpop.f32.mrf.mxu0  ;;  %v8432_v47 = vadd.f32 %v8357_v58, %v8281_v15 }
 0x2c2   : > { %v8531_v8 = vpop.f32.mrf.mxu1  ;;  %v8609_v27 = vadd.f32 %v8602_v23, %v8433_v52 }
 0x2c3   : > { %v8604_v28 = vpop.f32.mrf.mxu0  ;;  %v8607_v29 = vadd.f32 %v8531_v8, %v8431_v46 }
 0x2c4   : > { %v8533_v19 = vpop.f32.mrf.mxu1  ;;  %v8610_v0 = vadd.f32 %v8604_v28, %v8434_v7 }
 0x2c5   : > { %v8778_v18 = vpop.f32.mrf.mxu0  ;;  %v8608_v57 = vadd.f32 %v8533_v19, %v8432_v47 }
 0x2c6   : > { %v8707_v31 = vpop.f32.mrf.mxu1  ;;  %v8785_v37 = vadd.f32 %v8778_v18, %v8609_v27 }
 0x2c7   : > { %v8780_v48 = vpop.f32.mrf.mxu0  ;;  %v8783_v62 = vadd.f32 %v8707_v31, %v8607_v29 }
 0x2c8   : > { %v8709_v35 = vpop.f32.mrf.mxu1  ;;  %v8786_v40 = vadd.f32 %v8780_v48, %v8610_v0 }
 0x2c9   : > { %v8954_v55 = vpop.f32.mrf.mxu0  ;;  %v8784_v59 = vadd.f32 %v8709_v35, %v8608_v57 }
 0x2ca   : > { %v8883_v53 = vpop.f32.mrf.mxu1  ;;  %v8961_v60 = vadd.f32 %v8954_v55, %v8785_v37 }
 0x2cb   : > { %v8956_v63 = vpop.f32.mrf.mxu0  ;;  %v8959_v16 = vadd.f32 %v8883_v53, %v8783_v62 }
 0x2cc   : > { %v8962_v6 = vadd.f32 %v8956_v63, %v8786_v40  ;;  %v8885_v2 = vpop.f32.mrf.mxu1 }
 0x2cd   : > { %v8960_v45 = vadd.f32 %v8885_v2, %v8784_v59 }
 0x2ce   : > { %v9130_v34 = vpop.f32.mrf.mxu0 }
 0x2cf   : > { %v9137_v49 = vadd.f32 %v9130_v34, %v8961_v60 }
 0x2d0   : > { %v9132_v9 = vpop.f32.mrf.mxu0 }
 0x2d1   : > { %v9147_v41 = vadd.f32 %v9143_v14, %v9137_v49  ;;  %v9138_v42 = vadd.f32 %v9132_v9, %v8962_v6  ;;  %v9059_v61 = vpop.f32.mrf.mxu1 }
 0x2d2   : > { %v9135_v4 = vadd.f32 %v9059_v61, %v8959_v16 }
 0x2d3   : > { %9151 = vst [vmem:[%s336_s24 + $0x10] sm:$0xff] %v9147_v41  ;;  %v9148_v54 = vadd.f32 %v9143_v14, %v9138_v42  ;;  %v9061_v43 = vpop.f32.mrf.mxu1 }
 0x2d4   : > { %v9145_v17 = vadd.f32 %v9143_v14, %v9135_v4  ;;  %v9136_v32 = vadd.f32 %v9061_v43, %v8960_v45 }
 0x2d5   : > { %9152 = vst [vmem:[%s336_s24 + $0x18] sm:$0xff] %v9148_v54 }
 0x2d6   : > { %9149 = vst [vmem:[%s336_s24] sm:$0xff] %v9145_v17  ;;  %v9146_v38 = vadd.f32 %v9143_v14, %v9136_v32 }
 0x2d8   : > { %9150 = vst [vmem:[%s336_s24 + $0x8] sm:$0xff] %v9146_v38 }
 0x2d9   : > { %9823 = shalt.err (!%p9820_p7)
}
 0x2da   : > { %s9824_s29 = scalar_lea.hbm %s9189_s16, 512  ;;  %s9828_s24 = scalar_lea.hbm %s11665_s8, 1024 }
 0x2db   : > { %p9825_p8 = scmp.ne.s32.totalorder %s9189_s16, %s9824_s29  ;;  %p9829_p11 = scmp.lt.s32.totalorder %s9189_s16, %s11665_s8 }
 0x2dc   : > { %p9830_p12 = scmp.lt.s32.totalorder %s9828_s24, %s9824_s29 }
 0x2dd   : > { %p9826_p9 = pnand %p9825_p8, %p10014_p5 }
 0x2de   : > { %p9831_p13 = por %p9830_p12, %p9829_p11 }
 0x2df   : > { %p9827_p10 = pneg %p9826_p9 }
 0x2e1   : > { %p9832_p0 = pnand %p9831_p13, %p9827_p10 }
 0x2e3   : > { %9835 = shalt.err (!%p9832_p0)
}
 0x2e4   : > { %9687 = dma.vmem_to_hbm [thread:$0]  (%p10014_p5), %s9192_s27, 512, %s9189_s16, %s9159_s17  }
 0x2e5 PF: > { %p9697_p1 = scmp.ge.s32.totalorder %s9874_s12, 2  ;;  %s9206_s14 = sand.u32 1, %s9862_s30  }
 0x2e6   : > { %s9207_s21 = scalar_lea.sflag [#allocation3], %s9206_s14 }
 0x2e7   : > { %p9691_p2 = pnand %p9697_p1, %p10018_p6 }
 0x2e9   : > { %p9692_p3 = pneg %p9691_p2 }
 0x2eb   : > { %9853 = dma.done.wait (%p9692_p3), %s9207_s21, 256  }
 0x2ec   : > { %9855 = vsyncadd (%p9692_p3), %s9207_s21, 4294967040  ;;  %s9216_s22 = scalar_lea.sflag [#allocation5], %s9206_s14 }
 0x2ed   : > { %9857 = dma.done.wait (%p9692_p3), %s9216_s22, 512  }
 0x2ee   : > { %9859 = vsyncadd (%p9692_p3), %s9216_s22, 4294966784  ;;  %p23_p5 = scmp.ge.s32.totalorder %s10001_s15, 4   ;;  %s11697_s30 = smov %s9866_s10 }
 0x2ef   : > { %s11698_s10 = smov %s9870_s11  ;;  %s11699_s11 = smov %s10012_s18 }
 0x2f0   : > { %s11700_s12 = smov %s10001_s15  ;;  %25 = sbr.rel (!%p23_p5) target bundleno = 7 (0x7), region = 160 }
 0x2f5   :  { %9228 = vsyncpa [#allocation3], 1 }
 0x2f6   :  { %9230 = vsyncpa [#allocation3 + $0x1], 1 }
 0x2f7   :  { %9231 = vsyncpa [#allocation5], 1 }
 0x2f8   :  { %9233 = vsyncpa [#allocation5 + $0x1], 1 }

</bundles_post_ra>
